<compile_context>
chip_gen: v7x
topology: tpu7x:2x2x1
jax: 0.10.0
libtpu: 0.0.40
codegen_flags: <defaults>
</compile_context>

<pallas_src>
import functools

import jax
import jax.numpy as jnp
from jax.experimental import pallas as pl
from jax.experimental.pallas import tpu as pltpu

LANE = 128


def _round_up(x, m):
    return ((x + m - 1) // m) * m


# ----------------------------------------------------------------------------
# Tiled fused matmul + bias (+ optional ReLU).
#   grid = (M/tm, N/tn, K/tk); K innermost "arbitrary"; accumulation happens
#   directly in the resident f32 output block (no scratch).
#   Weights/bias arrive pre-padded (Kp, Np multiples of 128) and pre-cast.
# ----------------------------------------------------------------------------
def _matmul_bias_kernel(x_ref, w_ref, b_ref, o_ref, *, activation):
    @pl.when(pl.program_id(2) == 0)
    def _():
        o_ref[...] = jnp.zeros_like(o_ref)

    o_ref[...] += jnp.dot(x_ref[...], w_ref[...],
                          preferred_element_type=jnp.float32)

    @pl.when(pl.program_id(2) == pl.num_programs(2) - 1)
    def _():
        out = o_ref[...] + b_ref[...]
        if activation == "relu":
            out = jnp.maximum(out, 0.0)
        o_ref[...] = out


def matmul_bias(x, w_bf16, b_row, activation="none", tm=256, tn=256, tk=512):
    """x: (M, K) float; w_bf16: (Kp, Np) bf16 pre-padded; b_row: (1, Np) f32.
    Returns (M, Np) f32 (N stays padded; caller slices if it cares)."""
    M, K = x.shape
    Kp, Np = w_bf16.shape
    assert Kp % LANE == 0 and Np % LANE == 0 and K <= Kp

    Mp = _round_up(M, 8)
    tm = min(tm, Mp)
    Mp = _round_up(Mp, tm)
    tn = min(tn, Np)
    if Np % tn:
        tn = LANE
    tk = min(tk, Kp)
    if Kp % tk:
        tk = LANE

    xb = x
    if (Mp - M) or (Kp - K):
        xb = jnp.pad(x, ((0, Mp - M), (0, Kp - K)))
    xb = xb.astype(jnp.bfloat16)

    kern = functools.partial(_matmul_bias_kernel, activation=activation)
    out = pl.pallas_call(
        kern,
        out_shape=jax.ShapeDtypeStruct((Mp, Np), jnp.float32),
        grid=(Mp // tm, Np // tn, Kp // tk),
        in_specs=[
            pl.BlockSpec((tm, tk), lambda i, j, k: (i, k)),
            pl.BlockSpec((tk, tn), lambda i, j, k: (k, j)),
            pl.BlockSpec((1, tn), lambda i, j, k: (0, j)),
        ],
        out_specs=pl.BlockSpec((tm, tn), lambda i, j, k: (i, j)),
        compiler_params=pltpu.CompilerParams(
            dimension_semantics=("parallel", "parallel", "arbitrary")),
    )(xb, w_bf16, b_row)
    return out[:M]


# ----------------------------------------------------------------------------
# Fused encoder: conv (im2col matmul) + bias + ReLU + global-avg-pool
#                + fc projection + BatchNorm1d (training-mode batch stats).
#   patches : [N, HW, 9C] bf16, row-chunked over HW (grid axis "arbitrary")
#   acc     : [N, CCp] f32 VMEM scratch (partial pool sums, persists over grid)
#   output  : [N, Ep] f32, written once at the last chunk (lane-dense, Ep%128==0)
# ----------------------------------------------------------------------------
def _encoder_kernel(p_ref, cw_ref, cb_ref, fw_ref, fb_ref, o_ref, acc_ref, *, hw):
    n_img, rc, k9 = p_ref.shape
    ccp = cw_ref.shape[1]

    @pl.when(pl.program_id(0) == 0)
    def _():
        acc_ref[...] = jnp.zeros_like(acc_ref)

    feat = jnp.dot(p_ref[...].reshape(n_img * rc, k9), cw_ref[...],
                   preferred_element_type=jnp.float32)            # (N*rc, CCp)
    feat = jnp.maximum(feat + cb_ref[...], 0.0)                    # bias + ReLU
    acc_ref[...] += jnp.sum(feat.reshape(n_img, rc, ccp), axis=1)  # partial pool

    @pl.when(pl.program_id(0) == pl.num_programs(0) - 1)
    def _():
        pooled = acc_ref[...] * (1.0 / hw)                         # (N, CCp)
        proj = jnp.dot(pooled.astype(jnp.bfloat16), fw_ref[...],
                       preferred_element_type=jnp.float32) + fb_ref[...]
        mu = jnp.mean(proj, axis=0, keepdims=True)
        var = jnp.mean(jnp.square(proj - mu), axis=0, keepdims=True)
        o_ref[...] = ((proj - mu) * jax.lax.rsqrt(var + 1e-5)).astype(o_ref.dtype)


def encoder_conv_fc_bn(patches_3d, conv_w, conv_b, fc_w, fc_b, row_chunk=128):
    n_img, hw, k9 = patches_3d.shape
    ccp = conv_w.shape[1]
    ep = fc_w.shape[1]
    rc = row_chunk
    if hw % rc != 0 or rc % 8 != 0:
        # TODO(synk): handle ragged HW with masked rows instead of full-HW blocks.
        rc = hw
    kern = functools.partial(_encoder_kernel, hw=hw)
    return pl.pallas_call(
        kern,
        out_shape=jax.ShapeDtypeStruct((n_img, ep), jnp.float32),
        grid=(hw // rc,),
        in_specs=[
            pl.BlockSpec((n_img, rc, k9), lambda r: (0, r, 0)),
            pl.BlockSpec((k9, ccp), lambda r: (0, 0)),
            pl.BlockSpec((1, ccp), lambda r: (0, 0)),
            pl.BlockSpec((ccp, ep), lambda r: (0, 0)),
            pl.BlockSpec((1, ep), lambda r: (0, 0)),
        ],
        out_specs=pl.BlockSpec((n_img, ep), lambda r: (0, 0)),
        scratch_shapes=[pltpu.VMEM((n_img, ccp), jnp.float32)],
        compiler_params=pltpu.CompilerParams(
            dimension_semantics=("arbitrary",)),
    )(patches_3d, conv_w, conv_b, fc_w, fc_b)


# ----------------------------------------------------------------------------
# LSTM recurrence, time-chunked pipeline.
#   gates_x : [T1p, B, 4*Hp] f32 (precomputed x @ W_ih + b), streamed Tc at a time
#   w_hh    : [Hp, 4*Hp] bf16, resident
#   out     : [T1p, B, Hp] f32 hidden sequence, written back chunk by chunk
#   h/c     : VMEM scratch, persist across grid steps ("arbitrary" axis)
# Gate order follows PyTorch nn.LSTM: i, f, g, o.  Hp is the lane-padded H.
# ----------------------------------------------------------------------------
def _lstm_kernel(gx_ref, whh_ref, hseq_ref, h_scr, c_scr, *, tc, hp):
    @pl.when(pl.program_id(0) == 0)
    def _():
        h_scr[...] = jnp.zeros_like(h_scr)
        c_scr[...] = jnp.zeros_like(c_scr)

    whh = whh_ref[...]                                   # hoisted (Hp, 4Hp) bf16

    def step(t, carry):
        h, c = carry
        gates = gx_ref[t] + jnp.dot(h.astype(jnp.bfloat16), whh,
                                    preferred_element_type=jnp.float32)
        i = jax.nn.sigmoid(gates[:, 0 * hp:1 * hp])
        f = jax.nn.sigmoid(gates[:, 1 * hp:2 * hp])
        g = jnp.tanh(gates[:, 2 * hp:3 * hp])
        o = jax.nn.sigmoid(gates[:, 3 * hp:4 * hp])
        c = f * c + i * g
        h = o * jnp.tanh(c)
        hseq_ref[t] = h
        return (h, c)

    h, c = jax.lax.fori_loop(0, tc, step, (h_scr[...], c_scr[...]), unroll=True)
    h_scr[...] = h
    c_scr[...] = c


def lstm_forward(gates_x, w_hh_bf16, *, hp, tc):
    # TODO(synk): add a leading "parallel" grid axis over batch halves for v7x
    # dual-TensorCore once B is large enough to split.
    T1p, B, G = gates_x.shape
    assert G == 4 * hp and T1p % tc == 0
    kern = functools.partial(_lstm_kernel, tc=tc, hp=hp)
    return pl.pallas_call(
        kern,
        out_shape=jax.ShapeDtypeStruct((T1p, B, hp), jnp.float32),
        grid=(T1p // tc,),
        in_specs=[
            pl.BlockSpec((tc, B, G), lambda s: (s, 0, 0)),
            pl.BlockSpec((hp, G), lambda s: (0, 0)),
        ],
        out_specs=pl.BlockSpec((tc, B, hp), lambda s: (s, 0, 0)),
        scratch_shapes=[
            pltpu.VMEM((B, hp), jnp.float32),   # h state
            pltpu.VMEM((B, hp), jnp.float32),   # c state
        ],
        compiler_params=pltpu.CompilerParams(
            dimension_semantics=("arbitrary",)),
    )(gates_x, w_hh_bf16)


# ----------------------------------------------------------------------------
# Glue: im2col for 3x3 / stride-1 / pad-1 conv (NHWC).
# ----------------------------------------------------------------------------
def im2col_3x3(x_nhwc):
    N, H, W, C = x_nhwc.shape
    xp = jnp.pad(x_nhwc, ((0, 0), (1, 1), (1, 1), (0, 0)))
    cols = []
    for dh in range(3):
        for dw in range(3):
            cols.append(xp[:, dh:dh + H, dw:dw + W, :])
    return jnp.concatenate(cols, axis=-1)  # [N, H, W, 9*C]


# ----------------------------------------------------------------------------
# Parameters
# ----------------------------------------------------------------------------
def init_params(key, in_channels, embed_size, hidden_size, vocab_size, conv_channels=8):
    ks = jax.random.split(key, 10)
    s = 0.1
    return {
        "conv_w": s * jax.random.normal(ks[0], (9 * in_channels, conv_channels), jnp.float32),
        "conv_b": s * jax.random.normal(ks[1], (conv_channels,), jnp.float32),
        "fc_w": s * jax.random.normal(ks[2], (conv_channels, embed_size), jnp.float32),
        "fc_b": s * jax.random.normal(ks[3], (embed_size,), jnp.float32),
        "embed": s * jax.random.normal(ks[4], (vocab_size, embed_size), jnp.float32),
        "w_ih": s * jax.random.normal(ks[5], (embed_size, 4 * hidden_size), jnp.float32),
        "w_hh": s * jax.random.normal(ks[6], (hidden_size, 4 * hidden_size), jnp.float32),
        # NOTE: maps to PyTorch's (b_ih + b_hh) when porting pretrained weights.
        "b_lstm": s * jax.random.normal(ks[7], (4 * hidden_size,), jnp.float32),
        "out_w": s * jax.random.normal(ks[8], (hidden_size, vocab_size), jnp.float32),
        "out_b": s * jax.random.normal(ks[9], (vocab_size,), jnp.float32),
    }


def prepare_params(p):
    """One-time (outside jit) weight padding / bf16 casting to TPU-friendly layouts."""
    E = p["fc_w"].shape[1]
    H = p["w_hh"].shape[0]
    CC = p["conv_w"].shape[1]
    V = p["out_w"].shape[1]
    Ep, Hp, CCp, Vp = [_round_up(d, LANE) for d in (E, H, CC, V)]

    def pad2(a, rows, cols):
        return jnp.pad(a, ((0, rows - a.shape[0]), (0, cols - a.shape[1])))

    # Gate-wise H -> Hp padding (exact: padded gates produce h_pad == 0).
    w_ih = jnp.pad(p["w_ih"].reshape(E, 4, H),
                   ((0, Ep - E), (0, 0), (0, Hp - H))).reshape(Ep, 4 * Hp)
    w_hh = jnp.pad(p["w_hh"].reshape(H, 4, H),
                   ((0, Hp - H), (0, 0), (0, Hp - H))).reshape(Hp, 4 * Hp)
    b_lstm = jnp.pad(p["b_lstm"].reshape(4, H), ((0, 0), (0, Hp - H))).reshape(1, 4 * Hp)

    return {
        "conv_w": pad2(p["conv_w"], p["conv_w"].shape[0], CCp).astype(jnp.bfloat16),
        "conv_b": jnp.pad(p["conv_b"], (0, CCp - CC)).reshape(1, CCp).astype(jnp.float32),
        "fc_w": pad2(p["fc_w"], CCp, Ep).astype(jnp.bfloat16),
        "fc_b": jnp.pad(p["fc_b"], (0, Ep - E)).reshape(1, Ep).astype(jnp.float32),
        "embed": jnp.pad(p["embed"], ((0, 0), (0, Ep - E))).astype(jnp.float32),
        "w_ih": w_ih.astype(jnp.bfloat16),
        "w_hh": w_hh.astype(jnp.bfloat16),
        "b_lstm": b_lstm.astype(jnp.float32),
        "out_w": pad2(p["out_w"], Hp, Vp).astype(jnp.bfloat16),
        "out_b": jnp.pad(p["out_b"], (0, Vp - V)).reshape(1, Vp).astype(jnp.float32),
    }


# ----------------------------------------------------------------------------
# Forward pass: EncoderDecoder.forward(images, captions)
# ----------------------------------------------------------------------------
def make_forward(vocab_size, lstm_chunk=8):
    @jax.jit
    def forward(prep, images_nchw, captions):
        # ---------------- Encoder (single fused pallas_call) ----------------
        x = jnp.transpose(images_nchw, (0, 2, 3, 1))               # NCHW -> NHWC
        N, H, W, C = x.shape
        patches = im2col_3x3(x).reshape(N, H * W, 9 * C).astype(jnp.bfloat16)
        features = encoder_conv_fc_bn(patches, prep["conv_w"], prep["conv_b"],
                                      prep["fc_w"], prep["fc_b"])   # [N, Ep] f32

        # ---------------- Decoder ----------------
        emb = jnp.take(prep["embed"], captions, axis=0)             # [B, T, Ep]
        seq = jnp.concatenate([features[:, None, :], emb], axis=1)  # [B, T+1, Ep]
        seq_tm = jnp.transpose(seq, (1, 0, 2))                      # [T1, B, Ep]
        T1, B, Ep = seq_tm.shape
        tc = min(lstm_chunk, T1)
        T1p = _round_up(T1, tc)
        if T1p != T1:
            seq_tm = jnp.pad(seq_tm, ((0, T1p - T1), (0, 0), (0, 0)))

        Hp = prep["w_hh"].shape[0]

        # Hoisted input-to-hidden projection: one matmul over all timesteps.
        gates_x = matmul_bias(seq_tm.reshape(T1p * B, Ep),
                              prep["w_ih"], prep["b_lstm"])         # [T1p*B, 4Hp]
        gates_x = gates_x.reshape(T1p, B, 4 * Hp)

        hiddens = lstm_forward(gates_x, prep["w_hh"], hp=Hp, tc=tc)  # [T1p, B, Hp]
        hid2d = hiddens[:T1].reshape(T1 * B, Hp)                     # time-major rows

        logits = matmul_bias(hid2d, prep["out_w"], prep["out_b"])    # [T1*B, Vp]
        logits = logits[:, :vocab_size].reshape(T1, B, vocab_size)
        return jnp.transpose(logits, (1, 0, 2))                      # [B, T+1, V]

    return forward


# ----------------------------------------------------------------------------
# Pure-JAX reference (f32) for tolerance checking.
# ----------------------------------------------------------------------------
def reference_forward(params, images_nchw, captions):
    x = jnp.transpose(images_nchw, (0, 2, 3, 1))
    N, H, W, C = x.shape
    patches = im2col_3x3(x).reshape(N, H * W, 9 * C)
    feat = jnp.maximum(jnp.einsum("nrk,kc->nrc", patches, params["conv_w"])
                       + params["conv_b"], 0.0)
    pooled = feat.mean(axis=1)
    proj = pooled @ params["fc_w"] + params["fc_b"]
    mu = proj.mean(axis=0, keepdims=True)
    var = proj.var(axis=0, keepdims=True)
    features = (proj - mu) / jnp.sqrt(var + 1e-5)

    emb = jnp.take(params["embed"], captions, axis=0)
    seq = jnp.concatenate([features[:, None, :], emb], axis=1)
    B, T1, _ = seq.shape
    Hd = params["w_hh"].shape[0]
    h = jnp.zeros((B, Hd), jnp.float32)
    c = jnp.zeros((B, Hd), jnp.float32)
    outs = []
    for t in range(T1):
        gates = seq[:, t, :] @ params["w_ih"] + params["b_lstm"] + h @ params["w_hh"]
        i = jax.nn.sigmoid(gates[:, :Hd])
        f = jax.nn.sigmoid(gates[:, Hd:2 * Hd])
        g = jnp.tanh(gates[:, 2 * Hd:3 * Hd])
        o = jax.nn.sigmoid(gates[:, 3 * Hd:])
        c = f * c + i * g
        h = o * jnp.tanh(c)
        outs.append(h)
    hseq = jnp.stack(outs, axis=1)
    return hseq @ params["out_w"] + params["out_b"]


if __name__ == "__main__":
    key = jax.random.PRNGKey(0)
    B, C, Himg, Wimg = 2, 4, 16, 16
    embed_size, hidden_size, vocab_size, T = 32, 32, 64, 8

    k_img, k_cap, k_par = jax.random.split(key, 3)
    images = jax.random.normal(k_img, (B, C, Himg, Wimg), jnp.float32)
    captions = jax.random.randint(k_cap, (B, T), 0, vocab_size, dtype=jnp.int32)
    raw_params = init_params(k_par, C, embed_size, hidden_size, vocab_size)

    prep = prepare_params(raw_params)          # one-time layout/cast, outside jit
    forward = make_forward(vocab_size)

    out = forward(prep, images, captions)
    out = jax.block_until_ready(out)
    assert out.shape == (B, T + 1, vocab_size), out.shape
    assert bool(jnp.all(jnp.isfinite(out)))

    ref = reference_forward(raw_params, images, captions)
    max_err = float(jnp.max(jnp.abs(out - ref)))
    assert max_err < 3e-2, f"max abs err vs f32 reference: {max_err}"

    print("KERNEL_OK")
</pallas_src>

<mosaic_0001>
module attributes {stable_mosaic.version = 11 : i64} {
  func.func @_encoder_kernel(%arg0: i32, %arg1: memref<2x128x36xbf16, #tpu.memory_space<vmem>>, %arg2: memref<36x128xbf16, #tpu.memory_space<vmem>>, %arg3: memref<1x128xf32, #tpu.memory_space<vmem>>, %arg4: memref<128x128xbf16, #tpu.memory_space<vmem>>, %arg5: memref<1x128xf32, #tpu.memory_space<vmem>>, %arg6: memref<2x128xf32, #tpu.memory_space<vmem>>, %arg7: memref<2x128xf32, #tpu.memory_space<vmem>>) attributes {dimension_semantics = [#tpu.dimension_semantics<arbitrary>], iteration_bounds = array<i64: 2>, scalar_prefetch = 0 : i64, scratch_operands = 1 : i64, tpu.core_type = #tpu.core_type<tc>, window_params = [{transform_indices = @transform_0, window_bounds = array<i64: 2, 128, 36>}, {pipeline_mode = #tpu.pipeline_mode<synchronous>, transform_indices = @transform_1, window_bounds = array<i64: 36, 128>}, {pipeline_mode = #tpu.pipeline_mode<synchronous>, transform_indices = @transform_2, window_bounds = array<i64: 1, 128>}, {pipeline_mode = #tpu.pipeline_mode<synchronous>, transform_indices = @transform_3, window_bounds = array<i64: 128, 128>}, {pipeline_mode = #tpu.pipeline_mode<synchronous>, transform_indices = @transform_4, window_bounds = array<i64: 1, 128>}, {pipeline_mode = #tpu.pipeline_mode<synchronous>, transform_indices = @transform_5, window_bounds = array<i64: 2, 128>}]} {
    %c0_i32 = arith.constant 0 : i32
    %0 = arith.cmpi eq, %arg0, %c0_i32 : i32
    %1 = arith.extui %0 : i1 to i32
    %c0_i32_0 = arith.constant 0 : i32
    %2 = arith.cmpi ne, %1, %c0_i32_0 : i32
    scf.if %2 {
      %cst_14 = arith.constant 0.000000e+00 : f32
      %20 = vector.broadcast %cst_14 : f32 to vector<2x128xf32>
      %c0_15 = arith.constant 0 : index
      %c0_16 = arith.constant 0 : index
      %21 = vector.load %arg7[%c0_15, %c0_16] : memref<2x128xf32, #tpu.memory_space<vmem>>, vector<2x128xf32>
      tpu.vector_store %arg7[%c0_15, %c0_16], %20 {strides = array<i32>} : memref<2x128xf32, #tpu.memory_space<vmem>>, vector<2x128xf32>,
    } else {
    }
    %c0 = arith.constant 0 : index
    %c0_1 = arith.constant 0 : index
    %c0_2 = arith.constant 0 : index
    %3 = vector.load %arg1[%c0, %c0_1, %c0_2] : memref<2x128x36xbf16, #tpu.memory_space<vmem>>, vector<2x128x36xbf16>
    %4 = vector.shape_cast %3 : vector<2x128x36xbf16> to vector<256x36xbf16>
    %c0_3 = arith.constant 0 : index
    %c0_4 = arith.constant 0 : index
    %5 = vector.load %arg2[%c0_3, %c0_4] : memref<36x128xbf16, #tpu.memory_space<vmem>>, vector<36x128xbf16>
    %cst = arith.constant dense<0.000000e+00> : vector<256x128xf32>
    %6 = tpu.matmul %4, %5, %cst {dimension_numbers = #tpu.dot_dimension_numbers<[1], [0], [0], [1], [0, 0, 1, 1], [], []>} : vector<256x36xbf16>, vector<36x128xbf16>, vector<256x128xf32> -> vector<256x128xf32>
    %c0_5 = arith.constant 0 : index
    %c0_6 = arith.constant 0 : index
    %7 = vector.load %arg3[%c0_5, %c0_6] : memref<1x128xf32, #tpu.memory_space<vmem>>, vector<1x128xf32>
    %8 = vector.broadcast %7 : vector<1x128xf32> to vector<256x128xf32>
    %9 = arith.addf %6, %8 : vector<256x128xf32>
    %cst_7 = arith.constant 0.000000e+00 : f32
    %10 = vector.broadcast %cst_7 : f32 to vector<256x128xf32>
    %11 = arith.maximumf %9, %10 : vector<256x128xf32>
    %c0_8 = arith.constant 0 : index
    %c0_9 = arith.constant 0 : index
    %12 = vector.load %arg7[%c0_8, %c0_9] : memref<2x128xf32, #tpu.memory_space<vmem>>, vector<2x128xf32>
    %13 = vector.shape_cast %11 : vector<256x128xf32> to vector<2x128x128xf32>
    %cst_10 = arith.constant dense<0.000000e+00> : vector<2x128xf32>
    %14 = vector.multi_reduction <add>, %13, %cst_10 [1] : vector<2x128x128xf32> to vector<2x128xf32>
    %15 = arith.addf %12, %14 : vector<2x128xf32>
    %c0_11 = arith.constant 0 : index
    %c0_12 = arith.constant 0 : index
    %16 = vector.load %arg7[%c0_11, %c0_12] : memref<2x128xf32, #tpu.memory_space<vmem>>, vector<2x128xf32>
    tpu.vector_store %arg7[%c0_11, %c0_12], %15 {strides = array<i32>} : memref<2x128xf32, #tpu.memory_space<vmem>>, vector<2x128xf32>,
    %c1_i32 = arith.constant 1 : i32
    %17 = arith.cmpi eq, %arg0, %c1_i32 : i32
    %18 = arith.extui %17 : i1 to i32
    %c0_i32_13 = arith.constant 0 : i32
    %19 = arith.cmpi ne, %18, %c0_i32_13 : i32
    scf.if %19 {
      %c0_14 = arith.constant 0 : index
      %c0_15 = arith.constant 0 : index
      %20 = vector.load %arg7[%c0_14, %c0_15] : memref<2x128xf32, #tpu.memory_space<vmem>>, vector<2x128xf32>
      %cst_16 = arith.constant 3.906250e-03 : f32
      %21 = vector.broadcast %cst_16 : f32 to vector<2x128xf32>
      %22 = arith.mulf %20, %21 : vector<2x128xf32>
      %23 = arith.truncf %22 : vector<2x128xf32> to vector<2x128xbf16>
      %c0_17 = arith.constant 0 : index
      %c0_18 = arith.constant 0 : index
      %24 = vector.load %arg4[%c0_17, %c0_18] : memref<128x128xbf16, #tpu.memory_space<vmem>>, vector<128x128xbf16>
      %cst_19 = arith.constant dense<0.000000e+00> : vector<2x128xf32>
      %25 = tpu.matmul %23, %24, %cst_19 {dimension_numbers = #tpu.dot_dimension_numbers<[1], [0], [0], [1], [0, 0, 1, 1], [], []>} : vector<2x128xbf16>, vector<128x128xbf16>, vector<2x128xf32> -> vector<2x128xf32>
      %c0_20 = arith.constant 0 : index
      %c0_21 = arith.constant 0 : index
      %26 = vector.load %arg5[%c0_20, %c0_21] : memref<1x128xf32, #tpu.memory_space<vmem>>, vector<1x128xf32>
      %27 = vector.broadcast %26 : vector<1x128xf32> to vector<2x128xf32>
      %28 = arith.addf %25, %27 : vector<2x128xf32>
      %cst_22 = arith.constant dense<0.000000e+00> : vector<128xf32>
      %29 = vector.multi_reduction <add>, %28, %cst_22 [0] : vector<2x128xf32> to vector<128xf32>
      %30 = vector.shape_cast %29 : vector<128xf32> to vector<1x128xf32>
      %cst_23 = arith.constant 2.000000e+00 : f32
      %31 = vector.broadcast %cst_23 : f32 to vector<1x128xf32>
      %32 = arith.divf %30, %31 : vector<1x128xf32>
      %33 = vector.broadcast %32 : vector<1x128xf32> to vector<2x128xf32>
      %34 = arith.subf %28, %33 : vector<2x128xf32>
      %35 = arith.mulf %34, %34 : vector<2x128xf32>
      %cst_24 = arith.constant dense<0.000000e+00> : vector<128xf32>
      %36 = vector.multi_reduction <add>, %35, %cst_24 [0] : vector<2x128xf32> to vector<128xf32>
      %37 = vector.shape_cast %36 : vector<128xf32> to vector<1x128xf32>
      %cst_25 = arith.constant 2.000000e+00 : f32
      %38 = vector.broadcast %cst_25 : f32 to vector<1x128xf32>
      %39 = arith.divf %37, %38 : vector<1x128xf32>
      %40 = vector.broadcast %32 : vector<1x128xf32> to vector<2x128xf32>
      %41 = arith.subf %28, %40 : vector<2x128xf32>
      %cst_26 = arith.constant 9.99999974E-6 : f32
      %42 = vector.broadcast %cst_26 : f32 to vector<1x128xf32>
      %43 = arith.addf %39, %42 : vector<1x128xf32>
      %44 = math.rsqrt %43 : vector<1x128xf32>
      %45 = vector.broadcast %44 : vector<1x128xf32> to vector<2x128xf32>
      %46 = arith.mulf %41, %45 : vector<2x128xf32>
      %c0_27 = arith.constant 0 : index
      %c0_28 = arith.constant 0 : index
      %47 = vector.load %arg6[%c0_27, %c0_28] : memref<2x128xf32, #tpu.memory_space<vmem>>, vector<2x128xf32>
      tpu.vector_store %arg6[%c0_27, %c0_28], %46 {strides = array<i32>} : memref<2x128xf32, #tpu.memory_space<vmem>>, vector<2x128xf32>,
    } else {
    }
    return
  }
  func.func @transform_0(%arg0: i32) -> (i32, i32, i32) {
    %c0_i32 = arith.constant 0 : i32
    %c0_i32_0 = arith.constant 0 : i32
    %c0_i32_1 = arith.constant 0 : i32
    return %c0_i32, %arg0, %c0_i32_0 : i32, i32, i32
  }
  func.func @transform_1(%arg0: i32) -> (i32, i32) {
    %c0_i32 = arith.constant 0 : i32
    %c0_i32_0 = arith.constant 0 : i32
    %c0_i32_1 = arith.constant 0 : i32
    return %c0_i32, %c0_i32_0 : i32, i32
  }
  func.func @transform_2(%arg0: i32) -> (i32, i32) {
    %c0_i32 = arith.constant 0 : i32
    %c0_i32_0 = arith.constant 0 : i32
    %c0_i32_1 = arith.constant 0 : i32
    return %c0_i32, %c0_i32_0 : i32, i32
  }
  func.func @transform_3(%arg0: i32) -> (i32, i32) {
    %c0_i32 = arith.constant 0 : i32
    %c0_i32_0 = arith.constant 0 : i32
    %c0_i32_1 = arith.constant 0 : i32
    return %c0_i32, %c0_i32_0 : i32, i32
  }
  func.func @transform_4(%arg0: i32) -> (i32, i32) {
    %c0_i32 = arith.constant 0 : i32
    %c0_i32_0 = arith.constant 0 : i32
    %c0_i32_1 = arith.constant 0 : i32
    return %c0_i32, %c0_i32_0 : i32, i32
  }
  func.func @transform_5(%arg0: i32) -> (i32, i32) {
    %c0_i32 = arith.constant 0 : i32
    %c0_i32_0 = arith.constant 0 : i32
    %c0_i32_1 = arith.constant 0 : i32
    return %c0_i32, %c0_i32_0 : i32, i32
  }
}

module attributes {stable_mosaic.version = 11 : i64} {
  func.func @_matmul_bias_kernel(%arg0: i32, %arg1: i32, %arg2: i32, %arg3: memref<32x128xbf16, #tpu.memory_space<vmem>>, %arg4: memref<128x256xbf16, #tpu.memory_space<vmem>>, %arg5: memref<1x256xf32, #tpu.memory_space<vmem>>, %arg6: memref<32x256xf32, #tpu.memory_space<vmem>>) attributes {dimension_semantics = [#tpu.dimension_semantics<parallel>, #tpu.dimension_semantics<parallel>, #tpu.dimension_semantics<arbitrary>], iteration_bounds = array<i64: 1, 2, 1>, scalar_prefetch = 0 : i64, scratch_operands = 0 : i64, tpu.core_type = #tpu.core_type<tc>, window_params = [{transform_indices = @transform_0, window_bounds = array<i64: 32, 128>}, {transform_indices = @transform_1, window_bounds = array<i64: 128, 256>}, {transform_indices = @transform_2, window_bounds = array<i64: 1, 256>}, {transform_indices = @transform_3, window_bounds = array<i64: 32, 256>}]} {
    %c0_i32 = arith.constant 0 : i32
    %0 = arith.cmpi eq, %arg2, %c0_i32 : i32
    %1 = arith.extui %0 : i1 to i32
    %c0_i32_0 = arith.constant 0 : i32
    %2 = arith.cmpi ne, %1, %c0_i32_0 : i32
    scf.if %2 {
      %cst_10 = arith.constant 0.000000e+00 : f32
      %12 = vector.broadcast %cst_10 : f32 to vector<32x256xf32>
      %c0_11 = arith.constant 0 : index
      %c0_12 = arith.constant 0 : index
      %13 = vector.load %arg6[%c0_11, %c0_12] : memref<32x256xf32, #tpu.memory_space<vmem>>, vector<32x256xf32>
      tpu.vector_store %arg6[%c0_11, %c0_12], %12 {strides = array<i32>} : memref<32x256xf32, #tpu.memory_space<vmem>>, vector<32x256xf32>,
    } else {
    }
    %c0 = arith.constant 0 : index
    %c0_1 = arith.constant 0 : index
    %3 = vector.load %arg6[%c0, %c0_1] : memref<32x256xf32, #tpu.memory_space<vmem>>, vector<32x256xf32>
    %c0_2 = arith.constant 0 : index
    %c0_3 = arith.constant 0 : index
    %4 = vector.load %arg3[%c0_2, %c0_3] : memref<32x128xbf16, #tpu.memory_space<vmem>>, vector<32x128xbf16>
    %c0_4 = arith.constant 0 : index
    %c0_5 = arith.constant 0 : index
    %5 = vector.load %arg4[%c0_4, %c0_5] : memref<128x256xbf16, #tpu.memory_space<vmem>>, vector<128x256xbf16>
    %cst = arith.constant dense<0.000000e+00> : vector<32x256xf32>
    %6 = tpu.matmul %4, %5, %cst {dimension_numbers = #tpu.dot_dimension_numbers<[1], [0], [0], [1], [0, 0, 1, 1], [], []>} : vector<32x128xbf16>, vector<128x256xbf16>, vector<32x256xf32> -> vector<32x256xf32>
    %7 = arith.addf %3, %6 : vector<32x256xf32>
    %c0_6 = arith.constant 0 : index
    %c0_7 = arith.constant 0 : index
    %8 = vector.load %arg6[%c0_6, %c0_7] : memref<32x256xf32, #tpu.memory_space<vmem>>, vector<32x256xf32>
    tpu.vector_store %arg6[%c0_6, %c0_7], %7 {strides = array<i32>} : memref<32x256xf32, #tpu.memory_space<vmem>>, vector<32x256xf32>,
    %c0_i32_8 = arith.constant 0 : i32
    %9 = arith.cmpi eq, %arg2, %c0_i32_8 : i32
    %10 = arith.extui %9 : i1 to i32
    %c0_i32_9 = arith.constant 0 : i32
    %11 = arith.cmpi ne, %10, %c0_i32_9 : i32
    scf.if %11 {
      %c0_10 = arith.constant 0 : index
      %c0_11 = arith.constant 0 : index
      %12 = vector.load %arg6[%c0_10, %c0_11] : memref<32x256xf32, #tpu.memory_space<vmem>>, vector<32x256xf32>
      %c0_12 = arith.constant 0 : index
      %c0_13 = arith.constant 0 : index
      %13 = vector.load %arg5[%c0_12, %c0_13] : memref<1x256xf32, #tpu.memory_space<vmem>>, vector<1x256xf32>
      %14 = vector.broadcast %13 : vector<1x256xf32> to vector<32x256xf32>
      %15 = arith.addf %12, %14 : vector<32x256xf32>
      %c0_14 = arith.constant 0 : index
      %c0_15 = arith.constant 0 : index
      %16 = vector.load %arg6[%c0_14, %c0_15] : memref<32x256xf32, #tpu.memory_space<vmem>>, vector<32x256xf32>
      tpu.vector_store %arg6[%c0_14, %c0_15], %15 {strides = array<i32>} : memref<32x256xf32, #tpu.memory_space<vmem>>, vector<32x256xf32>,
    } else {
    }
    return
  }
  func.func @transform_0(%arg0: i32, %arg1: i32, %arg2: i32) -> (i32, i32) {
    %c0_i32 = arith.constant 0 : i32
    return %arg0, %arg2 : i32, i32
  }
  func.func @transform_1(%arg0: i32, %arg1: i32, %arg2: i32) -> (i32, i32) {
    %c0_i32 = arith.constant 0 : i32
    return %arg2, %arg1 : i32, i32
  }
  func.func @transform_2(%arg0: i32, %arg1: i32, %arg2: i32) -> (i32, i32) {
    %c0_i32 = arith.constant 0 : i32
    %c0_i32_0 = arith.constant 0 : i32
    return %c0_i32, %arg1 : i32, i32
  }
  func.func @transform_3(%arg0: i32, %arg1: i32, %arg2: i32) -> (i32, i32) {
    %c0_i32 = arith.constant 0 : i32
    return %arg0, %arg1 : i32, i32
  }
}

module attributes {stable_mosaic.version = 11 : i64} {
  func.func @_lstm_kernel(%arg0: i32, %arg1: memref<8x2x512xf32, #tpu.memory_space<vmem>>, %arg2: memref<128x512xbf16, #tpu.memory_space<vmem>>, %arg3: memref<8x2x128xf32, #tpu.memory_space<vmem>>, %arg4: memref<2x128xf32, #tpu.memory_space<vmem>>, %arg5: memref<2x128xf32, #tpu.memory_space<vmem>>) attributes {dimension_semantics = [#tpu.dimension_semantics<arbitrary>], iteration_bounds = array<i64: 2>, scalar_prefetch = 0 : i64, scratch_operands = 2 : i64, tpu.core_type = #tpu.core_type<tc>, window_params = [{transform_indices = @transform_0, window_bounds = array<i64: 8, 2, 512>}, {pipeline_mode = #tpu.pipeline_mode<synchronous>, transform_indices = @transform_1, window_bounds = array<i64: 128, 512>}, {transform_indices = @transform_2, window_bounds = array<i64: 8, 2, 128>}]} {
    %c0_i32 = arith.constant 0 : i32
    %0 = arith.cmpi eq, %arg0, %c0_i32 : i32
    %1 = arith.extui %0 : i1 to i32
    %c0_i32_0 = arith.constant 0 : i32
    %2 = arith.cmpi ne, %1, %c0_i32_0 : i32
    scf.if %2 {
      %cst_74 = arith.constant 0.000000e+00 : f32
      %288 = vector.broadcast %cst_74 : f32 to vector<2x128xf32>
      %c0_75 = arith.constant 0 : index
      %c0_76 = arith.constant 0 : index
      %289 = vector.load %arg4[%c0_75, %c0_76] : memref<2x128xf32, #tpu.memory_space<vmem>>, vector<2x128xf32>
      tpu.vector_store %arg4[%c0_75, %c0_76], %288 {strides = array<i32>} : memref<2x128xf32, #tpu.memory_space<vmem>>, vector<2x128xf32>,
      %cst_77 = arith.constant 0.000000e+00 : f32
      %290 = vector.broadcast %cst_77 : f32 to vector<2x128xf32>
      %c0_78 = arith.constant 0 : index
      %c0_79 = arith.constant 0 : index
      %291 = vector.load %arg5[%c0_78, %c0_79] : memref<2x128xf32, #tpu.memory_space<vmem>>, vector<2x128xf32>
      tpu.vector_store %arg5[%c0_78, %c0_79], %290 {strides = array<i32>} : memref<2x128xf32, #tpu.memory_space<vmem>>, vector<2x128xf32>,
    } else {
    }
    %c0 = arith.constant 0 : index
    %c0_1 = arith.constant 0 : index
    %3 = vector.load %arg2[%c0, %c0_1] : memref<128x512xbf16, #tpu.memory_space<vmem>>, vector<128x512xbf16>
    %c0_2 = arith.constant 0 : index
    %c0_3 = arith.constant 0 : index
    %4 = vector.load %arg4[%c0_2, %c0_3] : memref<2x128xf32, #tpu.memory_space<vmem>>, vector<2x128xf32>
    %c0_4 = arith.constant 0 : index
    %c0_5 = arith.constant 0 : index
    %5 = vector.load %arg5[%c0_4, %c0_5] : memref<2x128xf32, #tpu.memory_space<vmem>>, vector<2x128xf32>
    %c0_i32_6 = arith.constant 0 : i32
    %6 = arith.index_cast %c0_i32_6 : i32 to index
    %c0_7 = arith.constant 0 : index
    %c0_8 = arith.constant 0 : index
    %7 = vector.load %arg1[%6, %c0_7, %c0_8] : memref<8x2x512xf32, #tpu.memory_space<vmem>>, vector<1x2x512xf32>
    %8 = vector.shape_cast %7 : vector<1x2x512xf32> to vector<2x512xf32>
    %9 = arith.truncf %4 : vector<2x128xf32> to vector<2x128xbf16>
    %cst = arith.constant dense<0.000000e+00> : vector<2x512xf32>
    %10 = tpu.matmul %9, %3, %cst {dimension_numbers = #tpu.dot_dimension_numbers<[1], [0], [0], [1], [0, 0, 1, 1], [], []>} : vector<2x128xbf16>, vector<128x512xbf16>, vector<2x512xf32> -> vector<2x512xf32>
    %11 = arith.addf %8, %10 : vector<2x512xf32>
    %12 = vector.extract_strided_slice %11 {offsets = [0, 0], sizes = [2, 128], strides = [1, 1]} : vector<2x512xf32> to vector<2x128xf32>
    %13 = arith.negf %12 : vector<2x128xf32>
    %14 = math.exp %13 : vector<2x128xf32>
    %cst_9 = arith.constant 1.000000e+00 : f32
    %15 = vector.broadcast %cst_9 : f32 to vector<2x128xf32>
    %16 = arith.addf %15, %14 : vector<2x128xf32>
    %17 = arith.divf %15, %16 : vector<2x128xf32>
    %18 = vector.extract_strided_slice %11 {offsets = [0, 128], sizes = [2, 128], strides = [1, 1]} : vector<2x512xf32> to vector<2x128xf32>
    %19 = arith.negf %18 : vector<2x128xf32>
    %20 = math.exp %19 : vector<2x128xf32>
    %cst_10 = arith.constant 1.000000e+00 : f32
    %21 = vector.broadcast %cst_10 : f32 to vector<2x128xf32>
    %22 = arith.addf %21, %20 : vector<2x128xf32>
    %23 = arith.divf %21, %22 : vector<2x128xf32>
    %24 = vector.extract_strided_slice %11 {offsets = [0, 256], sizes = [2, 128], strides = [1, 1]} : vector<2x512xf32> to vector<2x128xf32>
    %25 = math.tanh %24 : vector<2x128xf32>
    %26 = vector.extract_strided_slice %11 {offsets = [0, 384], sizes = [2, 128], strides = [1, 1]} : vector<2x512xf32> to vector<2x128xf32>
    %27 = arith.negf %26 : vector<2x128xf32>
    %28 = math.exp %27 : vector<2x128xf32>
    %cst_11 = arith.constant 1.000000e+00 : f32
    %29 = vector.broadcast %cst_11 : f32 to vector<2x128xf32>
    %30 = arith.addf %29, %28 : vector<2x128xf32>
    %31 = arith.divf %29, %30 : vector<2x128xf32>
    %32 = arith.mulf %23, %5 : vector<2x128xf32>
    %33 = arith.mulf %17, %25 : vector<2x128xf32>
    %34 = arith.addf %32, %33 : vector<2x128xf32>
    %35 = math.tanh %34 : vector<2x128xf32>
    %36 = arith.mulf %31, %35 : vector<2x128xf32>
    %37 = arith.index_cast %c0_i32_6 : i32 to index
    %c0_12 = arith.constant 0 : index
    %c0_13 = arith.constant 0 : index
    %38 = vector.load %arg3[%37, %c0_12, %c0_13] : memref<8x2x128xf32, #tpu.memory_space<vmem>>, vector<1x2x128xf32>
    %39 = vector.shape_cast %38 : vector<1x2x128xf32> to vector<2x128xf32>
    %40 = vector.shape_cast %36 : vector<2x128xf32> to vector<1x2x128xf32>
    tpu.vector_store %arg3[%37, %c0_12, %c0_13], %40 {strides = array<i32>} : memref<8x2x128xf32, #tpu.memory_space<vmem>>, vector<1x2x128xf32>,
    %c1_i32 = arith.constant 1 : i32
    %41 = arith.index_cast %c1_i32 : i32 to index
    %c0_14 = arith.constant 0 : index
    %c0_15 = arith.constant 0 : index
    %42 = vector.load %arg1[%41, %c0_14, %c0_15] : memref<8x2x512xf32, #tpu.memory_space<vmem>>, vector<1x2x512xf32>
    %43 = vector.shape_cast %42 : vector<1x2x512xf32> to vector<2x512xf32>
    %44 = arith.truncf %36 : vector<2x128xf32> to vector<2x128xbf16>
    %cst_16 = arith.constant dense<0.000000e+00> : vector<2x512xf32>
    %45 = tpu.matmul %44, %3, %cst_16 {dimension_numbers = #tpu.dot_dimension_numbers<[1], [0], [0], [1], [0, 0, 1, 1], [], []>} : vector<2x128xbf16>, vector<128x512xbf16>, vector<2x512xf32> -> vector<2x512xf32>
    %46 = arith.addf %43, %45 : vector<2x512xf32>
    %47 = vector.extract_strided_slice %46 {offsets = [0, 0], sizes = [2, 128], strides = [1, 1]} : vector<2x512xf32> to vector<2x128xf32>
    %48 = arith.negf %47 : vector<2x128xf32>
    %49 = math.exp %48 : vector<2x128xf32>
    %cst_17 = arith.constant 1.000000e+00 : f32
    %50 = vector.broadcast %cst_17 : f32 to vector<2x128xf32>
    %51 = arith.addf %50, %49 : vector<2x128xf32>
    %52 = arith.divf %50, %51 : vector<2x128xf32>
    %53 = vector.extract_strided_slice %46 {offsets = [0, 128], sizes = [2, 128], strides = [1, 1]} : vector<2x512xf32> to vector<2x128xf32>
    %54 = arith.negf %53 : vector<2x128xf32>
    %55 = math.exp %54 : vector<2x128xf32>
    %cst_18 = arith.constant 1.000000e+00 : f32
    %56 = vector.broadcast %cst_18 : f32 to vector<2x128xf32>
    %57 = arith.addf %56, %55 : vector<2x128xf32>
    %58 = arith.divf %56, %57 : vector<2x128xf32>
    %59 = vector.extract_strided_slice %46 {offsets = [0, 256], sizes = [2, 128], strides = [1, 1]} : vector<2x512xf32> to vector<2x128xf32>
    %60 = math.tanh %59 : vector<2x128xf32>
    %61 = vector.extract_strided_slice %46 {offsets = [0, 384], sizes = [2, 128], strides = [1, 1]} : vector<2x512xf32> to vector<2x128xf32>
    %62 = arith.negf %61 : vector<2x128xf32>
    %63 = math.exp %62 : vector<2x128xf32>
    %cst_19 = arith.constant 1.000000e+00 : f32
    %64 = vector.broadcast %cst_19 : f32 to vector<2x128xf32>
    %65 = arith.addf %64, %63 : vector<2x128xf32>
    %66 = arith.divf %64, %65 : vector<2x128xf32>
    %67 = arith.mulf %58, %34 : vector<2x128xf32>
    %68 = arith.mulf %52, %60 : vector<2x128xf32>
    %69 = arith.addf %67, %68 : vector<2x128xf32>
    %70 = math.tanh %69 : vector<2x128xf32>
    %71 = arith.mulf %66, %70 : vector<2x128xf32>
    %72 = arith.index_cast %c1_i32 : i32 to index
    %c0_20 = arith.constant 0 : index
    %c0_21 = arith.constant 0 : index
    %73 = vector.load %arg3[%72, %c0_20, %c0_21] : memref<8x2x128xf32, #tpu.memory_space<vmem>>, vector<1x2x128xf32>
    %74 = vector.shape_cast %73 : vector<1x2x128xf32> to vector<2x128xf32>
    %75 = vector.shape_cast %71 : vector<2x128xf32> to vector<1x2x128xf32>
    tpu.vector_store %arg3[%72, %c0_20, %c0_21], %75 {strides = array<i32>} : memref<8x2x128xf32, #tpu.memory_space<vmem>>, vector<1x2x128xf32>,
    %c2_i32 = arith.constant 2 : i32
    %76 = arith.index_cast %c2_i32 : i32 to index
    %c0_22 = arith.constant 0 : index
    %c0_23 = arith.constant 0 : index
    %77 = vector.load %arg1[%76, %c0_22, %c0_23] : memref<8x2x512xf32, #tpu.memory_space<vmem>>, vector<1x2x512xf32>
    %78 = vector.shape_cast %77 : vector<1x2x512xf32> to vector<2x512xf32>
    %79 = arith.truncf %71 : vector<2x128xf32> to vector<2x128xbf16>
    %cst_24 = arith.constant dense<0.000000e+00> : vector<2x512xf32>
    %80 = tpu.matmul %79, %3, %cst_24 {dimension_numbers = #tpu.dot_dimension_numbers<[1], [0], [0], [1], [0, 0, 1, 1], [], []>} : vector<2x128xbf16>, vector<128x512xbf16>, vector<2x512xf32> -> vector<2x512xf32>
    %81 = arith.addf %78, %80 : vector<2x512xf32>
    %82 = vector.extract_strided_slice %81 {offsets = [0, 0], sizes = [2, 128], strides = [1, 1]} : vector<2x512xf32> to vector<2x128xf32>
    %83 = arith.negf %82 : vector<2x128xf32>
    %84 = math.exp %83 : vector<2x128xf32>
    %cst_25 = arith.constant 1.000000e+00 : f32
    %85 = vector.broadcast %cst_25 : f32 to vector<2x128xf32>
    %86 = arith.addf %85, %84 : vector<2x128xf32>
    %87 = arith.divf %85, %86 : vector<2x128xf32>
    %88 = vector.extract_strided_slice %81 {offsets = [0, 128], sizes = [2, 128], strides = [1, 1]} : vector<2x512xf32> to vector<2x128xf32>
    %89 = arith.negf %88 : vector<2x128xf32>
    %90 = math.exp %89 : vector<2x128xf32>
    %cst_26 = arith.constant 1.000000e+00 : f32
    %91 = vector.broadcast %cst_26 : f32 to vector<2x128xf32>
    %92 = arith.addf %91, %90 : vector<2x128xf32>
    %93 = arith.divf %91, %92 : vector<2x128xf32>
    %94 = vector.extract_strided_slice %81 {offsets = [0, 256], sizes = [2, 128], strides = [1, 1]} : vector<2x512xf32> to vector<2x128xf32>
    %95 = math.tanh %94 : vector<2x128xf32>
    %96 = vector.extract_strided_slice %81 {offsets = [0, 384], sizes = [2, 128], strides = [1, 1]} : vector<2x512xf32> to vector<2x128xf32>
    %97 = arith.negf %96 : vector<2x128xf32>
    %98 = math.exp %97 : vector<2x128xf32>
    %cst_27 = arith.constant 1.000000e+00 : f32
    %99 = vector.broadcast %cst_27 : f32 to vector<2x128xf32>
    %100 = arith.addf %99, %98 : vector<2x128xf32>
    %101 = arith.divf %99, %100 : vector<2x128xf32>
    %102 = arith.mulf %93, %69 : vector<2x128xf32>
    %103 = arith.mulf %87, %95 : vector<2x128xf32>
    %104 = arith.addf %102, %103 : vector<2x128xf32>
    %105 = math.tanh %104 : vector<2x128xf32>
    %106 = arith.mulf %101, %105 : vector<2x128xf32>
    %107 = arith.index_cast %c2_i32 : i32 to index
    %c0_28 = arith.constant 0 : index
    %c0_29 = arith.constant 0 : index
    %108 = vector.load %arg3[%107, %c0_28, %c0_29] : memref<8x2x128xf32, #tpu.memory_space<vmem>>, vector<1x2x128xf32>
    %109 = vector.shape_cast %108 : vector<1x2x128xf32> to vector<2x128xf32>
    %110 = vector.shape_cast %106 : vector<2x128xf32> to vector<1x2x128xf32>
    tpu.vector_store %arg3[%107, %c0_28, %c0_29], %110 {strides = array<i32>} : memref<8x2x128xf32, #tpu.memory_space<vmem>>, vector<1x2x128xf32>,
    %c3_i32 = arith.constant 3 : i32
    %111 = arith.index_cast %c3_i32 : i32 to index
    %c0_30 = arith.constant 0 : index
    %c0_31 = arith.constant 0 : index
    %112 = vector.load %arg1[%111, %c0_30, %c0_31] : memref<8x2x512xf32, #tpu.memory_space<vmem>>, vector<1x2x512xf32>
    %113 = vector.shape_cast %112 : vector<1x2x512xf32> to vector<2x512xf32>
    %114 = arith.truncf %106 : vector<2x128xf32> to vector<2x128xbf16>
    %cst_32 = arith.constant dense<0.000000e+00> : vector<2x512xf32>
    %115 = tpu.matmul %114, %3, %cst_32 {dimension_numbers = #tpu.dot_dimension_numbers<[1], [0], [0], [1], [0, 0, 1, 1], [], []>} : vector<2x128xbf16>, vector<128x512xbf16>, vector<2x512xf32> -> vector<2x512xf32>
    %116 = arith.addf %113, %115 : vector<2x512xf32>
    %117 = vector.extract_strided_slice %116 {offsets = [0, 0], sizes = [2, 128], strides = [1, 1]} : vector<2x512xf32> to vector<2x128xf32>
    %118 = arith.negf %117 : vector<2x128xf32>
    %119 = math.exp %118 : vector<2x128xf32>
    %cst_33 = arith.constant 1.000000e+00 : f32
    %120 = vector.broadcast %cst_33 : f32 to vector<2x128xf32>
    %121 = arith.addf %120, %119 : vector<2x128xf32>
    %122 = arith.divf %120, %121 : vector<2x128xf32>
    %123 = vector.extract_strided_slice %116 {offsets = [0, 128], sizes = [2, 128], strides = [1, 1]} : vector<2x512xf32> to vector<2x128xf32>
    %124 = arith.negf %123 : vector<2x128xf32>
    %125 = math.exp %124 : vector<2x128xf32>
    %cst_34 = arith.constant 1.000000e+00 : f32
    %126 = vector.broadcast %cst_34 : f32 to vector<2x128xf32>
    %127 = arith.addf %126, %125 : vector<2x128xf32>
    %128 = arith.divf %126, %127 : vector<2x128xf32>
    %129 = vector.extract_strided_slice %116 {offsets = [0, 256], sizes = [2, 128], strides = [1, 1]} : vector<2x512xf32> to vector<2x128xf32>
    %130 = math.tanh %129 : vector<2x128xf32>
    %131 = vector.extract_strided_slice %116 {offsets = [0, 384], sizes = [2, 128], strides = [1, 1]} : vector<2x512xf32> to vector<2x128xf32>
    %132 = arith.negf %131 : vector<2x128xf32>
    %133 = math.exp %132 : vector<2x128xf32>
    %cst_35 = arith.constant 1.000000e+00 : f32
    %134 = vector.broadcast %cst_35 : f32 to vector<2x128xf32>
    %135 = arith.addf %134, %133 : vector<2x128xf32>
    %136 = arith.divf %134, %135 : vector<2x128xf32>
    %137 = arith.mulf %128, %104 : vector<2x128xf32>
    %138 = arith.mulf %122, %130 : vector<2x128xf32>
    %139 = arith.addf %137, %138 : vector<2x128xf32>
    %140 = math.tanh %139 : vector<2x128xf32>
    %141 = arith.mulf %136, %140 : vector<2x128xf32>
    %142 = arith.index_cast %c3_i32 : i32 to index
    %c0_36 = arith.constant 0 : index
    %c0_37 = arith.constant 0 : index
    %143 = vector.load %arg3[%142, %c0_36, %c0_37] : memref<8x2x128xf32, #tpu.memory_space<vmem>>, vector<1x2x128xf32>
    %144 = vector.shape_cast %143 : vector<1x2x128xf32> to vector<2x128xf32>
    %145 = vector.shape_cast %141 : vector<2x128xf32> to vector<1x2x128xf32>
    tpu.vector_store %arg3[%142, %c0_36, %c0_37], %145 {strides = array<i32>} : memref<8x2x128xf32, #tpu.memory_space<vmem>>, vector<1x2x128xf32>,
    %c4_i32 = arith.constant 4 : i32
    %146 = arith.index_cast %c4_i32 : i32 to index
    %c0_38 = arith.constant 0 : index
    %c0_39 = arith.constant 0 : index
    %147 = vector.load %arg1[%146, %c0_38, %c0_39] : memref<8x2x512xf32, #tpu.memory_space<vmem>>, vector<1x2x512xf32>
    %148 = vector.shape_cast %147 : vector<1x2x512xf32> to vector<2x512xf32>
    %149 = arith.truncf %141 : vector<2x128xf32> to vector<2x128xbf16>
    %cst_40 = arith.constant dense<0.000000e+00> : vector<2x512xf32>
    %150 = tpu.matmul %149, %3, %cst_40 {dimension_numbers = #tpu.dot_dimension_numbers<[1], [0], [0], [1], [0, 0, 1, 1], [], []>} : vector<2x128xbf16>, vector<128x512xbf16>, vector<2x512xf32> -> vector<2x512xf32>
    %151 = arith.addf %148, %150 : vector<2x512xf32>
    %152 = vector.extract_strided_slice %151 {offsets = [0, 0], sizes = [2, 128], strides = [1, 1]} : vector<2x512xf32> to vector<2x128xf32>
    %153 = arith.negf %152 : vector<2x128xf32>
    %154 = math.exp %153 : vector<2x128xf32>
    %cst_41 = arith.constant 1.000000e+00 : f32
    %155 = vector.broadcast %cst_41 : f32 to vector<2x128xf32>
    %156 = arith.addf %155, %154 : vector<2x128xf32>
    %157 = arith.divf %155, %156 : vector<2x128xf32>
    %158 = vector.extract_strided_slice %151 {offsets = [0, 128], sizes = [2, 128], strides = [1, 1]} : vector<2x512xf32> to vector<2x128xf32>
    %159 = arith.negf %158 : vector<2x128xf32>
    %160 = math.exp %159 : vector<2x128xf32>
    %cst_42 = arith.constant 1.000000e+00 : f32
    %161 = vector.broadcast %cst_42 : f32 to vector<2x128xf32>
    %162 = arith.addf %161, %160 : vector<2x128xf32>
    %163 = arith.divf %161, %162 : vector<2x128xf32>
    %164 = vector.extract_strided_slice %151 {offsets = [0, 256], sizes = [2, 128], strides = [1, 1]} : vector<2x512xf32> to vector<2x128xf32>
    %165 = math.tanh %164 : vector<2x128xf32>
    %166 = vector.extract_strided_slice %151 {offsets = [0, 384], sizes = [2, 128], strides = [1, 1]} : vector<2x512xf32> to vector<2x128xf32>
    %167 = arith.negf %166 : vector<2x128xf32>
    %168 = math.exp %167 : vector<2x128xf32>
    %cst_43 = arith.constant 1.000000e+00 : f32
    %169 = vector.broadcast %cst_43 : f32 to vector<2x128xf32>
    %170 = arith.addf %169, %168 : vector<2x128xf32>
    %171 = arith.divf %169, %170 : vector<2x128xf32>
    %172 = arith.mulf %163, %139 : vector<2x128xf32>
    %173 = arith.mulf %157, %165 : vector<2x128xf32>
    %174 = arith.addf %172, %173 : vector<2x128xf32>
    %175 = math.tanh %174 : vector<2x128xf32>
    %176 = arith.mulf %171, %175 : vector<2x128xf32>
    %177 = arith.index_cast %c4_i32 : i32 to index
    %c0_44 = arith.constant 0 : index
    %c0_45 = arith.constant 0 : index
    %178 = vector.load %arg3[%177, %c0_44, %c0_45] : memref<8x2x128xf32, #tpu.memory_space<vmem>>, vector<1x2x128xf32>
    %179 = vector.shape_cast %178 : vector<1x2x128xf32> to vector<2x128xf32>
    %180 = vector.shape_cast %176 : vector<2x128xf32> to vector<1x2x128xf32>
    tpu.vector_store %arg3[%177, %c0_44, %c0_45], %180 {strides = array<i32>} : memref<8x2x128xf32, #tpu.memory_space<vmem>>, vector<1x2x128xf32>,
    %c5_i32 = arith.constant 5 : i32
    %181 = arith.index_cast %c5_i32 : i32 to index
    %c0_46 = arith.constant 0 : index
    %c0_47 = arith.constant 0 : index
    %182 = vector.load %arg1[%181, %c0_46, %c0_47] : memref<8x2x512xf32, #tpu.memory_space<vmem>>, vector<1x2x512xf32>
    %183 = vector.shape_cast %182 : vector<1x2x512xf32> to vector<2x512xf32>
    %184 = arith.truncf %176 : vector<2x128xf32> to vector<2x128xbf16>
    %cst_48 = arith.constant dense<0.000000e+00> : vector<2x512xf32>
    %185 = tpu.matmul %184, %3, %cst_48 {dimension_numbers = #tpu.dot_dimension_numbers<[1], [0], [0], [1], [0, 0, 1, 1], [], []>} : vector<2x128xbf16>, vector<128x512xbf16>, vector<2x512xf32> -> vector<2x512xf32>
    %186 = arith.addf %183, %185 : vector<2x512xf32>
    %187 = vector.extract_strided_slice %186 {offsets = [0, 0], sizes = [2, 128], strides = [1, 1]} : vector<2x512xf32> to vector<2x128xf32>
    %188 = arith.negf %187 : vector<2x128xf32>
    %189 = math.exp %188 : vector<2x128xf32>
    %cst_49 = arith.constant 1.000000e+00 : f32
    %190 = vector.broadcast %cst_49 : f32 to vector<2x128xf32>
    %191 = arith.addf %190, %189 : vector<2x128xf32>
    %192 = arith.divf %190, %191 : vector<2x128xf32>
    %193 = vector.extract_strided_slice %186 {offsets = [0, 128], sizes = [2, 128], strides = [1, 1]} : vector<2x512xf32> to vector<2x128xf32>
    %194 = arith.negf %193 : vector<2x128xf32>
    %195 = math.exp %194 : vector<2x128xf32>
    %cst_50 = arith.constant 1.000000e+00 : f32
    %196 = vector.broadcast %cst_50 : f32 to vector<2x128xf32>
    %197 = arith.addf %196, %195 : vector<2x128xf32>
    %198 = arith.divf %196, %197 : vector<2x128xf32>
    %199 = vector.extract_strided_slice %186 {offsets = [0, 256], sizes = [2, 128], strides = [1, 1]} : vector<2x512xf32> to vector<2x128xf32>
    %200 = math.tanh %199 : vector<2x128xf32>
    %201 = vector.extract_strided_slice %186 {offsets = [0, 384], sizes = [2, 128], strides = [1, 1]} : vector<2x512xf32> to vector<2x128xf32>
    %202 = arith.negf %201 : vector<2x128xf32>
    %203 = math.exp %202 : vector<2x128xf32>
    %cst_51 = arith.constant 1.000000e+00 : f32
    %204 = vector.broadcast %cst_51 : f32 to vector<2x128xf32>
    %205 = arith.addf %204, %203 : vector<2x128xf32>
    %206 = arith.divf %204, %205 : vector<2x128xf32>
    %207 = arith.mulf %198, %174 : vector<2x128xf32>
    %208 = arith.mulf %192, %200 : vector<2x128xf32>
    %209 = arith.addf %207, %208 : vector<2x128xf32>
    %210 = math.tanh %209 : vector<2x128xf32>
    %211 = arith.mulf %206, %210 : vector<2x128xf32>
    %212 = arith.index_cast %c5_i32 : i32 to index
    %c0_52 = arith.constant 0 : index
    %c0_53 = arith.constant 0 : index
    %213 = vector.load %arg3[%212, %c0_52, %c0_53] : memref<8x2x128xf32, #tpu.memory_space<vmem>>, vector<1x2x128xf32>
    %214 = vector.shape_cast %213 : vector<1x2x128xf32> to vector<2x128xf32>
    %215 = vector.shape_cast %211 : vector<2x128xf32> to vector<1x2x128xf32>
    tpu.vector_store %arg3[%212, %c0_52, %c0_53], %215 {strides = array<i32>} : memref<8x2x128xf32, #tpu.memory_space<vmem>>, vector<1x2x128xf32>,
    %c6_i32 = arith.constant 6 : i32
    %216 = arith.index_cast %c6_i32 : i32 to index
    %c0_54 = arith.constant 0 : index
    %c0_55 = arith.constant 0 : index
    %217 = vector.load %arg1[%216, %c0_54, %c0_55] : memref<8x2x512xf32, #tpu.memory_space<vmem>>, vector<1x2x512xf32>
    %218 = vector.shape_cast %217 : vector<1x2x512xf32> to vector<2x512xf32>
    %219 = arith.truncf %211 : vector<2x128xf32> to vector<2x128xbf16>
    %cst_56 = arith.constant dense<0.000000e+00> : vector<2x512xf32>
    %220 = tpu.matmul %219, %3, %cst_56 {dimension_numbers = #tpu.dot_dimension_numbers<[1], [0], [0], [1], [0, 0, 1, 1], [], []>} : vector<2x128xbf16>, vector<128x512xbf16>, vector<2x512xf32> -> vector<2x512xf32>
    %221 = arith.addf %218, %220 : vector<2x512xf32>
    %222 = vector.extract_strided_slice %221 {offsets = [0, 0], sizes = [2, 128], strides = [1, 1]} : vector<2x512xf32> to vector<2x128xf32>
    %223 = arith.negf %222 : vector<2x128xf32>
    %224 = math.exp %223 : vector<2x128xf32>
    %cst_57 = arith.constant 1.000000e+00 : f32
    %225 = vector.broadcast %cst_57 : f32 to vector<2x128xf32>
    %226 = arith.addf %225, %224 : vector<2x128xf32>
    %227 = arith.divf %225, %226 : vector<2x128xf32>
    %228 = vector.extract_strided_slice %221 {offsets = [0, 128], sizes = [2, 128], strides = [1, 1]} : vector<2x512xf32> to vector<2x128xf32>
    %229 = arith.negf %228 : vector<2x128xf32>
    %230 = math.exp %229 : vector<2x128xf32>
    %cst_58 = arith.constant 1.000000e+00 : f32
    %231 = vector.broadcast %cst_58 : f32 to vector<2x128xf32>
    %232 = arith.addf %231, %230 : vector<2x128xf32>
    %233 = arith.divf %231, %232 : vector<2x128xf32>
    %234 = vector.extract_strided_slice %221 {offsets = [0, 256], sizes = [2, 128], strides = [1, 1]} : vector<2x512xf32> to vector<2x128xf32>
    %235 = math.tanh %234 : vector<2x128xf32>
    %236 = vector.extract_strided_slice %221 {offsets = [0, 384], sizes = [2, 128], strides = [1, 1]} : vector<2x512xf32> to vector<2x128xf32>
    %237 = arith.negf %236 : vector<2x128xf32>
    %238 = math.exp %237 : vector<2x128xf32>
    %cst_59 = arith.constant 1.000000e+00 : f32
    %239 = vector.broadcast %cst_59 : f32 to vector<2x128xf32>
    %240 = arith.addf %239, %238 : vector<2x128xf32>
    %241 = arith.divf %239, %240 : vector<2x128xf32>
    %242 = arith.mulf %233, %209 : vector<2x128xf32>
    %243 = arith.mulf %227, %235 : vector<2x128xf32>
    %244 = arith.addf %242, %243 : vector<2x128xf32>
    %245 = math.tanh %244 : vector<2x128xf32>
    %246 = arith.mulf %241, %245 : vector<2x128xf32>
    %247 = arith.index_cast %c6_i32 : i32 to index
    %c0_60 = arith.constant 0 : index
    %c0_61 = arith.constant 0 : index
    %248 = vector.load %arg3[%247, %c0_60, %c0_61] : memref<8x2x128xf32, #tpu.memory_space<vmem>>, vector<1x2x128xf32>
    %249 = vector.shape_cast %248 : vector<1x2x128xf32> to vector<2x128xf32>
    %250 = vector.shape_cast %246 : vector<2x128xf32> to vector<1x2x128xf32>
    tpu.vector_store %arg3[%247, %c0_60, %c0_61], %250 {strides = array<i32>} : memref<8x2x128xf32, #tpu.memory_space<vmem>>, vector<1x2x128xf32>,
    %c7_i32 = arith.constant 7 : i32
    %251 = arith.index_cast %c7_i32 : i32 to index
    %c0_62 = arith.constant 0 : index
    %c0_63 = arith.constant 0 : index
    %252 = vector.load %arg1[%251, %c0_62, %c0_63] : memref<8x2x512xf32, #tpu.memory_space<vmem>>, vector<1x2x512xf32>
    %253 = vector.shape_cast %252 : vector<1x2x512xf32> to vector<2x512xf32>
    %254 = arith.truncf %246 : vector<2x128xf32> to vector<2x128xbf16>
    %cst_64 = arith.constant dense<0.000000e+00> : vector<2x512xf32>
    %255 = tpu.matmul %254, %3, %cst_64 {dimension_numbers = #tpu.dot_dimension_numbers<[1], [0], [0], [1], [0, 0, 1, 1], [], []>} : vector<2x128xbf16>, vector<128x512xbf16>, vector<2x512xf32> -> vector<2x512xf32>
    %256 = arith.addf %253, %255 : vector<2x512xf32>
    %257 = vector.extract_strided_slice %256 {offsets = [0, 0], sizes = [2, 128], strides = [1, 1]} : vector<2x512xf32> to vector<2x128xf32>
    %258 = arith.negf %257 : vector<2x128xf32>
    %259 = math.exp %258 : vector<2x128xf32>
    %cst_65 = arith.constant 1.000000e+00 : f32
    %260 = vector.broadcast %cst_65 : f32 to vector<2x128xf32>
    %261 = arith.addf %260, %259 : vector<2x128xf32>
    %262 = arith.divf %260, %261 : vector<2x128xf32>
    %263 = vector.extract_strided_slice %256 {offsets = [0, 128], sizes = [2, 128], strides = [1, 1]} : vector<2x512xf32> to vector<2x128xf32>
    %264 = arith.negf %263 : vector<2x128xf32>
    %265 = math.exp %264 : vector<2x128xf32>
    %cst_66 = arith.constant 1.000000e+00 : f32
    %266 = vector.broadcast %cst_66 : f32 to vector<2x128xf32>
    %267 = arith.addf %266, %265 : vector<2x128xf32>
    %268 = arith.divf %266, %267 : vector<2x128xf32>
    %269 = vector.extract_strided_slice %256 {offsets = [0, 256], sizes = [2, 128], strides = [1, 1]} : vector<2x512xf32> to vector<2x128xf32>
    %270 = math.tanh %269 : vector<2x128xf32>
    %271 = vector.extract_strided_slice %256 {offsets = [0, 384], sizes = [2, 128], strides = [1, 1]} : vector<2x512xf32> to vector<2x128xf32>
    %272 = arith.negf %271 : vector<2x128xf32>
    %273 = math.exp %272 : vector<2x128xf32>
    %cst_67 = arith.constant 1.000000e+00 : f32
    %274 = vector.broadcast %cst_67 : f32 to vector<2x128xf32>
    %275 = arith.addf %274, %273 : vector<2x128xf32>
    %276 = arith.divf %274, %275 : vector<2x128xf32>
    %277 = arith.mulf %268, %244 : vector<2x128xf32>
    %278 = arith.mulf %262, %270 : vector<2x128xf32>
    %279 = arith.addf %277, %278 : vector<2x128xf32>
    %280 = math.tanh %279 : vector<2x128xf32>
    %281 = arith.mulf %276, %280 : vector<2x128xf32>
    %282 = arith.index_cast %c7_i32 : i32 to index
    %c0_68 = arith.constant 0 : index
    %c0_69 = arith.constant 0 : index
    %283 = vector.load %arg3[%282, %c0_68, %c0_69] : memref<8x2x128xf32, #tpu.memory_space<vmem>>, vector<1x2x128xf32>
    %284 = vector.shape_cast %283 : vector<1x2x128xf32> to vector<2x128xf32>
    %285 = vector.shape_cast %281 : vector<2x128xf32> to vector<1x2x128xf32>
    tpu.vector_store %arg3[%282, %c0_68, %c0_69], %285 {strides = array<i32>} : memref<8x2x128xf32, #tpu.memory_space<vmem>>, vector<1x2x128xf32>,
    %c8_i32 = arith.constant 8 : i32
    %c0_70 = arith.constant 0 : index
    %c0_71 = arith.constant 0 : index
    %286 = vector.load %arg4[%c0_70, %c0_71] : memref<2x128xf32, #tpu.memory_space<vmem>>, vector<2x128xf32>
    tpu.vector_store %arg4[%c0_70, %c0_71], %281 {strides = array<i32>} : memref<2x128xf32, #tpu.memory_space<vmem>>, vector<2x128xf32>,
    %c0_72 = arith.constant 0 : index
    %c0_73 = arith.constant 0 : index
    %287 = vector.load %arg5[%c0_72, %c0_73] : memref<2x128xf32, #tpu.memory_space<vmem>>, vector<2x128xf32>
    tpu.vector_store %arg5[%c0_72, %c0_73], %279 {strides = array<i32>} : memref<2x128xf32, #tpu.memory_space<vmem>>, vector<2x128xf32>,
    return
  }
  func.func @transform_0(%arg0: i32) -> (i32, i32, i32) {
    %c0_i32 = arith.constant 0 : i32
    %c0_i32_0 = arith.constant 0 : i32
    %c0_i32_1 = arith.constant 0 : i32
    return %arg0, %c0_i32, %c0_i32_0 : i32, i32, i32
  }
  func.func @transform_1(%arg0: i32) -> (i32, i32) {
    %c0_i32 = arith.constant 0 : i32
    %c0_i32_0 = arith.constant 0 : i32
    %c0_i32_1 = arith.constant 0 : i32
    return %c0_i32, %c0_i32_0 : i32, i32
  }
  func.func @transform_2(%arg0: i32) -> (i32, i32, i32) {
    %c0_i32 = arith.constant 0 : i32
    %c0_i32_0 = arith.constant 0 : i32
    %c0_i32_1 = arith.constant 0 : i32
    return %arg0, %c0_i32, %c0_i32_0 : i32, i32, i32
  }
}

module attributes {stable_mosaic.version = 11 : i64} {
  func.func @_matmul_bias_kernel(%arg0: i32, %arg1: i32, %arg2: i32, %arg3: memref<24x128xbf16, #tpu.memory_space<vmem>>, %arg4: memref<128x128xbf16, #tpu.memory_space<vmem>>, %arg5: memref<1x128xf32, #tpu.memory_space<vmem>>, %arg6: memref<24x128xf32, #tpu.memory_space<vmem>>) attributes {dimension_semantics = [#tpu.dimension_semantics<parallel>, #tpu.dimension_semantics<parallel>, #tpu.dimension_semantics<arbitrary>], iteration_bounds = array<i64: 1, 1, 1>, scalar_prefetch = 0 : i64, scratch_operands = 0 : i64, tpu.core_type = #tpu.core_type<tc>, window_params = [{transform_indices = @transform_0, window_bounds = array<i64: 24, 128>}, {transform_indices = @transform_1, window_bounds = array<i64: 128, 128>}, {transform_indices = @transform_2, window_bounds = array<i64: 1, 128>}, {transform_indices = @transform_3, window_bounds = array<i64: 24, 128>}]} {
    %c0_i32 = arith.constant 0 : i32
    %0 = arith.cmpi eq, %arg2, %c0_i32 : i32
    %1 = arith.extui %0 : i1 to i32
    %c0_i32_0 = arith.constant 0 : i32
    %2 = arith.cmpi ne, %1, %c0_i32_0 : i32
    scf.if %2 {
      %cst_10 = arith.constant 0.000000e+00 : f32
      %12 = vector.broadcast %cst_10 : f32 to vector<24x128xf32>
      %c0_11 = arith.constant 0 : index
      %c0_12 = arith.constant 0 : index
      %13 = vector.load %arg6[%c0_11, %c0_12] : memref<24x128xf32, #tpu.memory_space<vmem>>, vector<24x128xf32>
      tpu.vector_store %arg6[%c0_11, %c0_12], %12 {strides = array<i32>} : memref<24x128xf32, #tpu.memory_space<vmem>>, vector<24x128xf32>,
    } else {
    }
    %c0 = arith.constant 0 : index
    %c0_1 = arith.constant 0 : index
    %3 = vector.load %arg6[%c0, %c0_1] : memref<24x128xf32, #tpu.memory_space<vmem>>, vector<24x128xf32>
    %c0_2 = arith.constant 0 : index
    %c0_3 = arith.constant 0 : index
    %4 = vector.load %arg3[%c0_2, %c0_3] : memref<24x128xbf16, #tpu.memory_space<vmem>>, vector<24x128xbf16>
    %c0_4 = arith.constant 0 : index
    %c0_5 = arith.constant 0 : index
    %5 = vector.load %arg4[%c0_4, %c0_5] : memref<128x128xbf16, #tpu.memory_space<vmem>>, vector<128x128xbf16>
    %cst = arith.constant dense<0.000000e+00> : vector<24x128xf32>
    %6 = tpu.matmul %4, %5, %cst {dimension_numbers = #tpu.dot_dimension_numbers<[1], [0], [0], [1], [0, 0, 1, 1], [], []>} : vector<24x128xbf16>, vector<128x128xbf16>, vector<24x128xf32> -> vector<24x128xf32>
    %7 = arith.addf %3, %6 : vector<24x128xf32>
    %c0_6 = arith.constant 0 : index
    %c0_7 = arith.constant 0 : index
    %8 = vector.load %arg6[%c0_6, %c0_7] : memref<24x128xf32, #tpu.memory_space<vmem>>, vector<24x128xf32>
    tpu.vector_store %arg6[%c0_6, %c0_7], %7 {strides = array<i32>} : memref<24x128xf32, #tpu.memory_space<vmem>>, vector<24x128xf32>,
    %c0_i32_8 = arith.constant 0 : i32
    %9 = arith.cmpi eq, %arg2, %c0_i32_8 : i32
    %10 = arith.extui %9 : i1 to i32
    %c0_i32_9 = arith.constant 0 : i32
    %11 = arith.cmpi ne, %10, %c0_i32_9 : i32
    scf.if %11 {
      %c0_10 = arith.constant 0 : index
      %c0_11 = arith.constant 0 : index
      %12 = vector.load %arg6[%c0_10, %c0_11] : memref<24x128xf32, #tpu.memory_space<vmem>>, vector<24x128xf32>
      %c0_12 = arith.constant 0 : index
      %c0_13 = arith.constant 0 : index
      %13 = vector.load %arg5[%c0_12, %c0_13] : memref<1x128xf32, #tpu.memory_space<vmem>>, vector<1x128xf32>
      %14 = vector.broadcast %13 : vector<1x128xf32> to vector<24x128xf32>
      %15 = arith.addf %12, %14 : vector<24x128xf32>
      %c0_14 = arith.constant 0 : index
      %c0_15 = arith.constant 0 : index
      %16 = vector.load %arg6[%c0_14, %c0_15] : memref<24x128xf32, #tpu.memory_space<vmem>>, vector<24x128xf32>
      tpu.vector_store %arg6[%c0_14, %c0_15], %15 {strides = array<i32>} : memref<24x128xf32, #tpu.memory_space<vmem>>, vector<24x128xf32>,
    } else {
    }
    return
  }
  func.func @transform_0(%arg0: i32, %arg1: i32, %arg2: i32) -> (i32, i32) {
    %c0_i32 = arith.constant 0 : i32
    return %arg0, %arg2 : i32, i32
  }
  func.func @transform_1(%arg0: i32, %arg1: i32, %arg2: i32) -> (i32, i32) {
    %c0_i32 = arith.constant 0 : i32
    return %arg2, %arg1 : i32, i32
  }
  func.func @transform_2(%arg0: i32, %arg1: i32, %arg2: i32) -> (i32, i32) {
    %c0_i32 = arith.constant 0 : i32
    %c0_i32_0 = arith.constant 0 : i32
    return %c0_i32, %arg1 : i32, i32
  }
  func.func @transform_3(%arg0: i32, %arg1: i32, %arg2: i32) -> (i32, i32) {
    %c0_i32 = arith.constant 0 : i32
    return %arg0, %arg1 : i32, i32
  }
}

</mosaic_0001>

<bundles_post_ra>
// kernel: forward.5
= control target key start
LH: loop header
LB: loop body
LE: loop exit
PB: predicated region body
PF: predicated region fallthrough
CT: control target
= control target key end

     0   :  { %s910_s12 = smov 0   ;;  %s912_s13 = smov 0   ;;  %s1032_s0 = inlined_call_operand.vmem [shape: bf16[32,128], index: 0, kind: input, shape index: {}]   ;;  %s1033_s1 = inlined_call_operand.vmem [shape: bf16[128,512], index: 1, kind: input, shape index: {}]   ;;  %s1034_s2 = inlined_call_operand.vmem [shape: f32[1,512], index: 2, kind: input, shape index: {}]   ;;  %s1035_s3 = inlined_call_operand.vmem [shape: f32[32,512], index: 3, kind: output, shape index: {}]  }
   0x1   :  { %s914_s14 = smov 0   ;;  %s916_s15 = smov 0  }
   0x2   :  { %s918_s16 = smov 0  }
   0x3 LB: > { %s28_s17 = sadd.s32 1, %s883_s15  ;;  %s728_s18 = sadd.s32 4294967295, %s887_s16   ;;  %s887_s16 = sphi %s918_s16, %s13_s16   ;;  %s883_s15 = sphi %s916_s15, %s1040_s15   ;;  %s879_s14 = sphi %s914_s14, %s1039_s14   ;;  %s875_s13 = sphi %s912_s13, %s1038_s13   ;;  %s871_s12 = sphi %s910_s12, %s1037_s12  }
   0x4   : > { %p30_p0 = scmp.ge.s32.totalorder %s28_s17, 2  ;;  %p76_p1 = scmp.ne.s32.totalorder %s875_s13, %s871_s12 }
   0x5   : > { %p77_p2 = scmp.eq.s32.totalorder %s887_s16, 0  ;;  %p134_p4 = scmp.eq.s32.totalorder %s728_s18, 1 }
   0x6   : > { %s1042_s17 = smov (%p30_p0, %s28_s17), 0  ;;  %s69_s20 = sadd.s32 1, %s875_s13 }
   0x7   : > { %p78_p3 = por %p77_p2, %p76_p1  ;;  %s65_s19 = ssub.s32 %s883_s15, %s1042_s17 }
   0x8   : > { %p67_p5 = scmp.eq.s32.totalorder %s65_s19, 0  ;;  %p945_p6 = por %p134_p4, %p76_p1 }
   0x9   : > { %p732_p7 = scmp.ge.s32.totalorder %s887_s16, 2 }
   0xa   : > { %s950_s22 = scalar_select %p67_p5, %s875_s13, %s69_s20  }
   0xb   : > { %168 = sbr.rel (%p732_p7) target bundleno = 30 (0x1e), region = 20 }
  0x12   : > { %171 = sbr.rel (!%p78_p3) target bundleno = 30 (0x1e), region = 24  ;;  %s173_s23 = sand.u32 (%p78_p3), 1, %s875_s13  }
  0x13   : > { %s763_s24 = sshll.u32 (%p78_p3), %s883_s15, 3  ;;  %s733_s25 = sshll.u32 (%p78_p3), %s173_s23, 7 }
  0x14   : > { %s958_s28 = scalar_lea.vmem (%p78_p3), %s1033_s1, %s763_s24  ;;  %s175_s29 = scalar_lea.vmem (%p78_p3), [#allocation2], %s733_s25 }
  0x15   : > { %v239_v0 = vld [vmem:[%s958_s28] sm:$0xff] (%p78_p3)  ;;  %v241_v1 = vld [vmem:[%s958_s28 + $0x10] sm:$0xff] (%p78_p3) }
  0x16   : > { %v243_v2 = vld [vmem:[%s958_s28 + $0x20] sm:$0xff] (%p78_p3)  ;;  %240 = vst [vmem:[%s175_s29] sm:$0xff] (%p78_p3), %v239_v0  ;;  %242 = vst [vmem:[%s175_s29 + $0x8] sm:$0xff] (%p78_p3), %v241_v1  ;;  %v245_v3 = vld [vmem:[%s958_s28 + $0x30] sm:$0xff] (%p78_p3) }
  0x17   : > { %244 = vst [vmem:[%s175_s29 + $0x10] sm:$0xff] (%p78_p3), %v243_v2  ;;  %v247_v4 = vld [vmem:[%s958_s28 + $0x40] sm:$0xff] (%p78_p3)  ;;  %v249_v5 = vld [vmem:[%s958_s28 + $0x50] sm:$0xff] (%p78_p3)  ;;  %246 = vst [vmem:[%s175_s29 + $0x18] sm:$0xff] (%p78_p3), %v245_v3 }
  0x18   : > { %248 = vst [vmem:[%s175_s29 + $0x20] sm:$0xff] (%p78_p3), %v247_v4  ;;  %250 = vst [vmem:[%s175_s29 + $0x28] sm:$0xff] (%p78_p3), %v249_v5  ;;  %v251_v6 = vld [vmem:[%s958_s28 + $0x60] sm:$0xff] (%p78_p3)  ;;  %v253_v7 = vld [vmem:[%s958_s28 + $0x70] sm:$0xff] (%p78_p3) }
  0x19   : > { %v255_v8 = vld [vmem:[%s958_s28 + $0x80] sm:$0xff]  ;;  %252 = vst [vmem:[%s175_s29 + $0x30] sm:$0xff] %v251_v6  ;;  %254 = vst [vmem:[%s175_s29 + $0x38] sm:$0xff] %v253_v7  ;;  %v257_v9 = vld [vmem:[%s958_s28 + $0x90] sm:$0xff] }
  0x1a   : > { %256 = vst [vmem:[%s175_s29 + $0x40] sm:$0xff] %v255_v8  ;;  %v259_v10 = vld [vmem:[%s958_s28 + $0xa0] sm:$0xff]  ;;  %v261_v11 = vld [vmem:[%s958_s28 + $0xb0] sm:$0xff]  ;;  %258 = vst [vmem:[%s175_s29 + $0x48] sm:$0xff] %v257_v9 }
  0x1b   : > { %260 = vst [vmem:[%s175_s29 + $0x50] sm:$0xff] %v259_v10  ;;  %262 = vst [vmem:[%s175_s29 + $0x58] sm:$0xff] %v261_v11  ;;  %v263_v12 = vld [vmem:[%s958_s28 + $0xc0] sm:$0xff]  ;;  %v265_v13 = vld [vmem:[%s958_s28 + $0xd0] sm:$0xff] }
  0x1c   : > { %v267_v14 = vld [vmem:[%s958_s28 + $0xe0] sm:$0xff]  ;;  %264 = vst [vmem:[%s175_s29 + $0x60] sm:$0xff] %v263_v12  ;;  %266 = vst [vmem:[%s175_s29 + $0x68] sm:$0xff] %v265_v13  ;;  %v269_v15 = vld [vmem:[%s958_s28 + $0xf0] sm:$0xff] }
  0x1d   : > { %268 = vst [vmem:[%s175_s29 + $0x70] sm:$0xff] %v267_v14  ;;  %270 = vst [vmem:[%s175_s29 + $0x78] sm:$0xff] %v269_v15 }
  0x1e PF: > { %p736_p8 = scmp.ge.s32.totalorder %s887_s16, 1  ;;  %p283_p9 = scmp.lt.s32.totalorder %s887_s16, 3 }
  0x20   : > { %p284_p10 = pnand %p736_p8, %p283_p9 }
  0x21   : > { %s290_s30 = sand.u32 (!%p284_p10), 1, %s871_s12   ;;  %v889_v16 = vmov (!%p284_p10), 0   ;;  %v847_v33 = vld [vmem:[%s1032_s0] sm:$0xff] (!%p284_p10)   ;;  %v848_v34 = vld [vmem:[%s1032_s0 + $0x8] sm:$0xff] (!%p284_p10)   ;;  %s739_s10 = sshll.u32 (!%p284_p10), %s879_s14, 1  ;;  %v557_v35 = vlaneseq (!%p284_p10) }
  0x22   : > { %287 = sbr.rel (%p284_p10) target bundleno = 296 (0x128), region = 66  ;;  %s737_s4 = sshll.u32 (!%p284_p10), %s290_s30, 7  ;;  %507 = vmatprep.mubr.bf16.mxu0 (!%p284_p10), %v889_v16  ;;  %517 = vmatprep.mubr.bf16.mxu1 (!%p284_p10), %v889_v16 }
  0x23   : > { %s981_s5 = scalar_lea.vmem (!%p284_p10), [#allocation2], %s737_s4  ;;  %p336_p11 = scmp.lt.s32.totalorder (!%p284_p10), %s739_s10, 3  ;;  %v558_v36 = vshrl.u32 (!%p284_p10), %v557_v35, 7 }
  0x24   : > { %v823_v17 = vld [vmem:[%s981_s5 + $0x4] ss:$8 sps:$4 sm:$0xff] (!%p284_p10)   ;;  %v825_v18 = vld [vmem:[%s981_s5] ss:$8 sps:$4 sm:$0xff] (!%p284_p10)   ;;  %v826_v19 = vld [vmem:[%s981_s5 + $0x14] ss:$8 sps:$4 sm:$0xff] (!%p284_p10)  }
  0x25   : > { %475 = vmatprep.subr.bf16.mxu0 (!%p284_p10), %v823_v17  ;;  %765 = vmatprep.subr.bf16.mxu1 (!%p284_p10), %v823_v17  ;;  %v828_v20 = vld [vmem:[%s981_s5 + $0x10] ss:$8 sps:$4 sm:$0xff] (!%p284_p10)   ;;  %v829_v21 = vld [vmem:[%s981_s5 + $0x24] ss:$8 sps:$4 sm:$0xff] (!%p284_p10)   ;;  %v831_v22 = vld [vmem:[%s981_s5 + $0x20] ss:$8 sps:$4 sm:$0xff] (!%p284_p10)  }
  0x26   : > { %476 = vmatpush1.bf16.msra.mxu0 (!%p284_p10), %v825_v18  ;;  %773 = vmatpush1.bf16.msra.mxu1 (!%p284_p10), %v825_v18  ;;  %v832_v23 = vld [vmem:[%s981_s5 + $0x34] ss:$8 sps:$4 sm:$0xff] (!%p284_p10)   ;;  %v834_v24 = vld [vmem:[%s981_s5 + $0x30] ss:$8 sps:$4 sm:$0xff] (!%p284_p10)   ;;  %v835_v25 = vld [vmem:[%s981_s5 + $0x44] ss:$8 sps:$4 sm:$0xff] (!%p284_p10)  }
  0x27   : > { %477 = vmatprep.subr.bf16.mxu0 (!%p284_p10), %v826_v19  ;;  %766 = vmatprep.subr.bf16.mxu1 (!%p284_p10), %v826_v19  ;;  %v837_v26 = vld [vmem:[%s981_s5 + $0x40] ss:$8 sps:$4 sm:$0xff] (!%p284_p10)   ;;  %v838_v27 = vld [vmem:[%s981_s5 + $0x54] ss:$8 sps:$4 sm:$0xff] (!%p284_p10)   ;;  %v840_v28 = vld [vmem:[%s981_s5 + $0x50] ss:$8 sps:$4 sm:$0xff] (!%p284_p10)  }
  0x28   : > { %v841_v29 = vld [vmem:[%s981_s5 + $0x64] ss:$8 sps:$4 sm:$0xff] (!%p284_p10)   ;;  %v843_v30 = vld [vmem:[%s981_s5 + $0x60] ss:$8 sps:$4 sm:$0xff] (!%p284_p10)   ;;  %v844_v31 = vld [vmem:[%s981_s5 + $0x74] ss:$8 sps:$4 sm:$0xff] (!%p284_p10)  }
  0x29   : > { %v846_v32 = vld [vmem:[%s981_s5 + $0x70] ss:$8 sps:$4 sm:$0xff]   ;;  %s1044_s10 = smov (!%p336_p11, %s739_s10), 3  ;;  %v559_v37 = vsub.s32 0, %v558_v36  ;;  %v563_v39 = vsub.s32 1, %v558_v36  ;;  %s738_s20 = sshll.u32 %s290_s30, 6 }
  0x2a   : > { %478 = vmatpush1.bf16.msra.mxu0 %v828_v20  ;;  %774 = vmatpush1.bf16.msra.mxu1 %v828_v20  ;;  %s338_s19 = scalar_lea.vmem %s1034_s2, %s1044_s10  ;;  %s323_s23 = scalar_lea.vmem [#allocation3], %s738_s20 }
  0x2b   : > { %479 = vmatprep.subr.bf16.mxu0 %v829_v21  ;;  %767 = vmatprep.subr.bf16.mxu1 %v829_v21  ;;  %v555_v38 = vld [vmem:[%s338_s19] sm:$0x3]  ;;  %s764_s12 = sshll.u32 (%p945_p6), %s879_s14, 4 }
  0x2c   : > { %v560_v40 = vrot.slane %v555_v38, %v559_v37  ;;  %v564_v43 = vrot.slane %v555_v38, %v563_v39  ;;  %s595_s26 = scalar_lea.vmem (%p945_p6), %s1035_s3, %s764_s12 }
  0x2e   : > { %480 = vmatpush1.bf16.msra.mxu0 %v831_v22  ;;  %775 = vmatpush1.bf16.msra.mxu1 %v831_v22 }
  0x2f   : > { %481 = vmatprep.subr.bf16.mxu0 %v832_v23  ;;  %768 = vmatprep.subr.bf16.mxu1 %v832_v23 }
  0x32   : > { %482 = vmatpush1.bf16.msra.mxu0 %v834_v24  ;;  %776 = vmatpush1.bf16.msra.mxu1 %v834_v24 }
  0x33   : > { %483 = vmatprep.subr.bf16.mxu0 %v835_v25  ;;  %769 = vmatprep.subr.bf16.mxu1 %v835_v25 }
  0x36   : > { %484 = vmatpush1.bf16.msra.mxu0 %v837_v26  ;;  %777 = vmatpush1.bf16.msra.mxu1 %v837_v26 }
  0x37   : > { %485 = vmatprep.subr.bf16.mxu0 %v838_v27  ;;  %770 = vmatprep.subr.bf16.mxu1 %v838_v27 }
  0x3a   : > { %486 = vmatpush1.bf16.msra.mxu0 %v840_v28  ;;  %778 = vmatpush1.bf16.msra.mxu1 %v840_v28 }
  0x3b   : > { %487 = vmatprep.subr.bf16.mxu0 %v841_v29  ;;  %771 = vmatprep.subr.bf16.mxu1 %v841_v29 }
  0x3e   : > { %488 = vmatpush1.bf16.msra.mxu0 %v843_v30  ;;  %779 = vmatpush1.bf16.msra.mxu1 %v843_v30 }
  0x3f   : > { %489 = vmatprep.subr.bf16.mxu0 %v844_v31  ;;  %772 = vmatprep.subr.bf16.mxu1 %v844_v31 }
  0x42   : > { %490 = vmatpush1.bf16.msra.mxu0 %v846_v32  ;;  %780 = vmatpush1.bf16.msra.mxu1 %v846_v32 }
  0x45   : > { %508 = vmatmul.mubr.bf16.vlgmr.msra.gmra.mrb[0].mxu0 %v847_v33  ;;  %518 = vmatmul.mubr.bf16.vlgmr.msra.gmra.mrb[0].mxu1 %v848_v34 }
 0x118   : > { %v509_v41 = vpop.f32.mrb[0].mxu0  ;;  %v519_v42 = vpop.f32.mrb[0].mxu1  ;;  %589 = sbr.rel (!%p945_p6) target bundleno = 296 (0x128), region = 82 }
 0x119   : > { %v511_v44 = vpop.f32.mrb[1].mxu0  ;;  %v521_v45 = vpop.f32.mrb[1].mxu1  ;;  %v567_v48 = vadd.f32 %v560_v40, %v509_v41  ;;  %v571_v49 = vadd.f32 %v560_v40, %v519_v42 }
 0x11a   : > { %v513_v46 = vpop.f32.mrb[2].mxu0  ;;  %v523_v47 = vpop.f32.mrb[2].mxu1  ;;  %v568_v52 = vadd.f32 %v564_v43, %v511_v44  ;;  %v572_v53 = vadd.f32 %v564_v43, %v521_v45 }
 0x11b   : > { %v515_v50 = vpop.f32.mrb[3].mxu0  ;;  %v525_v51 = vpop.f32.mrb[3].mxu1  ;;  %575 = vst [vmem:[%s323_s23] sm:$0xff] %v567_v48  ;;  %579 = vst [vmem:[%s323_s23 + $0x20] sm:$0xff] %v571_v49  ;;  %v569_v54 = vadd.f32 %v560_v40, %v513_v46  ;;  %v573_v55 = vadd.f32 %v560_v40, %v523_v47 }
 0x11c   : > { %576 = vst [vmem:[%s323_s23 + $0x8] sm:$0xff] %v568_v52  ;;  %580 = vst [vmem:[%s323_s23 + $0x28] sm:$0xff] %v572_v53  ;;  %v570_v56 = vadd.f32 %v564_v43, %v515_v50  ;;  %v574_v57 = vadd.f32 %v564_v43, %v525_v51 }
 0x11d   : > { %577 = vst [vmem:[%s323_s23 + $0x10] sm:$0xff] %v569_v54  ;;  %581 = vst [vmem:[%s323_s23 + $0x30] sm:$0xff] %v573_v55 }
 0x11e   : > { %578 = vst [vmem:[%s323_s23 + $0x18] sm:$0xff] %v570_v56  ;;  %582 = vst [vmem:[%s323_s23 + $0x38] sm:$0xff] %v574_v57 }
 0x122   : > { %v608_v58 = vld [vmem:[%s323_s23] sm:$0xff] }
 0x123   : > { %v610_v59 = vld [vmem:[%s323_s23 + $0x8] sm:$0xff]  ;;  %v616_v62 = vld [vmem:[%s323_s23 + $0x20] sm:$0xff]  ;;  %609 = vst [vmem:[%s595_s26] sm:$0xff] %v608_v58 }
 0x124   : > { %v612_v60 = vld [vmem:[%s323_s23 + $0x10] sm:$0xff]  ;;  %v618_v63 = vld [vmem:[%s323_s23 + $0x28] sm:$0xff]  ;;  %611 = vst [vmem:[%s595_s26 + $0x8] sm:$0xff] %v610_v59  ;;  %617 = vst [vmem:[%s595_s26 + $0x40] sm:$0xff] %v616_v62 }
 0x125   : > { %v614_v61 = vld [vmem:[%s323_s23 + $0x18] sm:$0xff]  ;;  %613 = vst [vmem:[%s595_s26 + $0x20] sm:$0xff] %v612_v60  ;;  %619 = vst [vmem:[%s595_s26 + $0x48] sm:$0xff] %v618_v63  ;;  %v620_v0 = vld [vmem:[%s323_s23 + $0x30] sm:$0xff] }
 0x126   : > { %615 = vst [vmem:[%s595_s26 + $0x28] sm:$0xff] %v614_v61  ;;  %v622_v1 = vld [vmem:[%s323_s23 + $0x38] sm:$0xff]  ;;  %621 = vst [vmem:[%s595_s26 + $0x60] sm:$0xff] %v620_v0 }
 0x127   : > { %623 = vst [vmem:[%s595_s26 + $0x68] sm:$0xff] %v622_v1 }
 0x128 PF: > { %s13_s16 = sadd.s32 1, %s887_s16   ;;  %s1037_s12 = smov %s875_s13 }
 0x129   : > { %p10_p12 = scmp.ge.s32.totalorder %s13_s16, 4   ;;  %s1038_s13 = smov %s950_s22 }
 0x12a   : > { %s1039_s14 = smov %s883_s15  ;;  %s1040_s15 = smov %s1042_s17 }
 0x12b   :  { %12 = sbr.rel (!%p10_p12) target bundleno = 3 (0x3), region = 142 }

// kernel: forward.4
= control target key start
LH: loop header
LB: loop body
LE: loop exit
PB: predicated region body
PF: predicated region fallthrough
CT: control target
= control target key end

     0   :  { %s1258_s18 = smov 0   ;;  %s1260_s19 = smov 0   ;;  %s1442_s0 = inlined_call_operand.vmem [shape: bf16[2,256,36], index: 0, kind: input, shape index: {}]   ;;  %s1443_s1 = inlined_call_operand.vmem [shape: bf16[36,128], index: 1, kind: input, shape index: {}]   ;;  %s1444_s2 = inlined_call_operand.vmem [shape: f32[1,128], index: 2, kind: input, shape index: {}]   ;;  %s1445_s3 = inlined_call_operand.vmem [shape: bf16[128,128], index: 3, kind: input, shape index: {}]   ;;  %s1446_s4 = inlined_call_operand.vmem [shape: f32[1,128], index: 4, kind: input, shape index: {}]   ;;  %s1447_s5 = inlined_call_operand.vmem [shape: f32[2,128], index: 5, kind: output, shape index: {}]  }
   0x1   :  { %s1262_s20 = smov 0  }
   0x2 LB: > { %s993_s21 = sadd.s32 4294967295, %s1223_s20   ;;  %s1275_s22 = sadd.s32 1, %s1223_s20   ;;  %s1223_s20 = sphi %s1262_s20, %s1450_s20   ;;  %s1219_s19 = sphi %s1260_s19, %s1449_s19   ;;  %s1215_s18 = sphi %s1258_s18, %s1448_s18  }
   0x3   : > { %s19_s23 = ssub.s32 %s1223_s20, %s1275_s22  ;;  %s22_s24 = sadd.s32 1, %s1219_s19 }
   0x4   : > { %p20_p0 = scmp.eq.s32.totalorder %s19_s23, 0  ;;  %p29_p1 = scmp.ne.s32.totalorder %s1219_s19, %s1215_s18 }
   0x5   : > { %p30_p2 = scmp.eq.s32.totalorder %s1223_s20, 0  ;;  %p995_p4 = scmp.ge.s32.totalorder %s1223_s20, 2 }
   0x6   : > { %s1284_s25 = scalar_select %p20_p0, %s1219_s19, %s22_s24  }
   0x7   : > { %p31_p3 = por %p30_p2, %p29_p1  ;;  %172 = sbr.rel (%p995_p4) target bundleno = 26 (0x1a), region = 32 }
   0xe   : > { %175 = sbr.rel (!%p31_p3) target bundleno = 26 (0x1a), region = 36  ;;  %s177_s26 = sand.u32 (%p31_p3), 1, %s1219_s19  }
   0xf   : > { %s1050_s27 = sshll.u32 (%p31_p3), %s1223_s20, 6  ;;  %s996_s28 = sshll.u32 (%p31_p3), %s177_s26, 7 }
  0x10   : > { %s1292_s6 = scalar_lea.vmem (%p31_p3), %s1442_s0, %s1050_s27  ;;  %s179_s7 = scalar_lea.vmem (%p31_p3), [#allocation3], %s996_s28 }
  0x11   : > { %v198_v0 = vld [vmem:[%s1292_s6] sm:$0xff] (%p31_p3)   ;;  %v202_v1 = vld [vmem:[%s1292_s6 + $0x8] sm:$0xff] (%p31_p3)   ;;  %v206_v2 = vld [vmem:[%s1292_s6 + $0x10] sm:$0xff] (%p31_p3)  }
  0x12   : > { %199 = vst [vmem:[%s179_s7] sm:$0xff] (%p31_p3), %v198_v0   ;;  %203 = vst [vmem:[%s179_s7 + $0x8] sm:$0xff] (%p31_p3), %v202_v1   ;;  %v210_v3 = vld [vmem:[%s1292_s6 + $0x18] sm:$0xff] (%p31_p3)   ;;  %v214_v4 = vld [vmem:[%s1292_s6 + $0x20] sm:$0xff] (%p31_p3)  }
  0x13   : > { %207 = vst [vmem:[%s179_s7 + $0x10] sm:$0xff] (%p31_p3), %v206_v2   ;;  %v218_v5 = vld [vmem:[%s1292_s6 + $0x28] sm:$0xff] (%p31_p3)   ;;  %211 = vst [vmem:[%s179_s7 + $0x18] sm:$0xff] (%p31_p3), %v210_v3   ;;  %v222_v6 = vld [vmem:[%s1292_s6 + $0x30] sm:$0xff] (%p31_p3)  }
  0x14   : > { %215 = vst [vmem:[%s179_s7 + $0x20] sm:$0xff] (%p31_p3), %v214_v4   ;;  %219 = vst [vmem:[%s179_s7 + $0x28] sm:$0xff] (%p31_p3), %v218_v5   ;;  %v226_v7 = vld [vmem:[%s1292_s6 + $0x38] sm:$0xff] (%p31_p3)   ;;  %v230_v8 = vld [vmem:[%s1292_s6 + $0x80] sm:$0xff] (%p31_p3)  }
  0x15   : > { %223 = vst [vmem:[%s179_s7 + $0x30] sm:$0xff] %v222_v6   ;;  %227 = vst [vmem:[%s179_s7 + $0x38] sm:$0xff] %v226_v7   ;;  %v234_v9 = vld [vmem:[%s1292_s6 + $0x88] sm:$0xff]   ;;  %v238_v10 = vld [vmem:[%s1292_s6 + $0x90] sm:$0xff]  }
  0x16   : > { %231 = vst [vmem:[%s179_s7 + $0x40] sm:$0xff] %v230_v8   ;;  %v242_v11 = vld [vmem:[%s1292_s6 + $0x98] sm:$0xff]   ;;  %235 = vst [vmem:[%s179_s7 + $0x48] sm:$0xff] %v234_v9   ;;  %v246_v12 = vld [vmem:[%s1292_s6 + $0xa0] sm:$0xff]  }
  0x17   : > { %239 = vst [vmem:[%s179_s7 + $0x50] sm:$0xff] %v238_v10   ;;  %243 = vst [vmem:[%s179_s7 + $0x58] sm:$0xff] %v242_v11   ;;  %v250_v13 = vld [vmem:[%s1292_s6 + $0xa8] sm:$0xff]   ;;  %v254_v14 = vld [vmem:[%s1292_s6 + $0xb0] sm:$0xff]  }
  0x18   : > { %247 = vst [vmem:[%s179_s7 + $0x60] sm:$0xff] %v246_v12   ;;  %251 = vst [vmem:[%s179_s7 + $0x68] sm:$0xff] %v250_v13   ;;  %v258_v15 = vld [vmem:[%s1292_s6 + $0xb8] sm:$0xff]  }
  0x19   : > { %255 = vst [vmem:[%s179_s7 + $0x70] sm:$0xff] %v254_v14   ;;  %259 = vst [vmem:[%s179_s7 + $0x78] sm:$0xff] %v258_v15  }
  0x1a PF: > { %p999_p5 = scmp.ge.s32.totalorder %s1223_s20, 1  ;;  %p347_p6 = scmp.lt.s32.totalorder %s1223_s20, 3 }
  0x1c   : > { %p348_p7 = pnand %p999_p5, %p347_p6 }
  0x1d   : > { %s354_s8 = sand.u32 (!%p348_p7), 1, %s1215_s18   ;;  %p1001_p8 = scmp.ne.s32.totalorder (!%p348_p7), %s993_s21, 0 }
  0x1e   : > { %351 = sbr.rel (%p348_p7) target bundleno = 598 (0x256), region = 77  ;;  %s1000_s9 = sshll.u32 (!%p348_p7), %s354_s8, 7 }
  0x1f   : > { %s1313_s10 = scalar_lea.vmem (!%p348_p7), [#allocation3], %s1000_s9 }
  0x25   : > { %381 = sbr.rel (%p1001_p8) target bundleno = 44 (0x2c), region = 85  ;;  %v1225_v16 = vmov (!%p1001_p8), 0.0  }
  0x26   : > { %382 = vst [vmem:[#allocation2] sm:$0x3] (!%p1001_p8), %v1225_v16 }
  0x2c PF: > { %v1172_v17 = vld [vmem:[%s1443_s1] sm:$0xff]   ;;  %v1173_v18 = vld [vmem:[%s1443_s1 + $0x8] sm:$0xff]   ;;  %vm522_vm0 = vcmask 293888   ;;  %v1174_v19 = vld [vmem:[%s1443_s1 + $0x10] ss:$0 sps:$4 sm:$0x33]  }
  0x2d   : > { %1079 = vmatprep.subr.bf16.mxu0 %v1172_v17  ;;  %1137 = vmatprep.subr.bf16.mxu1 %v1172_v17  ;;  %v1175_v20 = vld [vmem:[%s1313_s10] sm:$0xff]   ;;  %vm571_vm1 = vcmask 1041408   ;;  %v1177_v23 = vld [vmem:[%s1313_s10 + $0x8] sm:$0xff]   ;;  %v1179_v25 = vld [vmem:[%s1313_s10 + $0x10] sm:$0xff]   ;;  %vm813_vm2 = vcmask 1041409   ;;  %p1038_p9 = scmp.ne.s32.totalorder %s993_s21, 1 }
  0x2e   : > { %1080 = vmatpush3.bf16.msra.mxu0 %v1172_v17  ;;  %1140 = vmatpush3.bf16.msra.mxu1 %v1172_v17  ;;  %v1176_v21 = vld [vmem:[%s1313_s10 + $0x40] sm:$0xff]   ;;  %v573_v22 = vsel %vm571_vm1, %v1174_v19, 0  ;;  %v1178_v24 = vld [vmem:[%s1313_s10 + $0x48] sm:$0xff]   ;;  %v1180_v26 = vld [vmem:[%s1313_s10 + $0x50] sm:$0xff]   ;;  %vm1227_vm3 = vmmov (!%p1038_p9), 0  }
  0x2f   : > { %1081 = vmatprep.subr.bf16.mxu0 %v1173_v18  ;;  %1138 = vmatprep.subr.bf16.mxu1 %v1173_v18  ;;  %v1181_v27 = vld [vmem:[%s1313_s10 + $0x18] sm:$0xff]   ;;  %v1183_v29 = vld [vmem:[%s1313_s10 + $0x20] sm:$0xff]   ;;  %v1185_v31 = vld [vmem:[%s1313_s10 + $0x28] sm:$0xff]  }
  0x30   : > { %1085 = vmatprep.mubr.msk.bf16.mxu0 %vm522_vm0, %v1175_v20  ;;  %1101 = vmatprep.mubr.msk.bf16.mxu1 %vm522_vm0, %v1176_v21  ;;  %v1182_v28 = vld [vmem:[%s1313_s10 + $0x58] sm:$0xff]   ;;  %v1184_v30 = vld [vmem:[%s1313_s10 + $0x60] sm:$0xff]   ;;  %v1186_v32 = vld [vmem:[%s1313_s10 + $0x68] sm:$0xff]  }
  0x31   : > { %v1187_v33 = vld [vmem:[%s1313_s10 + $0x30] sm:$0xff]   ;;  %v1189_v35 = vld [vmem:[%s1313_s10 + $0x38] sm:$0xff]  }
  0x32   : > { %1082 = vmatpush3.bf16.msra.mxu0 %v1173_v18  ;;  %1141 = vmatpush3.bf16.msra.mxu1 %v1173_v18  ;;  %v1188_v34 = vld [vmem:[%s1313_s10 + $0x70] sm:$0xff]   ;;  %v1190_v36 = vld [vmem:[%s1313_s10 + $0x78] sm:$0xff]  }
  0x33   : > { %1143 = vmatprep.subr.msk.bf16.mxu0 %vm571_vm1, %v1174_v19  ;;  %1144 = vmatprep.subr.msk.bf16.mxu1 %vm571_vm1, %v1174_v19  ;;  %v1364_v37 = vld [vmem:[%s1444_s2] ss:$0 sm:$0xff] }
  0x36   : > { %1084 = vmatpush3.bf16.msra.mxu0 %v573_v22  ;;  %1142 = vmatpush3.bf16.msra.mxu1 %v573_v22 }
  0x39   : > { %1086 = vmatmul.mubr.msk.bf16.vlgmr.msra.gmra.mrb[0].mxu0 %vm522_vm0, %v1177_v23  ;;  %1102 = vmatmul.mubr.msk.bf16.vlgmr.msra.gmra.mrb[0].mxu1 %vm522_vm0, %v1178_v24 }
  0x3a   : > { %1089 = vmatprep.mubr.msk.bf16.mxu0 %vm522_vm0, %v1179_v25  ;;  %1105 = vmatprep.mubr.msk.bf16.mxu1 %vm522_vm0, %v1180_v26 }
  0x41   : > { %1090 = vmatmul.mubr.msk.bf16.gmra.mrb[4].mxu0 %vm522_vm0, %v1181_v27  ;;  %1106 = vmatmul.mubr.msk.bf16.gmra.mrb[4].mxu1 %vm522_vm0, %v1182_v28 }
  0x42   : > { %1093 = vmatprep.mubr.msk.bf16.mxu0 %vm522_vm0, %v1183_v29  ;;  %1109 = vmatprep.mubr.msk.bf16.mxu1 %vm522_vm0, %v1184_v30 }
  0x49   : > { %1094 = vmatmul.mubr.msk.bf16.gmra.mrb[8].mxu0 %vm522_vm0, %v1185_v31  ;;  %1110 = vmatmul.mubr.msk.bf16.gmra.mrb[8].mxu1 %vm522_vm0, %v1186_v32 }
  0x4a   : > { %1097 = vmatprep.mubr.msk.bf16.mxu0 %vm522_vm0, %v1187_v33  ;;  %1113 = vmatprep.mubr.msk.bf16.mxu1 %vm522_vm0, %v1188_v34 }
  0x51   : > { %1098 = vmatmul.mubr.msk.bf16.gmra.mrb[12].mxu0 %vm522_vm0, %v1189_v35  ;;  %1114 = vmatmul.mubr.msk.bf16.gmra.mrb[12].mxu1 %vm522_vm0, %v1190_v36 }
 0x10c   : > { %v1087_v38 = vpop.f32.mrb[0].mxu0  ;;  %v1103_v39 = vpop.f32.mrb[0].mxu1 }
 0x10d   : > { %v609_v40 = vpop.f32.mrb[1].mxu0  ;;  %v673_v41 = vpop.f32.mrb[1].mxu1  ;;  %v618_v48 = vadd.f32 %v1087_v38, %v1364_v37  ;;  %v682_v49 = vadd.f32 %v1103_v39, %v1364_v37 }
 0x10e   : > { %v610_v42 = vadd.f32 %v1364_v37, %v609_v40  ;;  %v674_v43 = vadd.f32 %v1364_v37, %v673_v41  ;;  %v1088_v44 = vpop.f32.mrb[2].mxu0  ;;  %v1104_v45 = vpop.f32.mrb[2].mxu1 }
 0x10f   : > { %v612_v46 = vpop.f32.mrb[3].mxu0  ;;  %v676_v47 = vpop.f32.mrb[3].mxu1  ;;  %v621_v52 = vadd.f32 %v1088_v44, %v1364_v37  ;;  %v685_v53 = vadd.f32 %v1104_v45, %v1364_v37  ;;  %v738_v58 = vmax.f32 %v618_v48, 0.0  ;;  %v754_v59 = vmax.f32 %v682_v49, 0.0 }
 0x110   : > { %v613_v50 = vadd.f32 %v1364_v37, %v612_v46  ;;  %v677_v51 = vadd.f32 %v1364_v37, %v676_v47  ;;  %v736_v54 = vmax.f32 %v610_v42, 0.0  ;;  %v752_v55 = vmax.f32 %v674_v43, 0.0 }
 0x111   : > { %v739_v0 = vmax.f32 %v621_v52, 0.0  ;;  %v755_v1 = vmax.f32 %v685_v53, 0.0 }
 0x112   : > { %v737_v56 = vmax.f32 %v613_v50, 0.0  ;;  %v753_v57 = vmax.f32 %v677_v51, 0.0 }
 0x114   : > { %v769_v60 = vadd.f32 %v737_v56, %v736_v54  ;;  %v790_v61 = vadd.f32 %v753_v57, %v752_v55  ;;  %v1091_v62 = vpop.f32.mrb[4].mxu0  ;;  %v1107_v63 = vpop.f32.mrb[4].mxu1 }
 0x115   : > { %v625_v2 = vpop.f32.mrb[5].mxu0  ;;  %v689_v3 = vpop.f32.mrb[5].mxu1  ;;  %v634_v16 = vadd.f32 %v1091_v62, %v1364_v37  ;;  %v698_v17 = vadd.f32 %v1107_v63, %v1364_v37 }
 0x116   : > { %v770_v4 = vadd.f32 %v769_v60, %v738_v58  ;;  %v791_v5 = vadd.f32 %v790_v61, %v754_v59  ;;  %v626_v6 = vadd.f32 %v1364_v37, %v625_v2  ;;  %v690_v7 = vadd.f32 %v1364_v37, %v689_v3  ;;  %v1092_v8 = vpop.f32.mrb[6].mxu0  ;;  %v1108_v9 = vpop.f32.mrb[6].mxu1 }
 0x117   : > { %v628_v10 = vpop.f32.mrb[7].mxu0  ;;  %v692_v11 = vpop.f32.mrb[7].mxu1  ;;  %v637_v22 = vadd.f32 %v1092_v8, %v1364_v37  ;;  %v701_v23 = vadd.f32 %v1108_v9, %v1364_v37  ;;  %v742_v28 = vmax.f32 %v634_v16, 0.0  ;;  %v758_v29 = vmax.f32 %v698_v17, 0.0 }
 0x118   : > { %v740_v12 = vmax.f32 %v626_v6, 0.0  ;;  %v771_v13 = vadd.f32 %v770_v4, %v739_v0  ;;  %v756_v14 = vmax.f32 %v690_v7, 0.0  ;;  %v792_v15 = vadd.f32 %v791_v5, %v755_v1 }
 0x119   : > { %v629_v18 = vadd.f32 %v1364_v37, %v628_v10  ;;  %v693_v19 = vadd.f32 %v1364_v37, %v692_v11  ;;  %v743_v39 = vmax.f32 %v637_v22, 0.0  ;;  %v759_v40 = vmax.f32 %v701_v23, 0.0 }
 0x11a   : > { %v772_v20 = vadd.f32 %v771_v13, %v740_v12  ;;  %v793_v21 = vadd.f32 %v792_v15, %v756_v14 }
 0x11b   : > { %v741_v24 = vmax.f32 %v629_v18, 0.0  ;;  %v757_v25 = vmax.f32 %v693_v19, 0.0 }
 0x11c   : > { %v1095_v26 = vpop.f32.mrb[8].mxu0  ;;  %v1111_v27 = vpop.f32.mrb[8].mxu1 }
 0x11d   : > { %v773_v30 = vadd.f32 %v772_v20, %v741_v24  ;;  %v794_v31 = vadd.f32 %v793_v21, %v757_v25  ;;  %v641_v32 = vpop.f32.mrb[9].mxu0  ;;  %v705_v33 = vpop.f32.mrb[9].mxu1  ;;  %v650_v45 = vadd.f32 %v1095_v26, %v1364_v37  ;;  %v714_v46 = vadd.f32 %v1111_v27, %v1364_v37 }
 0x11e   : > { %v642_v34 = vadd.f32 %v1364_v37, %v641_v32  ;;  %v706_v35 = vadd.f32 %v1364_v37, %v705_v33  ;;  %v1096_v36 = vpop.f32.mrb[10].mxu0  ;;  %v1112_v38 = vpop.f32.mrb[10].mxu1 }
 0x11f   : > { %v774_v41 = vadd.f32 %v773_v30, %v742_v28  ;;  %v795_v42 = vadd.f32 %v794_v31, %v758_v29  ;;  %v644_v43 = vpop.f32.mrb[11].mxu0  ;;  %v708_v44 = vpop.f32.mrb[11].mxu1  ;;  %v653_v53 = vadd.f32 %v1096_v36, %v1364_v37  ;;  %v717_v54 = vadd.f32 %v1112_v38, %v1364_v37 }
 0x120   : > { %v744_v47 = vmax.f32 %v642_v34, 0.0  ;;  %v760_v48 = vmax.f32 %v706_v35, 0.0  ;;  %v645_v51 = vadd.f32 %v1364_v37, %v644_v43  ;;  %v709_v52 = vadd.f32 %v1364_v37, %v708_v44 }
 0x121   : > { %v775_v49 = vadd.f32 %v774_v41, %v743_v39  ;;  %v796_v50 = vadd.f32 %v795_v42, %v759_v40  ;;  %v746_v61 = vmax.f32 %v650_v45, 0.0  ;;  %v762_v62 = vmax.f32 %v714_v46, 0.0 }
 0x122   : > { %v745_v57 = vmax.f32 %v645_v51, 0.0  ;;  %v761_v58 = vmax.f32 %v709_v52, 0.0  ;;  %v747_v7 = vmax.f32 %v653_v53, 0.0  ;;  %v763_v8 = vmax.f32 %v717_v54, 0.0  ;;  %v1191_v52 = vld [vmem:[%s1445_s3] sm:$0xff] (!%p1038_p9)   ;;  %v1192_v54 = vld [vmem:[%s1445_s3 + $0x8] sm:$0xff] (!%p1038_p9)  }
 0x123   : > { %v776_v55 = vadd.f32 %v775_v49, %v744_v47  ;;  %v797_v56 = vadd.f32 %v796_v50, %v760_v48  ;;  %v768_v48 = vld [vmem:[#allocation2] sm:$0x3]  ;;  %v1226_v53 = vmov (!%p1038_p9), 0.0  }
 0x124   : > { %v1099_v59 = vpop.f32.mrb[12].mxu0  ;;  %v1115_v60 = vpop.f32.mrb[12].mxu1  ;;  %1117 = vmatprep.subr.bf16.mxu0 (!%p1038_p9), %v1226_v53  ;;  %1133 = vmatprep.mubr.msk.bf16.mxu0 (!%p1038_p9), %vm1227_vm3, %v1226_v53 }
 0x125   : > { %v777_v63 = vadd.f32 %v776_v55, %v745_v57  ;;  %v798_v0 = vadd.f32 %v797_v56, %v761_v58  ;;  %v657_v1 = vpop.f32.mrb[13].mxu0  ;;  %v721_v2 = vpop.f32.mrb[13].mxu1  ;;  %v666_v13 = vadd.f32 %v1099_v59, %v1364_v37  ;;  %v730_v14 = vadd.f32 %v1115_v60, %v1364_v37  ;;  %1118 = vmatpush3.bf16.msra.mxu0 (!%p1038_p9), %v1191_v52  ;;  %v1193_v55 = vld [vmem:[%s1445_s3 + $0x10] sm:$0xff] (!%p1038_p9)   ;;  %v1194_v56 = vld [vmem:[%s1445_s3 + $0x18] sm:$0xff] (!%p1038_p9)   ;;  %v1195_v57 = vld [vmem:[%s1445_s3 + $0x20] sm:$0xff] (!%p1038_p9)  }
 0x126   : > { %v658_v3 = vadd.f32 %v1364_v37, %v657_v1  ;;  %v722_v4 = vadd.f32 %v1364_v37, %v721_v2  ;;  %v1100_v5 = vpop.f32.mrb[14].mxu0  ;;  %v1116_v6 = vpop.f32.mrb[14].mxu1  ;;  %1119 = vmatprep.subr.bf16.mxu0 (!%p1038_p9), %v1226_v53  ;;  %v1196_v58 = vld [vmem:[%s1445_s3 + $0x28] sm:$0xff] (!%p1038_p9)   ;;  %v1197_v59 = vld [vmem:[%s1445_s3 + $0x30] sm:$0xff] (!%p1038_p9)  }
 0x127   : > { %v778_v9 = vadd.f32 %v777_v63, %v746_v61  ;;  %v799_v10 = vadd.f32 %v798_v0, %v762_v62  ;;  %v660_v11 = vpop.f32.mrb[15].mxu0  ;;  %v724_v12 = vpop.f32.mrb[15].mxu1  ;;  %v669_v21 = vadd.f32 %v1100_v5, %v1364_v37  ;;  %v733_v22 = vadd.f32 %v1116_v6, %v1364_v37  ;;  %v1198_v62 = vld [vmem:[%s1445_s3 + $0x38] sm:$0xff] (!%p1038_p9)   ;;  %v1039_v0 = vld [vmem:[%s1446_s4] ss:$0 sm:$0xff] (!%p1038_p9) }
 0x128   : > { %v748_v15 = vmax.f32 %v658_v3, 0.0  ;;  %v764_v16 = vmax.f32 %v722_v4, 0.0  ;;  %v661_v19 = vadd.f32 %v1364_v37, %v660_v11  ;;  %v725_v20 = vadd.f32 %v1364_v37, %v724_v12 }
 0x129   : > { %v779_v17 = vadd.f32 %v778_v9, %v747_v7  ;;  %v800_v18 = vadd.f32 %v799_v10, %v763_v8  ;;  %v750_v27 = vmax.f32 %v666_v13, 0.0  ;;  %v766_v28 = vmax.f32 %v730_v14, 0.0  ;;  %1120 = vmatpush3.bf16.msra.mxu0 (!%p1038_p9), %v1192_v54 }
 0x12a   : > { %v749_v25 = vmax.f32 %v661_v19, 0.0  ;;  %v765_v26 = vmax.f32 %v725_v20, 0.0  ;;  %v751_v31 = vmax.f32 %v669_v21, 0.0  ;;  %v767_v32 = vmax.f32 %v733_v22, 0.0  ;;  %1121 = vmatprep.subr.bf16.mxu0 (!%p1038_p9), %v1226_v53 }
 0x12b   : > { %v780_v23 = vadd.f32 %v779_v17, %v748_v15  ;;  %v801_v24 = vadd.f32 %v800_v18, %v764_v16 }
 0x12d   : > { %v781_v29 = vadd.f32 %v780_v23, %v749_v25  ;;  %v802_v30 = vadd.f32 %v801_v24, %v765_v26  ;;  %1122 = vmatpush3.bf16.msra.mxu0 (!%p1038_p9), %v1193_v55 }
 0x12e   : > { %1123 = vmatprep.subr.bf16.mxu0 (!%p1038_p9), %v1226_v53 }
 0x12f   : > { %v782_v33 = vadd.f32 %v781_v29, %v750_v27  ;;  %v803_v34 = vadd.f32 %v802_v30, %v766_v28 }
 0x131   : > { %v783_v35 = vadd.f32 %v782_v33, %v751_v31  ;;  %v804_v36 = vadd.f32 %v803_v34, %v767_v32  ;;  %1124 = vmatpush3.bf16.msra.mxu0 (!%p1038_p9), %v1194_v56 }
 0x132   : > { %1125 = vmatprep.subr.bf16.mxu0 (!%p1038_p9), %v1226_v53 }
 0x133   : > { %v784_v38 = vrot.slane %v783_v35, 4  ;;  %v805_v39 = vrot.slane %v804_v36, 4 }
 0x135   : > { %v785_v40 = vadd.f32 %v784_v38, %v783_v35  ;;  %v806_v41 = vadd.f32 %v805_v39, %v804_v36  ;;  %1126 = vmatpush3.bf16.msra.mxu0 (!%p1038_p9), %v1195_v57 }
 0x136   : > { %1127 = vmatprep.subr.bf16.mxu0 (!%p1038_p9), %v1226_v53 }
 0x137   : > { %v786_v42 = vrot.slane %v785_v40, 2  ;;  %v807_v37 = vrot.slane %v806_v41, 2 }
 0x139   : > { %v787_v43 = vadd.f32 %v786_v42, %v785_v40  ;;  %v808_v44 = vadd.f32 %v807_v37, %v806_v41  ;;  %1128 = vmatpush3.bf16.msra.mxu0 (!%p1038_p9), %v1196_v58 }
 0x13a   : > { %1129 = vmatprep.subr.bf16.mxu0 (!%p1038_p9), %v1226_v53 }
 0x13b   : > { %v788_v45 = vrot.slane %v787_v43, 1  ;;  %v809_v46 = vrot.slane %v808_v44, 1 }
 0x13c   : > { %821 = sbr.rel (%p1038_p9) target bundleno = 598 (0x256), region = 89 }
 0x13d   : > { %v789_v47 = vadd.f32 %v788_v45, %v787_v43  ;;  %v810_v49 = vadd.f32 %v809_v46, %v808_v44  ;;  %1130 = vmatpush3.bf16.msra.mxu0 (!%p1038_p9), %v1197_v59 }
 0x13e   : > { %1131 = vmatprep.subr.bf16.mxu0 (!%p1038_p9), %v1226_v53 }
 0x13f   : > { %v814_v50 = vsel %vm813_vm2, %v810_v49, %v789_v47 }
 0x140   : > { %v816_v51 = vadd.f32 %v814_v50, %v768_v48 }
 0x141   : > { %1132 = vmatpush3.bf16.msra.mxu0 (!%p1038_p9), %v1198_v62 }
 0x142   : > { %817 = vst [vmem:[#allocation2] sm:$0x3] %v816_v51 }
 0x149   : > { %v822_v60 = vld [vmem:[#allocation2] sm:$0x3] }
 0x14a   : > { %v823_v61 = vmul.f32 0.00390625, %v822_v60 }
 0x14c   : > { %v824_v63 = vpack.c.bf16 %v823_v61, %v823_v61 }
 0x14e   : > { %1134 = vmatmul.mubr.bf16.vlgmr.msra.gmra.mrb[0].mxu0 %v824_v63 }
 0x221   : > { %v930_v1 = vpop.f32.mrb[0].mxu0 }
 0x222   : > { %v931_v2 = vadd.f32 %v1039_v0, %v930_v1  ;;  %v1135_v3 = vpop.f32.mrb[1].mxu0 }
 0x223   : > { %v933_v4 = vpop.f32.mrb[2].mxu0 }
 0x224   : > { %v936_v5 = vsel %vm571_vm1, %v931_v2, 0.0  ;;  %v1136_v6 = vpop.f32.mrb[3].mxu0 }
 0x225   : > { %v937_v7 = vrot.slane %v936_v5, 4 }
 0x227   : > { %v938_v8 = vadd.f32 %v937_v7, %v936_v5 }
 0x229   : > { %v939_v9 = vrot.slane %v938_v8, 2 }
 0x22b   : > { %v940_v10 = vadd.f32 %v939_v9, %v938_v8 }
 0x22d   : > { %v941_v11 = vrot.slane %v940_v10, 1 }
 0x22f   : > { %v942_v12 = vadd.f32 %v941_v11, %v940_v10 }
 0x231   : > { %v944_v13 = vmul.f32 0.5, %v942_v12 }
 0x233   : > { %v945_v14 = vsub.f32 %v931_v2, %v944_v13 }
 0x235   : > { %v946_v15 = vmul.f32 %v945_v14, %v945_v14 }
 0x237   : > { %v947_v16 = vsel %vm571_vm1, %v946_v15, 0.0 }
 0x238   : > { %v948_v17 = vrot.slane %v947_v16, 4 }
 0x23a   : > { %v949_v18 = vadd.f32 %v948_v17, %v947_v16 }
 0x23c   : > { %v950_v19 = vrot.slane %v949_v18, 2 }
 0x23e   : > { %v951_v20 = vadd.f32 %v950_v19, %v949_v18 }
 0x240   : > { %v952_v21 = vrot.slane %v951_v20, 1 }
 0x242   : > { %v953_v22 = vadd.f32 %v952_v21, %v951_v20 }
 0x244   : > { %v954_v23 = vmul.f32 0.5, %v953_v22 }
 0x246   : > { %v955_v24 = vadd.f32 1e-05, %v954_v23 }
 0x248   : > { %1199 = vrsqrt.f32 %v955_v24 }
 0x252   : > { %v1200_v25 = vpop.eup %1199 }
 0x253   : > { %v957_v26 = vmul.f32 %v1200_v25, %v945_v14 }
 0x255   : > { %958 = vst [vmem:[%s1447_s5] sm:$0x3] %v957_v26 }
 0x256 PF: > { %p12_p10 = scmp.ge.s32.totalorder %s1275_s22, 4   ;;  %s1448_s18 = smov %s1219_s19 }
 0x257   : > { %s1449_s19 = smov %s1284_s25  ;;  %s1450_s20 = smov %s1275_s22 }
 0x258   :  { %14 = sbr.rel (!%p12_p10) target bundleno = 2 (0x2), region = 120 }

// kernel: forward.7
= control target key start
LH: loop header
LB: loop body
LE: loop exit
PB: predicated region body
PF: predicated region fallthrough
CT: control target
= control target key end

     0   :  { %s293_s1 = inlined_call_operand.vmem [shape: bf16[128,128], index: 1, kind: input, shape index: {}]   ;;  %s294_s0 = inlined_call_operand.vmem [shape: bf16[24,128], index: 0, kind: input, shape index: {}]   ;;  %s295_s2 = inlined_call_operand.vmem [shape: f32[1,128], index: 2, kind: input, shape index: {}]   ;;  %s296_s3 = inlined_call_operand.vmem [shape: f32[24,128], index: 3, kind: output, shape index: {}]  }
   0x1   :  { %v221_v0 = vld [vmem:[%s293_s1] sm:$0xff]   ;;  %v222_v1 = vld [vmem:[%s293_s1 + $0x8] sm:$0xff]   ;;  %v223_v2 = vld [vmem:[%s293_s1 + $0x10] sm:$0xff]  }
   0x2   :  { %200 = vmatprep.subr.bf16.mxu0 %v221_v0  ;;  %v224_v3 = vld [vmem:[%s293_s1 + $0x18] sm:$0xff]   ;;  %v229_v4 = vld [vmem:[%s294_s0] sm:$0xff]   ;;  %v226_v6 = vld [vmem:[%s293_s1 + $0x28] sm:$0xff]  }
   0x3   :  { %201 = vmatpush3.bf16.msra.mxu0 %v221_v0  ;;  %216 = vmatprep.mubr.bf16.mxu0 %v229_v4  ;;  %v225_v5 = vld [vmem:[%s293_s1 + $0x20] sm:$0xff]   ;;  %v227_v7 = vld [vmem:[%s293_s1 + $0x30] sm:$0xff]   ;;  %v228_v8 = vld [vmem:[%s293_s1 + $0x38] sm:$0xff]  }
   0x4   :  { %202 = vmatprep.subr.bf16.mxu0 %v222_v1  ;;  %v230_v9 = vld [vmem:[%s294_s0 + $0x8] ss:$0 sps:$4 sm:$0xff]   ;;  %v189_v11 = vld [vmem:[%s295_s2] ss:$0 sm:$0xff] }
   0x7   :  { %203 = vmatpush3.bf16.msra.mxu0 %v222_v1 }
   0x8   :  { %204 = vmatprep.subr.bf16.mxu0 %v223_v2 }
   0xb   :  { %205 = vmatpush3.bf16.msra.mxu0 %v223_v2 }
   0xc   :  { %206 = vmatprep.subr.bf16.mxu0 %v224_v3 }
   0xf   :  { %207 = vmatpush3.bf16.msra.mxu0 %v224_v3 }
  0x10   :  { %208 = vmatprep.subr.bf16.mxu0 %v225_v5 }
  0x13   :  { %209 = vmatpush3.bf16.msra.mxu0 %v225_v5 }
  0x14   :  { %210 = vmatprep.subr.bf16.mxu0 %v226_v6 }
  0x17   :  { %211 = vmatpush3.bf16.msra.mxu0 %v226_v6 }
  0x18   :  { %212 = vmatprep.subr.bf16.mxu0 %v227_v7 }
  0x1b   :  { %213 = vmatpush3.bf16.msra.mxu0 %v227_v7 }
  0x1c   :  { %214 = vmatprep.subr.bf16.mxu0 %v228_v8 }
  0x1f   :  { %215 = vmatpush3.bf16.msra.mxu0 %v228_v8 }
  0x22   :  { %217 = vmatmul.mubr.bf16.vlgmr.msra.gmra.mrb[0].mxu0 %v230_v9 }
  0xf5   :  { %v218_v10 = vpop.f32.mrb[0].mxu0 }
  0xf6   :  { %v136_v12 = vpop.f32.mrb[1].mxu0  ;;  %v171_v14 = vadd.f32 %v218_v10, %v189_v11 }
  0xf7   :  { %v219_v13 = vpop.f32.mrb[2].mxu0  ;;  %v169_v16 = vadd.f32 %v189_v11, %v136_v12 }
  0xf8   :  { %v139_v15 = vpop.f32.mrb[3].mxu0  ;;  %174 = vst [vmem:[%s296_s3 + $0x10] sm:$0xff] %v171_v14 }
  0xf9   :  { %172 = vst [vmem:[%s296_s3] sm:$0xff] %v169_v16  ;;  %v170_v17 = vadd.f32 %v189_v11, %v139_v15 }
  0xfb   :  { %173 = vst [vmem:[%s296_s3 + $0x8] sm:$0xff] %v170_v17 }

// kernel: forward.6
= control target key start
LH: loop header
LB: loop body
LE: loop exit
PB: predicated region body
PF: predicated region fallthrough
CT: control target
= control target key end

     0   :  { %s1864_s9 = smov 0   ;;  %s2445_s0 = inlined_call_operand.vmem [shape: f32[16,2,512], index: 0, kind: input, shape index: {}]   ;;  %s2446_s1 = inlined_call_operand.vmem [shape: bf16[128,512], index: 1, kind: input, shape index: {}]   ;;  %s2447_s2 = inlined_call_operand.vmem [shape: f32[16,2,128], index: 2, kind: output, shape index: {}]  }
   0x1 LB: > { %s1535_s10 = sadd.s32 4294967295, %s1844_s9   ;;  %p1539_p0 = scmp.ge.s32.totalorder %s1844_s9, 1  ;;  %s1844_s9 = sphi %s1864_s9, %s12_s9  }
   0x2   : > { %p114_p1 = scmp.lt.s32.totalorder %s1844_s9, 3 }
   0x4   : > { %p115_p2 = pnand %p1539_p0, %p114_p1 }
   0x5   : > { %s1540_s11 = sshll.u32 (!%p115_p2), %s1535_s10, 3  ;;  %p1545_p4 = scmp.ne.s32.totalorder (!%p115_p2), %s1535_s10, 0 }
   0x6   : > { %118 = sbr.rel (%p115_p2) target bundleno = 2197 (0x895), region = 28  ;;  %p138_p3 = scmp.lt.s32.totalorder (!%p115_p2), %s1540_s11, 15 }
   0xd   : > { %s2449_s11 = smov (!%p138_p3, %s1540_s11), 15  ;;  %154 = sbr.rel (%p1545_p4) target bundleno = 20 (0x14), region = 32 }
   0xe   : > { %s1618_s12 = sshll.u32 %s2449_s11, 3  ;;  %s1544_s13 = sshll.u32 %s2449_s11, 1  ;;  %v1846_v0 = vmov (!%p1545_p4), 0.0  }
   0xf   : > { %s1875_s16 = scalar_lea.vmem %s2445_s0, %s1618_s12  ;;  %s1880_s19 = scalar_lea.vmem %s2447_s2, %s1544_s13  ;;  %155 = vst [vmem:[#allocation2] sm:$0x3] (!%p1545_p4), %v1846_v0  ;;  %156 = vst [vmem:[#allocation3] sm:$0x3] (!%p1545_p4), %v1846_v0 }
  0x14 PF: > { %v1885_v1 = vld [vmem:[%s2446_s1 + $0x4] ss:$16 sps:$4 sm:$0xff]   ;;  %v1890_v2 = vld [vmem:[%s2446_s1 + $0xc] ss:$16 sps:$4 sm:$0xff]   ;;  %v1847_v3 = vmov 0   ;;  %v444_v38 = vlaneseq }
  0x15   : > { %385 = vmatprep.mubr.bf16.mxu0 %v1847_v3  ;;  %426 = vmatprep.mubr.bf16.mxu1 %v1847_v3  ;;  %v1898_v4 = vld [vmem:[%s2446_s1] ss:$16 sps:$4 sm:$0xff]   ;;  %v1903_v5 = vld [vmem:[%s2446_s1 + $0x8] ss:$16 sps:$4 sm:$0xff]   ;;  %v1909_v6 = vld [vmem:[%s2446_s1 + $0x24] ss:$16 sps:$4 sm:$0xff]  }
  0x16   : > { %353 = vmatprep.subr.bf16.mxu0 %v1885_v1  ;;  %394 = vmatprep.subr.bf16.mxu1 %v1890_v2  ;;  %v1916_v7 = vld [vmem:[%s2446_s1 + $0x2c] ss:$16 sps:$4 sm:$0xff]   ;;  %v1921_v8 = vld [vmem:[%s2446_s1 + $0x20] ss:$16 sps:$4 sm:$0xff]   ;;  %v1927_v9 = vld [vmem:[%s2446_s1 + $0x28] ss:$16 sps:$4 sm:$0xff]  }
  0x17   : > { %354 = vmatpush1.bf16.msra.mxu0 %v1898_v4  ;;  %395 = vmatpush1.bf16.msra.mxu1 %v1903_v5  ;;  %v1933_v10 = vld [vmem:[%s2446_s1 + $0x44] ss:$16 sps:$4 sm:$0xff]   ;;  %v1938_v11 = vld [vmem:[%s2446_s1 + $0x4c] ss:$16 sps:$4 sm:$0xff]   ;;  %v1943_v12 = vld [vmem:[%s2446_s1 + $0x40] ss:$16 sps:$4 sm:$0xff]  }
  0x18   : > { %355 = vmatprep.subr.bf16.mxu0 %v1909_v6  ;;  %396 = vmatprep.subr.bf16.mxu1 %v1916_v7  ;;  %v1948_v13 = vld [vmem:[%s2446_s1 + $0x48] ss:$16 sps:$4 sm:$0xff]   ;;  %v1955_v14 = vld [vmem:[%s2446_s1 + $0x64] ss:$16 sps:$4 sm:$0xff]   ;;  %v1962_v15 = vld [vmem:[%s2446_s1 + $0x6c] ss:$16 sps:$4 sm:$0xff]  }
  0x19   : > { %v1967_v16 = vld [vmem:[%s2446_s1 + $0x60] ss:$16 sps:$4 sm:$0xff]   ;;  %v1974_v17 = vld [vmem:[%s2446_s1 + $0x68] ss:$16 sps:$4 sm:$0xff]   ;;  %v1979_v18 = vld [vmem:[%s2446_s1 + $0x84] ss:$16 sps:$4 sm:$0xff]  }
  0x1a   : > { %v1986_v19 = vld [vmem:[%s2446_s1 + $0x8c] ss:$16 sps:$4 sm:$0xff]   ;;  %v1991_v20 = vld [vmem:[%s2446_s1 + $0x80] ss:$16 sps:$4 sm:$0xff]   ;;  %v1996_v21 = vld [vmem:[%s2446_s1 + $0x88] ss:$16 sps:$4 sm:$0xff]  }
  0x1b   : > { %356 = vmatpush1.bf16.msra.mxu0 %v1921_v8  ;;  %397 = vmatpush1.bf16.msra.mxu1 %v1927_v9  ;;  %v2003_v22 = vld [vmem:[%s2446_s1 + $0xa4] ss:$16 sps:$4 sm:$0xff]   ;;  %v2010_v23 = vld [vmem:[%s2446_s1 + $0xac] ss:$16 sps:$4 sm:$0xff]   ;;  %v2017_v24 = vld [vmem:[%s2446_s1 + $0xa0] ss:$16 sps:$4 sm:$0xff]  }
  0x1c   : > { %357 = vmatprep.subr.bf16.mxu0 %v1933_v10  ;;  %398 = vmatprep.subr.bf16.mxu1 %v1938_v11  ;;  %v2022_v25 = vld [vmem:[%s2446_s1 + $0xa8] ss:$16 sps:$4 sm:$0xff]   ;;  %v2029_v26 = vld [vmem:[%s2446_s1 + $0xc4] ss:$16 sps:$4 sm:$0xff]   ;;  %v2034_v27 = vld [vmem:[%s2446_s1 + $0xcc] ss:$16 sps:$4 sm:$0xff]  }
  0x1d   : > { %v2041_v28 = vld [vmem:[%s2446_s1 + $0xc0] ss:$16 sps:$4 sm:$0xff]   ;;  %v2046_v29 = vld [vmem:[%s2446_s1 + $0xc8] ss:$16 sps:$4 sm:$0xff]   ;;  %v2053_v30 = vld [vmem:[%s2446_s1 + $0xe4] ss:$16 sps:$4 sm:$0xff]  }
  0x1e   : > { %v2058_v31 = vld [vmem:[%s2446_s1 + $0xec] ss:$16 sps:$4 sm:$0xff]   ;;  %v2065_v32 = vld [vmem:[%s2446_s1 + $0xe0] ss:$16 sps:$4 sm:$0xff]   ;;  %v2070_v33 = vld [vmem:[%s2446_s1 + $0xe8] ss:$16 sps:$4 sm:$0xff]  }
  0x1f   : > { %358 = vmatpush1.bf16.msra.mxu0 %v1943_v12  ;;  %399 = vmatpush1.bf16.msra.mxu1 %v1948_v13  ;;  %v189_v34 = vld [vmem:[#allocation2] sm:$0x3]  ;;  %v1848_v36 = vmov 1983009808   ;;  %v445_v40 = vshrl.u32 %v444_v38, 7 }
  0x20   : > { %359 = vmatprep.subr.bf16.mxu0 %v1955_v14  ;;  %400 = vmatprep.subr.bf16.mxu1 %v1962_v15  ;;  %v192_v35 = vpack.c.bf16 %v189_v34, %v189_v34  ;;  %v442_v37 = vunpack.c.l.s4 %v1848_v36  ;;  %v191_v54 = vld [vmem:[%s1875_s16] sm:$0xff] }
  0x21   : > { %v190_v38 = vld [vmem:[#allocation3] sm:$0x3] }
  0x22   : > { %v443_v39 = vunpack.c.0.s8 %v442_v37 }
  0x23   : > { %360 = vmatpush1.bf16.msra.mxu0 %v1967_v16  ;;  %401 = vmatpush1.bf16.msra.mxu1 %v1974_v17 }
  0x24   : > { %361 = vmatprep.subr.bf16.mxu0 %v1979_v18  ;;  %402 = vmatprep.subr.bf16.mxu1 %v1986_v19  ;;  %v2112_v43 = vsub.s32 %v443_v39, %v445_v40 }
  0x27   : > { %362 = vmatpush1.bf16.msra.mxu0 %v1991_v20  ;;  %403 = vmatpush1.bf16.msra.mxu1 %v1996_v21 }
  0x28   : > { %363 = vmatprep.subr.bf16.mxu0 %v2003_v22  ;;  %404 = vmatprep.subr.bf16.mxu1 %v2010_v23 }
  0x2b   : > { %364 = vmatpush1.bf16.msra.mxu0 %v2017_v24  ;;  %405 = vmatpush1.bf16.msra.mxu1 %v2022_v25 }
  0x2c   : > { %365 = vmatprep.subr.bf16.mxu0 %v2029_v26  ;;  %406 = vmatprep.subr.bf16.mxu1 %v2034_v27 }
  0x2f   : > { %366 = vmatpush1.bf16.msra.mxu0 %v2041_v28  ;;  %407 = vmatpush1.bf16.msra.mxu1 %v2046_v29 }
  0x30   : > { %367 = vmatprep.subr.bf16.mxu0 %v2053_v30  ;;  %408 = vmatprep.subr.bf16.mxu1 %v2058_v31 }
  0x33   : > { %368 = vmatpush1.bf16.msra.mxu0 %v2065_v32  ;;  %409 = vmatpush1.bf16.msra.mxu1 %v2070_v33 }
  0x34   : > { %493 = vmatprep.subr.bf16.mxu0 %v1885_v1  ;;  %534 = vmatprep.subr.bf16.mxu1 %v1890_v2 }
  0x36   : > { %386 = vmatmul.mubr.bf16.vlgmr.msra.gmra.mrb[0].mxu0 %v192_v35  ;;  %427 = vmatmul.mubr.bf16.vlgmr.msra.gmra.mrb[0].mxu1 %v192_v35 }
  0x37   : > { %494 = vmatpush1.bf16.msra.mxu0 %v1898_v4  ;;  %535 = vmatpush1.bf16.msra.mxu1 %v1903_v5 }
  0x38   : > { %495 = vmatprep.subr.bf16.mxu0 %v1909_v6  ;;  %536 = vmatprep.subr.bf16.mxu1 %v1916_v7 }
  0x39   : > { %525 = vmatprep.mubr.bf16.mxu0 %v1847_v3  ;;  %566 = vmatprep.mubr.bf16.mxu1 %v1847_v3 }
  0x3b   : > { %496 = vmatpush1.bf16.msra.mxu0 %v1921_v8  ;;  %537 = vmatpush1.bf16.msra.mxu1 %v1927_v9 }
  0x3c   : > { %497 = vmatprep.subr.bf16.mxu0 %v1933_v10  ;;  %538 = vmatprep.subr.bf16.mxu1 %v1938_v11 }
  0x3f   : > { %498 = vmatpush1.bf16.msra.mxu0 %v1943_v12  ;;  %539 = vmatpush1.bf16.msra.mxu1 %v1948_v13 }
  0x40   : > { %499 = vmatprep.subr.bf16.mxu0 %v1955_v14  ;;  %540 = vmatprep.subr.bf16.mxu1 %v1962_v15 }
  0x43   : > { %500 = vmatpush1.bf16.msra.mxu0 %v1967_v16  ;;  %541 = vmatpush1.bf16.msra.mxu1 %v1974_v17 }
  0x44   : > { %501 = vmatprep.subr.bf16.mxu0 %v1979_v18  ;;  %542 = vmatprep.subr.bf16.mxu1 %v1986_v19 }
  0x47   : > { %502 = vmatpush1.bf16.msra.mxu0 %v1991_v20  ;;  %543 = vmatpush1.bf16.msra.mxu1 %v1996_v21 }
  0x48   : > { %503 = vmatprep.subr.bf16.mxu0 %v2003_v22  ;;  %544 = vmatprep.subr.bf16.mxu1 %v2010_v23 }
  0x4b   : > { %504 = vmatpush1.bf16.msra.mxu0 %v2017_v24  ;;  %545 = vmatpush1.bf16.msra.mxu1 %v2022_v25 }
  0x4c   : > { %505 = vmatprep.subr.bf16.mxu0 %v2029_v26  ;;  %546 = vmatprep.subr.bf16.mxu1 %v2034_v27 }
  0x4f   : > { %506 = vmatpush1.bf16.msra.mxu0 %v2041_v28  ;;  %547 = vmatpush1.bf16.msra.mxu1 %v2046_v29 }
  0x50   : > { %507 = vmatprep.subr.bf16.mxu0 %v2053_v30  ;;  %548 = vmatprep.subr.bf16.mxu1 %v2058_v31 }
  0x53   : > { %508 = vmatpush1.bf16.msra.mxu0 %v2065_v32  ;;  %549 = vmatpush1.bf16.msra.mxu1 %v2070_v33 }
  0x54   : > { %634 = vmatprep.subr.bf16.mxu0 %v1885_v1  ;;  %675 = vmatprep.subr.bf16.mxu1 %v1890_v2 }
 0x109   : > { %v387_v41 = vpop.f32.mrb[0].mxu0  ;;  %v428_v42 = vpop.f32.mrb[0].mxu1 }
 0x10a   : > { %v389_v44 = vpop.f32.mrb[1].mxu0  ;;  %v430_v45 = vpop.f32.mrb[1].mxu1 }
 0x10b   : > { %v439_v46 = vcombine.low %v387_v41, %v389_v44  ;;  %v440_v47 = vcombine.low %v428_v42, %v430_v45  ;;  %v391_v48 = vpop.f32.mrb[2].mxu0  ;;  %v432_v49 = vpop.f32.mrb[2].mxu1 }
 0x10c   : > { %v392_v50 = vpop.f32.mrb[3].mxu0  ;;  %v433_v51 = vpop.f32.mrb[3].mxu1 }
 0x10d   : > { %v447_v52 = vrot.slane %v439_v46, %v2112_v43  ;;  %v454_v53 = vrot.slane %v440_v47, %v2112_v43 }
 0x10f   : > { %v455_v55 = vcombine.low %v447_v52, %v454_v53 }
 0x111   : > { %v457_v56 = vadd.f32 %v455_v55, %v191_v54 }
 0x113   : > { %v1578_v57 = vmul.f32 -1.442695, %v457_v56  ;;  %v465_v58 = vrot.slane %v457_v56, 2  ;;  %v476_v60 = vrot.slane %v457_v56, 6  ;;  %v473_v63 = vrot.slane %v457_v56, 4 }
 0x115   : > { %1678 = vpow2.f32 %v1578_v57  ;;  %v1579_v59 = vmul.f32 -1.442695, %v465_v58  ;;  %v1580_v61 = vmul.f32 -1.442695, %v476_v60 }
 0x117   : > { %1680 = vpow2.f32 %v1579_v59 }
 0x118   : > { %1682 = vpow2.f32 %v1580_v61 }
 0x11f   : > { %v1679_v62 = vpop.eup %1678 }
 0x120   : > { %v461_v0 = vadd.f32 1.0, %v1679_v62  ;;  %v1581_v62 = vld [vmem:[%s1875_s16 + $0x8] sm:$0xff] }
 0x121   : > { %v1681_v34 = vpop.eup %1680 }
 0x122   : > { %1684 = vrcp.f32 %v461_v0  ;;  %v470_v35 = vadd.f32 1.0, %v1681_v34  ;;  %v1683_v36 = vpop.eup %1682 }
 0x123   : > { %1686 = vtanh.f32 %v473_v63  ;;  %v481_v41 = vadd.f32 1.0, %v1683_v36 }
 0x124   : > { %1688 = vrcp.f32 %v470_v35 }
 0x125   : > { %1690 = vrcp.f32 %v481_v41 }
 0x12c   : > { %v1685_v37 = vpop.eup %1684 }
 0x12d   : > { %v1687_v39 = vpop.eup %1686 }
 0x12e   : > { %v1689_v40 = vpop.eup %1688  ;;  %v485_v44 = vmul.f32 %v1687_v39, %v1685_v37 }
 0x12f   : > { %v484_v42 = vmul.f32 %v1689_v40, %v190_v38  ;;  %v1691_v46 = vpop.eup %1690 }
 0x131   : > { %v2117_v45 = vadd.f32 %v485_v44, %v484_v42 }
 0x133   : > { %1692 = vtanh.f32 %v2117_v45 }
 0x13d   : > { %v1693_v47 = vpop.eup %1692 }
 0x13e   : > { %v488_v48 = vmul.f32 %v1693_v47, %v1691_v46 }
 0x140   : > { %489 = vst [vmem:[%s1880_s19] sm:$0x3] %v488_v48  ;;  %v492_v49 = vpack.c.bf16 %v488_v48, %v488_v48 }
 0x142   : > { %526 = vmatmul.mubr.bf16.vlgmr.msra.gmra.mrb[4].mxu0 %v492_v49  ;;  %567 = vmatmul.mubr.bf16.vlgmr.msra.gmra.mrb[4].mxu1 %v492_v49 }
 0x143   : > { %635 = vmatpush1.bf16.msra.mxu0 %v1898_v4  ;;  %676 = vmatpush1.bf16.msra.mxu1 %v1903_v5 }
 0x144   : > { %636 = vmatprep.subr.bf16.mxu0 %v1909_v6  ;;  %677 = vmatprep.subr.bf16.mxu1 %v1916_v7 }
 0x145   : > { %666 = vmatprep.mubr.bf16.mxu0 %v1847_v3  ;;  %707 = vmatprep.mubr.bf16.mxu1 %v1847_v3 }
 0x147   : > { %637 = vmatpush1.bf16.msra.mxu0 %v1921_v8  ;;  %678 = vmatpush1.bf16.msra.mxu1 %v1927_v9 }
 0x148   : > { %638 = vmatprep.subr.bf16.mxu0 %v1933_v10  ;;  %679 = vmatprep.subr.bf16.mxu1 %v1938_v11 }
 0x14b   : > { %639 = vmatpush1.bf16.msra.mxu0 %v1943_v12  ;;  %680 = vmatpush1.bf16.msra.mxu1 %v1948_v13 }
 0x14c   : > { %640 = vmatprep.subr.bf16.mxu0 %v1955_v14  ;;  %681 = vmatprep.subr.bf16.mxu1 %v1962_v15 }
 0x14f   : > { %641 = vmatpush1.bf16.msra.mxu0 %v1967_v16  ;;  %682 = vmatpush1.bf16.msra.mxu1 %v1974_v17 }
 0x150   : > { %642 = vmatprep.subr.bf16.mxu0 %v1979_v18  ;;  %683 = vmatprep.subr.bf16.mxu1 %v1986_v19 }
 0x153   : > { %643 = vmatpush1.bf16.msra.mxu0 %v1991_v20  ;;  %684 = vmatpush1.bf16.msra.mxu1 %v1996_v21 }
 0x154   : > { %644 = vmatprep.subr.bf16.mxu0 %v2003_v22  ;;  %685 = vmatprep.subr.bf16.mxu1 %v2010_v23 }
 0x157   : > { %645 = vmatpush1.bf16.msra.mxu0 %v2017_v24  ;;  %686 = vmatpush1.bf16.msra.mxu1 %v2022_v25 }
 0x158   : > { %646 = vmatprep.subr.bf16.mxu0 %v2029_v26  ;;  %687 = vmatprep.subr.bf16.mxu1 %v2034_v27 }
 0x15b   : > { %647 = vmatpush1.bf16.msra.mxu0 %v2041_v28  ;;  %688 = vmatpush1.bf16.msra.mxu1 %v2046_v29 }
 0x15c   : > { %648 = vmatprep.subr.bf16.mxu0 %v2053_v30  ;;  %689 = vmatprep.subr.bf16.mxu1 %v2058_v31 }
 0x15f   : > { %649 = vmatpush1.bf16.msra.mxu0 %v2065_v32  ;;  %690 = vmatpush1.bf16.msra.mxu1 %v2070_v33 }
 0x160   : > { %775 = vmatprep.subr.bf16.mxu0 %v1885_v1  ;;  %816 = vmatprep.subr.bf16.mxu1 %v1890_v2 }
 0x215   : > { %v527_v50 = vpop.f32.mrb[4].mxu0  ;;  %v568_v51 = vpop.f32.mrb[4].mxu1 }
 0x216   : > { %v529_v52 = vpop.f32.mrb[5].mxu0  ;;  %v570_v53 = vpop.f32.mrb[5].mxu1 }
 0x217   : > { %v579_v54 = vcombine.low %v527_v50, %v529_v52  ;;  %v580_v55 = vcombine.low %v568_v51, %v570_v53  ;;  %v531_v56 = vpop.f32.mrb[6].mxu0  ;;  %v572_v57 = vpop.f32.mrb[6].mxu1 }
 0x218   : > { %v532_v58 = vpop.f32.mrb[7].mxu0  ;;  %v573_v59 = vpop.f32.mrb[7].mxu1 }
 0x219   : > { %v587_v60 = vrot.slane %v579_v54, %v2112_v43  ;;  %v594_v61 = vrot.slane %v580_v55, %v2112_v43 }
 0x21b   : > { %v595_v63 = vcombine.low %v587_v60, %v594_v61 }
 0x21d   : > { %v597_v0 = vadd.f32 %v1581_v62, %v595_v63 }
 0x21f   : > { %v1582_v34 = vmul.f32 -1.442695, %v597_v0  ;;  %v605_v35 = vrot.slane %v597_v0, 2  ;;  %v616_v37 = vrot.slane %v597_v0, 6  ;;  %v613_v40 = vrot.slane %v597_v0, 4 }
 0x221   : > { %1694 = vpow2.f32 %v1582_v34  ;;  %v1583_v36 = vmul.f32 -1.442695, %v605_v35  ;;  %v1584_v38 = vmul.f32 -1.442695, %v616_v37 }
 0x223   : > { %1696 = vpow2.f32 %v1583_v36 }
 0x224   : > { %1698 = vpow2.f32 %v1584_v38  ;;  %v1586_v38 = vld [vmem:[%s1875_s16 + $0x10] sm:$0xff] }
 0x22b   : > { %v1695_v39 = vpop.eup %1694 }
 0x22c   : > { %v601_v41 = vadd.f32 1.0, %v1695_v39 }
 0x22d   : > { %v1697_v42 = vpop.eup %1696 }
 0x22e   : > { %1700 = vrcp.f32 %v601_v41  ;;  %v610_v44 = vadd.f32 1.0, %v1697_v42  ;;  %v1699_v46 = vpop.eup %1698 }
 0x22f   : > { %1702 = vtanh.f32 %v613_v40  ;;  %v621_v50 = vadd.f32 1.0, %v1699_v46 }
 0x230   : > { %1704 = vrcp.f32 %v610_v44 }
 0x231   : > { %1706 = vrcp.f32 %v621_v50 }
 0x238   : > { %v1701_v47 = vpop.eup %1700 }
 0x239   : > { %v1703_v48 = vpop.eup %1702 }
 0x23a   : > { %v1705_v49 = vpop.eup %1704  ;;  %v625_v52 = vmul.f32 %v1703_v48, %v1701_v47 }
 0x23b   : > { %v624_v51 = vmul.f32 %v1705_v49, %v2117_v45  ;;  %v1707_v54 = vpop.eup %1706 }
 0x23d   : > { %v2159_v53 = vadd.f32 %v625_v52, %v624_v51 }
 0x23f   : > { %1708 = vtanh.f32 %v2159_v53 }
 0x249   : > { %v1709_v55 = vpop.eup %1708 }
 0x24a   : > { %v628_v56 = vmul.f32 %v1709_v55, %v1707_v54 }
 0x24c   : > { %1585 = vst [vmem:[%s1880_s19 + $0x2] sm:$0x3] %v628_v56  ;;  %v633_v57 = vpack.c.bf16 %v628_v56, %v628_v56 }
 0x24e   : > { %667 = vmatmul.mubr.bf16.vlgmr.msra.gmra.mrb[8].mxu0 %v633_v57  ;;  %708 = vmatmul.mubr.bf16.vlgmr.msra.gmra.mrb[8].mxu1 %v633_v57 }
 0x24f   : > { %776 = vmatpush1.bf16.msra.mxu0 %v1898_v4  ;;  %817 = vmatpush1.bf16.msra.mxu1 %v1903_v5 }
 0x250   : > { %777 = vmatprep.subr.bf16.mxu0 %v1909_v6  ;;  %818 = vmatprep.subr.bf16.mxu1 %v1916_v7 }
 0x251   : > { %807 = vmatprep.mubr.bf16.mxu0 %v1847_v3  ;;  %848 = vmatprep.mubr.bf16.mxu1 %v1847_v3 }
 0x253   : > { %778 = vmatpush1.bf16.msra.mxu0 %v1921_v8  ;;  %819 = vmatpush1.bf16.msra.mxu1 %v1927_v9 }
 0x254   : > { %779 = vmatprep.subr.bf16.mxu0 %v1933_v10  ;;  %820 = vmatprep.subr.bf16.mxu1 %v1938_v11 }
 0x257   : > { %780 = vmatpush1.bf16.msra.mxu0 %v1943_v12  ;;  %821 = vmatpush1.bf16.msra.mxu1 %v1948_v13 }
 0x258   : > { %781 = vmatprep.subr.bf16.mxu0 %v1955_v14  ;;  %822 = vmatprep.subr.bf16.mxu1 %v1962_v15 }
 0x25b   : > { %782 = vmatpush1.bf16.msra.mxu0 %v1967_v16  ;;  %823 = vmatpush1.bf16.msra.mxu1 %v1974_v17 }
 0x25c   : > { %783 = vmatprep.subr.bf16.mxu0 %v1979_v18  ;;  %824 = vmatprep.subr.bf16.mxu1 %v1986_v19 }
 0x25f   : > { %784 = vmatpush1.bf16.msra.mxu0 %v1991_v20  ;;  %825 = vmatpush1.bf16.msra.mxu1 %v1996_v21 }
 0x260   : > { %785 = vmatprep.subr.bf16.mxu0 %v2003_v22  ;;  %826 = vmatprep.subr.bf16.mxu1 %v2010_v23 }
 0x263   : > { %786 = vmatpush1.bf16.msra.mxu0 %v2017_v24  ;;  %827 = vmatpush1.bf16.msra.mxu1 %v2022_v25 }
 0x264   : > { %787 = vmatprep.subr.bf16.mxu0 %v2029_v26  ;;  %828 = vmatprep.subr.bf16.mxu1 %v2034_v27 }
 0x267   : > { %788 = vmatpush1.bf16.msra.mxu0 %v2041_v28  ;;  %829 = vmatpush1.bf16.msra.mxu1 %v2046_v29 }
 0x268   : > { %789 = vmatprep.subr.bf16.mxu0 %v2053_v30  ;;  %830 = vmatprep.subr.bf16.mxu1 %v2058_v31 }
 0x26b   : > { %790 = vmatpush1.bf16.msra.mxu0 %v2065_v32  ;;  %831 = vmatpush1.bf16.msra.mxu1 %v2070_v33 }
 0x26c   : > { %916 = vmatprep.subr.bf16.mxu0 %v1885_v1  ;;  %957 = vmatprep.subr.bf16.mxu1 %v1890_v2 }
 0x321   : > { %v668_v45 = vpop.f32.mrb[8].mxu0  ;;  %v709_v58 = vpop.f32.mrb[8].mxu1 }
 0x322   : > { %v670_v59 = vpop.f32.mrb[9].mxu0  ;;  %v711_v60 = vpop.f32.mrb[9].mxu1 }
 0x323   : > { %v720_v61 = vcombine.low %v668_v45, %v670_v59  ;;  %v721_v62 = vcombine.low %v709_v58, %v711_v60  ;;  %v672_v63 = vpop.f32.mrb[10].mxu0  ;;  %v713_v0 = vpop.f32.mrb[10].mxu1 }
 0x324   : > { %v673_v34 = vpop.f32.mrb[11].mxu0  ;;  %v714_v35 = vpop.f32.mrb[11].mxu1 }
 0x325   : > { %v728_v36 = vrot.slane %v720_v61, %v2112_v43  ;;  %v735_v37 = vrot.slane %v721_v62, %v2112_v43 }
 0x327   : > { %v736_v39 = vcombine.low %v728_v36, %v735_v37 }
 0x329   : > { %v738_v40 = vadd.f32 %v1586_v38, %v736_v39 }
 0x32b   : > { %v1587_v41 = vmul.f32 -1.442695, %v738_v40  ;;  %v746_v42 = vrot.slane %v738_v40, 2  ;;  %v757_v46 = vrot.slane %v738_v40, 6  ;;  %v754_v49 = vrot.slane %v738_v40, 4 }
 0x32d   : > { %1710 = vpow2.f32 %v1587_v41  ;;  %v1588_v44 = vmul.f32 -1.442695, %v746_v42  ;;  %v1589_v47 = vmul.f32 -1.442695, %v757_v46 }
 0x32f   : > { %1712 = vpow2.f32 %v1588_v44 }
 0x330   : > { %1714 = vpow2.f32 %v1589_v47  ;;  %v1591_v47 = vld [vmem:[%s1875_s16 + $0x18] sm:$0xff] }
 0x337   : > { %v1711_v48 = vpop.eup %1710 }
 0x338   : > { %v742_v50 = vadd.f32 1.0, %v1711_v48 }
 0x339   : > { %v1713_v51 = vpop.eup %1712 }
 0x33a   : > { %1716 = vrcp.f32 %v742_v50  ;;  %v751_v52 = vadd.f32 1.0, %v1713_v51  ;;  %v1715_v54 = vpop.eup %1714 }
 0x33b   : > { %1718 = vtanh.f32 %v754_v49  ;;  %v762_v45 = vadd.f32 1.0, %v1715_v54 }
 0x33c   : > { %1720 = vrcp.f32 %v751_v52 }
 0x33d   : > { %1722 = vrcp.f32 %v762_v45 }
 0x344   : > { %v1717_v55 = vpop.eup %1716 }
 0x345   : > { %v1719_v56 = vpop.eup %1718 }
 0x346   : > { %v1721_v57 = vpop.eup %1720  ;;  %v766_v59 = vmul.f32 %v1719_v56, %v1717_v55 }
 0x347   : > { %v765_v58 = vmul.f32 %v1721_v57, %v2159_v53  ;;  %v1723_v61 = vpop.eup %1722 }
 0x349   : > { %v2201_v60 = vadd.f32 %v766_v59, %v765_v58 }
 0x34b   : > { %1724 = vtanh.f32 %v2201_v60 }
 0x355   : > { %v1725_v62 = vpop.eup %1724 }
 0x356   : > { %v769_v63 = vmul.f32 %v1725_v62, %v1723_v61 }
 0x358   : > { %1590 = vst [vmem:[%s1880_s19 + $0x4] sm:$0x3] %v769_v63  ;;  %v774_v0 = vpack.c.bf16 %v769_v63, %v769_v63 }
 0x35a   : > { %808 = vmatmul.mubr.bf16.vlgmr.msra.gmra.mrb[12].mxu0 %v774_v0  ;;  %849 = vmatmul.mubr.bf16.vlgmr.msra.gmra.mrb[12].mxu1 %v774_v0 }
 0x35b   : > { %917 = vmatpush1.bf16.msra.mxu0 %v1898_v4  ;;  %958 = vmatpush1.bf16.msra.mxu1 %v1903_v5 }
 0x35c   : > { %918 = vmatprep.subr.bf16.mxu0 %v1909_v6  ;;  %959 = vmatprep.subr.bf16.mxu1 %v1916_v7 }
 0x35d   : > { %948 = vmatprep.mubr.bf16.mxu0 %v1847_v3  ;;  %989 = vmatprep.mubr.bf16.mxu1 %v1847_v3 }
 0x35f   : > { %919 = vmatpush1.bf16.msra.mxu0 %v1921_v8  ;;  %960 = vmatpush1.bf16.msra.mxu1 %v1927_v9 }
 0x360   : > { %920 = vmatprep.subr.bf16.mxu0 %v1933_v10  ;;  %961 = vmatprep.subr.bf16.mxu1 %v1938_v11 }
 0x363   : > { %921 = vmatpush1.bf16.msra.mxu0 %v1943_v12  ;;  %962 = vmatpush1.bf16.msra.mxu1 %v1948_v13 }
 0x364   : > { %922 = vmatprep.subr.bf16.mxu0 %v1955_v14  ;;  %963 = vmatprep.subr.bf16.mxu1 %v1962_v15 }
 0x367   : > { %923 = vmatpush1.bf16.msra.mxu0 %v1967_v16  ;;  %964 = vmatpush1.bf16.msra.mxu1 %v1974_v17 }
 0x368   : > { %924 = vmatprep.subr.bf16.mxu0 %v1979_v18  ;;  %965 = vmatprep.subr.bf16.mxu1 %v1986_v19 }
 0x36b   : > { %925 = vmatpush1.bf16.msra.mxu0 %v1991_v20  ;;  %966 = vmatpush1.bf16.msra.mxu1 %v1996_v21 }
 0x36c   : > { %926 = vmatprep.subr.bf16.mxu0 %v2003_v22  ;;  %967 = vmatprep.subr.bf16.mxu1 %v2010_v23 }
 0x36f   : > { %927 = vmatpush1.bf16.msra.mxu0 %v2017_v24  ;;  %968 = vmatpush1.bf16.msra.mxu1 %v2022_v25 }
 0x370   : > { %928 = vmatprep.subr.bf16.mxu0 %v2029_v26  ;;  %969 = vmatprep.subr.bf16.mxu1 %v2034_v27 }
 0x373   : > { %929 = vmatpush1.bf16.msra.mxu0 %v2041_v28  ;;  %970 = vmatpush1.bf16.msra.mxu1 %v2046_v29 }
 0x374   : > { %930 = vmatprep.subr.bf16.mxu0 %v2053_v30  ;;  %971 = vmatprep.subr.bf16.mxu1 %v2058_v31 }
 0x377   : > { %931 = vmatpush1.bf16.msra.mxu0 %v2065_v32  ;;  %972 = vmatpush1.bf16.msra.mxu1 %v2070_v33 }
 0x378   : > { %1057 = vmatprep.subr.bf16.mxu0 %v1885_v1  ;;  %1098 = vmatprep.subr.bf16.mxu1 %v1890_v2 }
 0x42d   : > { %v809_v53 = vpop.f32.mrb[12].mxu0  ;;  %v850_v34 = vpop.f32.mrb[12].mxu1 }
 0x42e   : > { %v811_v35 = vpop.f32.mrb[13].mxu0  ;;  %v852_v36 = vpop.f32.mrb[13].mxu1 }
 0x42f   : > { %v861_v37 = vcombine.low %v809_v53, %v811_v35  ;;  %v862_v38 = vcombine.low %v850_v34, %v852_v36  ;;  %v813_v39 = vpop.f32.mrb[14].mxu0  ;;  %v854_v40 = vpop.f32.mrb[14].mxu1 }
 0x430   : > { %v814_v41 = vpop.f32.mrb[15].mxu0  ;;  %v855_v42 = vpop.f32.mrb[15].mxu1 }
 0x431   : > { %v869_v44 = vrot.slane %v861_v37, %v2112_v43  ;;  %v876_v46 = vrot.slane %v862_v38, %v2112_v43 }
 0x433   : > { %v877_v48 = vcombine.low %v869_v44, %v876_v46 }
 0x435   : > { %v879_v49 = vadd.f32 %v1591_v47, %v877_v48 }
 0x437   : > { %v1592_v50 = vmul.f32 -1.442695, %v879_v49  ;;  %v887_v51 = vrot.slane %v879_v49, 2  ;;  %v898_v54 = vrot.slane %v879_v49, 6  ;;  %v895_v57 = vrot.slane %v879_v49, 4 }
 0x439   : > { %1726 = vpow2.f32 %v1592_v50  ;;  %v1593_v52 = vmul.f32 -1.442695, %v887_v51  ;;  %v1594_v55 = vmul.f32 -1.442695, %v898_v54 }
 0x43b   : > { %1728 = vpow2.f32 %v1593_v52  ;;  %v1596_v52 = vld [vmem:[%s1875_s16 + $0x20] sm:$0xff] }
 0x43c   : > { %1730 = vpow2.f32 %v1594_v55 }
 0x443   : > { %v1727_v56 = vpop.eup %1726 }
 0x444   : > { %v883_v45 = vadd.f32 1.0, %v1727_v56 }
 0x445   : > { %v1729_v58 = vpop.eup %1728 }
 0x446   : > { %1732 = vrcp.f32 %v883_v45  ;;  %v892_v59 = vadd.f32 1.0, %v1729_v58  ;;  %v1731_v61 = vpop.eup %1730 }
 0x447   : > { %1734 = vtanh.f32 %v895_v57  ;;  %v903_v53 = vadd.f32 1.0, %v1731_v61 }
 0x448   : > { %1736 = vrcp.f32 %v892_v59 }
 0x449   : > { %1738 = vrcp.f32 %v903_v53 }
 0x450   : > { %v1733_v62 = vpop.eup %1732 }
 0x451   : > { %v1735_v63 = vpop.eup %1734 }
 0x452   : > { %v1737_v0 = vpop.eup %1736  ;;  %v907_v35 = vmul.f32 %v1735_v63, %v1733_v62 }
 0x453   : > { %v906_v34 = vmul.f32 %v1737_v0, %v2201_v60  ;;  %v1739_v37 = vpop.eup %1738 }
 0x455   : > { %v2243_v36 = vadd.f32 %v907_v35, %v906_v34 }
 0x457   : > { %1740 = vtanh.f32 %v2243_v36 }
 0x461   : > { %v1741_v38 = vpop.eup %1740 }
 0x462   : > { %v910_v39 = vmul.f32 %v1741_v38, %v1739_v37 }
 0x464   : > { %1595 = vst [vmem:[%s1880_s19 + $0x6] sm:$0x3] %v910_v39  ;;  %v915_v40 = vpack.c.bf16 %v910_v39, %v910_v39 }
 0x466   : > { %949 = vmatmul.mubr.bf16.vlgmr.msra.gmra.mrb[16].mxu0 %v915_v40  ;;  %990 = vmatmul.mubr.bf16.vlgmr.msra.gmra.mrb[16].mxu1 %v915_v40 }
 0x467   : > { %1058 = vmatpush1.bf16.msra.mxu0 %v1898_v4  ;;  %1099 = vmatpush1.bf16.msra.mxu1 %v1903_v5 }
 0x468   : > { %1059 = vmatprep.subr.bf16.mxu0 %v1909_v6  ;;  %1100 = vmatprep.subr.bf16.mxu1 %v1916_v7 }
 0x469   : > { %1089 = vmatprep.mubr.bf16.mxu0 %v1847_v3  ;;  %1130 = vmatprep.mubr.bf16.mxu1 %v1847_v3 }
 0x46b   : > { %1060 = vmatpush1.bf16.msra.mxu0 %v1921_v8  ;;  %1101 = vmatpush1.bf16.msra.mxu1 %v1927_v9 }
 0x46c   : > { %1061 = vmatprep.subr.bf16.mxu0 %v1933_v10  ;;  %1102 = vmatprep.subr.bf16.mxu1 %v1938_v11 }
 0x46f   : > { %1062 = vmatpush1.bf16.msra.mxu0 %v1943_v12  ;;  %1103 = vmatpush1.bf16.msra.mxu1 %v1948_v13 }
 0x470   : > { %1063 = vmatprep.subr.bf16.mxu0 %v1955_v14  ;;  %1104 = vmatprep.subr.bf16.mxu1 %v1962_v15 }
 0x473   : > { %1064 = vmatpush1.bf16.msra.mxu0 %v1967_v16  ;;  %1105 = vmatpush1.bf16.msra.mxu1 %v1974_v17 }
 0x474   : > { %1065 = vmatprep.subr.bf16.mxu0 %v1979_v18  ;;  %1106 = vmatprep.subr.bf16.mxu1 %v1986_v19 }
 0x477   : > { %1066 = vmatpush1.bf16.msra.mxu0 %v1991_v20  ;;  %1107 = vmatpush1.bf16.msra.mxu1 %v1996_v21 }
 0x478   : > { %1067 = vmatprep.subr.bf16.mxu0 %v2003_v22  ;;  %1108 = vmatprep.subr.bf16.mxu1 %v2010_v23 }
 0x47b   : > { %1068 = vmatpush1.bf16.msra.mxu0 %v2017_v24  ;;  %1109 = vmatpush1.bf16.msra.mxu1 %v2022_v25 }
 0x47c   : > { %1069 = vmatprep.subr.bf16.mxu0 %v2029_v26  ;;  %1110 = vmatprep.subr.bf16.mxu1 %v2034_v27 }
 0x47f   : > { %1070 = vmatpush1.bf16.msra.mxu0 %v2041_v28  ;;  %1111 = vmatpush1.bf16.msra.mxu1 %v2046_v29 }
 0x480   : > { %1071 = vmatprep.subr.bf16.mxu0 %v2053_v30  ;;  %1112 = vmatprep.subr.bf16.mxu1 %v2058_v31 }
 0x483   : > { %1072 = vmatpush1.bf16.msra.mxu0 %v2065_v32  ;;  %1113 = vmatpush1.bf16.msra.mxu1 %v2070_v33 }
 0x484   : > { %1198 = vmatprep.subr.bf16.mxu0 %v1885_v1  ;;  %1239 = vmatprep.subr.bf16.mxu1 %v1890_v2 }
 0x539   : > { %v950_v4 = vpop.f32.mrb[16].mxu0  ;;  %v991_v5 = vpop.f32.mrb[16].mxu1 }
 0x53a   : > { %v952_v60 = vpop.f32.mrb[17].mxu0  ;;  %v993_v41 = vpop.f32.mrb[17].mxu1 }
 0x53b   : > { %v1002_v42 = vcombine.low %v950_v4, %v952_v60  ;;  %v1003_v44 = vcombine.low %v991_v5, %v993_v41  ;;  %v954_v46 = vpop.f32.mrb[18].mxu0  ;;  %v995_v47 = vpop.f32.mrb[18].mxu1 }
 0x53c   : > { %v955_v48 = vpop.f32.mrb[19].mxu0  ;;  %v996_v49 = vpop.f32.mrb[19].mxu1 }
 0x53d   : > { %v1010_v50 = vrot.slane %v1002_v42, %v2112_v43  ;;  %v1017_v51 = vrot.slane %v1003_v44, %v2112_v43  ;;  %v2292_v42 = vld [vmem:[%s2446_s1] ss:$16 sps:$4 sm:$0xff]  }
 0x53f   : > { %v1018_v54 = vcombine.low %v1010_v50, %v1017_v51 }
 0x541   : > { %v1020_v55 = vadd.f32 %v1596_v52, %v1018_v54 }
 0x543   : > { %v1597_v1 = vmul.f32 -1.442695, %v1020_v55  ;;  %v1028_v56 = vrot.slane %v1020_v55, 2  ;;  %v1039_v57 = vrot.slane %v1020_v55, 6  ;;  %v1036_v59 = vrot.slane %v1020_v55, 4 }
 0x545   : > { %1742 = vpow2.f32 %v1597_v1  ;;  %v1598_v2 = vmul.f32 -1.442695, %v1028_v56  ;;  %v1599_v45 = vmul.f32 -1.442695, %v1039_v57  ;;  %v1810_v56 = vld [vmem:[%s2446_s1 + $0x24] ss:$16 sps:$4 sm:$0xff]  }
 0x546   : > { %v1812_v57 = vld [vmem:[%s2446_s1 + $0x20] ss:$16 sps:$4 sm:$0xff]  }
 0x547   : > { %1744 = vpow2.f32 %v1598_v2  ;;  %v1811_v2 = vld [vmem:[%s2446_s1 + $0x2c] ss:$16 sps:$4 sm:$0xff]  }
 0x548   : > { %1746 = vpow2.f32 %v1599_v45  ;;  %v1813_v45 = vld [vmem:[%s2446_s1 + $0x28] ss:$16 sps:$4 sm:$0xff]  }
 0x54f   : > { %v1743_v58 = vpop.eup %1742 }
 0x550   : > { %v1024_v61 = vadd.f32 1.0, %v1743_v58  ;;  %v1814_v58 = vld [vmem:[%s2446_s1 + $0x44] ss:$16 sps:$4 sm:$0xff]  }
 0x551   : > { %v1745_v62 = vpop.eup %1744 }
 0x552   : > { %1748 = vrcp.f32 %v1024_v61  ;;  %v1033_v63 = vadd.f32 1.0, %v1745_v62  ;;  %v1747_v0 = vpop.eup %1746  ;;  %v1817_v61 = vld [vmem:[%s2446_s1 + $0x48] ss:$16 sps:$4 sm:$0xff]   ;;  %v1818_v62 = vld [vmem:[%s2446_s1 + $0x64] ss:$16 sps:$4 sm:$0xff]  }
 0x553   : > { %1750 = vtanh.f32 %v1036_v59  ;;  %v1044_v37 = vadd.f32 1.0, %v1747_v0  ;;  %v1815_v59 = vld [vmem:[%s2446_s1 + $0x4c] ss:$16 sps:$4 sm:$0xff]   ;;  %v1820_v0 = vld [vmem:[%s2446_s1 + $0x60] ss:$16 sps:$4 sm:$0xff]  }
 0x554   : > { %1752 = vrcp.f32 %v1033_v63  ;;  %v1819_v63 = vld [vmem:[%s2446_s1 + $0x6c] ss:$16 sps:$4 sm:$0xff]  }
 0x555   : > { %1754 = vrcp.f32 %v1044_v37  ;;  %v1824_v37 = vld [vmem:[%s2446_s1 + $0x80] ss:$16 sps:$4 sm:$0xff]  }
 0x55c   : > { %v1749_v53 = vpop.eup %1748 }
 0x55d   : > { %v1751_v34 = vpop.eup %1750 }
 0x55e   : > { %v1753_v35 = vpop.eup %1752  ;;  %v1048_v39 = vmul.f32 %v1751_v34, %v1749_v53  ;;  %v1821_v53 = vld [vmem:[%s2446_s1 + $0x68] ss:$16 sps:$4 sm:$0xff]   ;;  %v1822_v34 = vld [vmem:[%s2446_s1 + $0x84] ss:$16 sps:$4 sm:$0xff]  }
 0x55f   : > { %v1047_v38 = vmul.f32 %v1753_v35, %v2243_v36  ;;  %v1755_v4 = vpop.eup %1754  ;;  %v2298_v36 = vld [vmem:[%s2446_s1 + $0x8] ss:$16 sps:$4 sm:$0xff]   ;;  %v1823_v35 = vld [vmem:[%s2446_s1 + $0x8c] ss:$16 sps:$4 sm:$0xff]  }
 0x561   : > { %v2285_v40 = vadd.f32 %v1048_v39, %v1047_v38  ;;  %v1825_v38 = vld [vmem:[%s2446_s1 + $0x88] ss:$16 sps:$4 sm:$0xff]   ;;  %v1826_v39 = vld [vmem:[%s2446_s1 + $0xa4] ss:$16 sps:$4 sm:$0xff]  }
 0x563   : > { %1756 = vtanh.f32 %v2285_v40 }
 0x56d   : > { %v1757_v5 = vpop.eup %1756 }
 0x56e   : > { %v1051_v60 = vmul.f32 %v1757_v5, %v1755_v4  ;;  %v1828_v4 = vld [vmem:[%s2446_s1 + $0xa0] ss:$16 sps:$4 sm:$0xff]   ;;  %v1829_v5 = vld [vmem:[%s2446_s1 + $0xa8] ss:$16 sps:$4 sm:$0xff]  }
 0x570   : > { %1600 = vst [vmem:[%s1880_s19 + $0x8] sm:$0x3] %v1051_v60  ;;  %v1056_v41 = vpack.c.bf16 %v1051_v60, %v1051_v60  ;;  %v1830_v60 = vld [vmem:[%s2446_s1 + $0xc4] ss:$16 sps:$4 sm:$0xff]  }
 0x572   : > { %1090 = vmatmul.mubr.bf16.vlgmr.msra.gmra.mrb[20].mxu0 %v1056_v41  ;;  %1131 = vmatmul.mubr.bf16.vlgmr.msra.gmra.mrb[20].mxu1 %v1056_v41  ;;  %v1831_v41 = vld [vmem:[%s2446_s1 + $0xcc] ss:$16 sps:$4 sm:$0xff]  }
 0x573   : > { %1199 = vmatpush1.bf16.msra.mxu0 %v2292_v42  ;;  %1240 = vmatpush1.bf16.msra.mxu1 %v2298_v36 }
 0x574   : > { %1200 = vmatprep.subr.bf16.mxu0 %v1909_v6  ;;  %1241 = vmatprep.subr.bf16.mxu1 %v1916_v7  ;;  %v1808_v6 = vld [vmem:[%s2446_s1 + $0x4] ss:$16 sps:$4 sm:$0xff]   ;;  %v1809_v7 = vld [vmem:[%s2446_s1 + $0xc] ss:$16 sps:$4 sm:$0xff]  }
 0x575   : > { %1230 = vmatprep.mubr.bf16.mxu0 %v1847_v3  ;;  %1271 = vmatprep.mubr.bf16.mxu1 %v1847_v3 }
 0x577   : > { %1201 = vmatpush1.bf16.msra.mxu0 %v1921_v8  ;;  %1242 = vmatpush1.bf16.msra.mxu1 %v1927_v9 }
 0x578   : > { %1202 = vmatprep.subr.bf16.mxu0 %v1933_v10  ;;  %1243 = vmatprep.subr.bf16.mxu1 %v1938_v11 }
 0x57b   : > { %1203 = vmatpush1.bf16.msra.mxu0 %v1943_v12  ;;  %1244 = vmatpush1.bf16.msra.mxu1 %v1948_v13 }
 0x57c   : > { %1204 = vmatprep.subr.bf16.mxu0 %v1955_v14  ;;  %1245 = vmatprep.subr.bf16.mxu1 %v1962_v15 }
 0x57f   : > { %1205 = vmatpush1.bf16.msra.mxu0 %v1967_v16  ;;  %1246 = vmatpush1.bf16.msra.mxu1 %v1974_v17 }
 0x580   : > { %1206 = vmatprep.subr.bf16.mxu0 %v1979_v18  ;;  %1247 = vmatprep.subr.bf16.mxu1 %v1986_v19 }
 0x583   : > { %1207 = vmatpush1.bf16.msra.mxu0 %v1991_v20  ;;  %1248 = vmatpush1.bf16.msra.mxu1 %v1996_v21  ;;  %v1601_v20 = vld [vmem:[%s1875_s16 + $0x28] sm:$0xff] }
 0x584   : > { %1208 = vmatprep.subr.bf16.mxu0 %v2003_v22  ;;  %1249 = vmatprep.subr.bf16.mxu1 %v2010_v23 }
 0x587   : > { %1209 = vmatpush1.bf16.msra.mxu0 %v2017_v24  ;;  %1250 = vmatpush1.bf16.msra.mxu1 %v2022_v25 }
 0x588   : > { %1210 = vmatprep.subr.bf16.mxu0 %v2029_v26  ;;  %1251 = vmatprep.subr.bf16.mxu1 %v2034_v27 }
 0x58b   : > { %1211 = vmatpush1.bf16.msra.mxu0 %v2041_v28  ;;  %1252 = vmatpush1.bf16.msra.mxu1 %v2046_v29 }
 0x58c   : > { %1212 = vmatprep.subr.bf16.mxu0 %v2053_v30  ;;  %1253 = vmatprep.subr.bf16.mxu1 %v2058_v31 }
 0x58f   : > { %1213 = vmatpush1.bf16.msra.mxu0 %v2065_v32  ;;  %1254 = vmatpush1.bf16.msra.mxu1 %v2070_v33 }
 0x590   : > { %1339 = vmatprep.subr.bf16.mxu0 %v1808_v6  ;;  %1380 = vmatprep.subr.bf16.mxu1 %v1809_v7  ;;  %v1834_v6 = vld [vmem:[%s2446_s1 + $0xe4] ss:$16 sps:$4 sm:$0xff]   ;;  %v1835_v7 = vld [vmem:[%s2446_s1 + $0xec] ss:$16 sps:$4 sm:$0xff]  }
 0x645   : > { %v1091_v8 = vpop.f32.mrb[20].mxu0  ;;  %v1132_v9 = vpop.f32.mrb[20].mxu1 }
 0x646   : > { %v1093_v10 = vpop.f32.mrb[21].mxu0  ;;  %v1134_v11 = vpop.f32.mrb[21].mxu1 }
 0x647   : > { %v1143_v12 = vcombine.low %v1091_v8, %v1093_v10  ;;  %v1144_v13 = vcombine.low %v1132_v9, %v1134_v11  ;;  %v1095_v14 = vpop.f32.mrb[22].mxu0  ;;  %v1136_v15 = vpop.f32.mrb[22].mxu1  ;;  %v1836_v8 = vld [vmem:[%s2446_s1 + $0xe0] ss:$16 sps:$4 sm:$0xff]   ;;  %v1837_v9 = vld [vmem:[%s2446_s1 + $0xe8] ss:$16 sps:$4 sm:$0xff]  }
 0x648   : > { %v1096_v16 = vpop.f32.mrb[23].mxu0  ;;  %v1137_v17 = vpop.f32.mrb[23].mxu1 }
 0x649   : > { %v1151_v18 = vrot.slane %v1143_v12, %v2112_v43  ;;  %v1158_v19 = vrot.slane %v1144_v13, %v2112_v43 }
 0x64b   : > { %v1159_v21 = vcombine.low %v1151_v18, %v1158_v19 }
 0x64d   : > { %v1161_v22 = vadd.f32 %v1601_v20, %v1159_v21 }
 0x64f   : > { %v1602_v23 = vmul.f32 -1.442695, %v1161_v22  ;;  %v1169_v24 = vrot.slane %v1161_v22, 2  ;;  %v1180_v26 = vrot.slane %v1161_v22, 6  ;;  %v1177_v29 = vrot.slane %v1161_v22, 4  ;;  %v1606_v22 = vld [vmem:[%s1875_s16 + $0x30] sm:$0xff] }
 0x651   : > { %1758 = vpow2.f32 %v1602_v23  ;;  %v1603_v25 = vmul.f32 -1.442695, %v1169_v24  ;;  %v1604_v27 = vmul.f32 -1.442695, %v1180_v26 }
 0x653   : > { %1760 = vpow2.f32 %v1603_v25 }
 0x654   : > { %1762 = vpow2.f32 %v1604_v27 }
 0x65b   : > { %v1759_v28 = vpop.eup %1758 }
 0x65c   : > { %v1165_v30 = vadd.f32 1.0, %v1759_v28 }
 0x65d   : > { %v1761_v31 = vpop.eup %1760 }
 0x65e   : > { %1764 = vrcp.f32 %v1165_v30  ;;  %v1174_v32 = vadd.f32 1.0, %v1761_v31  ;;  %v1763_v33 = vpop.eup %1762 }
 0x65f   : > { %1766 = vtanh.f32 %v1177_v29  ;;  %v1185_v48 = vadd.f32 1.0, %v1763_v33 }
 0x660   : > { %1768 = vrcp.f32 %v1174_v32 }
 0x661   : > { %1770 = vrcp.f32 %v1185_v48 }
 0x668   : > { %v1765_v44 = vpop.eup %1764 }
 0x669   : > { %v1767_v46 = vpop.eup %1766 }
 0x66a   : > { %v1769_v47 = vpop.eup %1768  ;;  %v1189_v50 = vmul.f32 %v1767_v46, %v1765_v44 }
 0x66b   : > { %v1188_v49 = vmul.f32 %v1769_v47, %v2285_v40  ;;  %v1771_v52 = vpop.eup %1770  ;;  %v1827_v40 = vld [vmem:[%s2446_s1 + $0xac] ss:$16 sps:$4 sm:$0xff]  }
 0x66d   : > { %v2341_v51 = vadd.f32 %v1189_v50, %v1188_v49 }
 0x66f   : > { %1772 = vtanh.f32 %v2341_v51 }
 0x679   : > { %v1773_v54 = vpop.eup %1772 }
 0x67a   : > { %v1192_v55 = vmul.f32 %v1773_v54, %v1771_v52 }
 0x67c   : > { %1605 = vst [vmem:[%s1880_s19 + $0xa] sm:$0x3] %v1192_v55  ;;  %v1197_v1 = vpack.c.bf16 %v1192_v55, %v1192_v55 }
 0x67e   : > { %1231 = vmatmul.mubr.bf16.vlgmr.msra.gmra.mrb[24].mxu0 %v1197_v1  ;;  %1272 = vmatmul.mubr.bf16.vlgmr.msra.gmra.mrb[24].mxu1 %v1197_v1 }
 0x67f   : > { %1340 = vmatpush1.bf16.msra.mxu0 %v2292_v42  ;;  %1381 = vmatpush1.bf16.msra.mxu1 %v2298_v36  ;;  %v1832_v42 = vld [vmem:[%s2446_s1 + $0xc0] ss:$16 sps:$4 sm:$0xff]   ;;  %v1833_v36 = vld [vmem:[%s2446_s1 + $0xc8] ss:$16 sps:$4 sm:$0xff]  }
 0x680   : > { %1341 = vmatprep.subr.bf16.mxu0 %v1810_v56  ;;  %1382 = vmatprep.subr.bf16.mxu1 %v1811_v2 }
 0x681   : > { %1371 = vmatprep.mubr.bf16.mxu0 %v1847_v3  ;;  %1412 = vmatprep.mubr.bf16.mxu1 %v1847_v3  ;;  %v1816_v3 = vld [vmem:[%s2446_s1 + $0x40] ss:$16 sps:$4 sm:$0xff]  }
 0x683   : > { %1342 = vmatpush1.bf16.msra.mxu0 %v1812_v57  ;;  %1383 = vmatpush1.bf16.msra.mxu1 %v1813_v45 }
 0x684   : > { %1343 = vmatprep.subr.bf16.mxu0 %v1814_v58  ;;  %1384 = vmatprep.subr.bf16.mxu1 %v1815_v59 }
 0x687   : > { %1344 = vmatpush1.bf16.msra.mxu0 %v1816_v3  ;;  %1385 = vmatpush1.bf16.msra.mxu1 %v1817_v61 }
 0x688   : > { %1345 = vmatprep.subr.bf16.mxu0 %v1818_v62  ;;  %1386 = vmatprep.subr.bf16.mxu1 %v1819_v63 }
 0x68b   : > { %1346 = vmatpush1.bf16.msra.mxu0 %v1820_v0  ;;  %1387 = vmatpush1.bf16.msra.mxu1 %v1821_v53 }
 0x68c   : > { %1347 = vmatprep.subr.bf16.mxu0 %v1822_v34  ;;  %1388 = vmatprep.subr.bf16.mxu1 %v1823_v35 }
 0x68f   : > { %1348 = vmatpush1.bf16.msra.mxu0 %v1824_v37  ;;  %1389 = vmatpush1.bf16.msra.mxu1 %v1825_v38  ;;  %v1611_v37 = vld [vmem:[%s1875_s16 + $0x38] sm:$0xff] }
 0x690   : > { %1349 = vmatprep.subr.bf16.mxu0 %v1826_v39  ;;  %1390 = vmatprep.subr.bf16.mxu1 %v1827_v40 }
 0x693   : > { %1350 = vmatpush1.bf16.msra.mxu0 %v1828_v4  ;;  %1391 = vmatpush1.bf16.msra.mxu1 %v1829_v5 }
 0x694   : > { %1351 = vmatprep.subr.bf16.mxu0 %v1830_v60  ;;  %1392 = vmatprep.subr.bf16.mxu1 %v1831_v41 }
 0x697   : > { %1352 = vmatpush1.bf16.msra.mxu0 %v1832_v42  ;;  %1393 = vmatpush1.bf16.msra.mxu1 %v1833_v36 }
 0x698   : > { %1353 = vmatprep.subr.bf16.mxu0 %v1834_v6  ;;  %1394 = vmatprep.subr.bf16.mxu1 %v1835_v7 }
 0x69b   : > { %1354 = vmatpush1.bf16.msra.mxu0 %v1836_v8  ;;  %1395 = vmatpush1.bf16.msra.mxu1 %v1837_v9 }
 0x751   : > { %v1232_v10 = vpop.f32.mrb[24].mxu0  ;;  %v1273_v11 = vpop.f32.mrb[24].mxu1 }
 0x752   : > { %v1234_v12 = vpop.f32.mrb[25].mxu0  ;;  %v1275_v13 = vpop.f32.mrb[25].mxu1 }
 0x753   : > { %v1284_v14 = vcombine.low %v1232_v10, %v1234_v12  ;;  %v1285_v15 = vcombine.low %v1273_v11, %v1275_v13  ;;  %v1236_v16 = vpop.f32.mrb[26].mxu0  ;;  %v1277_v17 = vpop.f32.mrb[26].mxu1 }
 0x754   : > { %v1237_v18 = vpop.f32.mrb[27].mxu0  ;;  %v1278_v19 = vpop.f32.mrb[27].mxu1 }
 0x755   : > { %v1292_v20 = vrot.slane %v1284_v14, %v2112_v43  ;;  %v1299_v21 = vrot.slane %v1285_v15, %v2112_v43 }
 0x757   : > { %v1300_v23 = vcombine.low %v1292_v20, %v1299_v21 }
 0x759   : > { %v1302_v24 = vadd.f32 %v1606_v22, %v1300_v23 }
 0x75b   : > { %v1607_v25 = vmul.f32 -1.442695, %v1302_v24  ;;  %v1310_v26 = vrot.slane %v1302_v24, 2  ;;  %v1321_v28 = vrot.slane %v1302_v24, 6  ;;  %v1318_v31 = vrot.slane %v1302_v24, 4 }
 0x75d   : > { %1774 = vpow2.f32 %v1607_v25  ;;  %v1608_v27 = vmul.f32 -1.442695, %v1310_v26  ;;  %v1609_v29 = vmul.f32 -1.442695, %v1321_v28 }
 0x75f   : > { %1776 = vpow2.f32 %v1608_v27 }
 0x760   : > { %1778 = vpow2.f32 %v1609_v29 }
 0x767   : > { %v1775_v30 = vpop.eup %1774 }
 0x768   : > { %v1306_v32 = vadd.f32 1.0, %v1775_v30 }
 0x769   : > { %v1777_v33 = vpop.eup %1776 }
 0x76a   : > { %1780 = vrcp.f32 %v1306_v32  ;;  %v1315_v44 = vadd.f32 1.0, %v1777_v33  ;;  %v1779_v46 = vpop.eup %1778 }
 0x76b   : > { %1782 = vtanh.f32 %v1318_v31  ;;  %v1326_v50 = vadd.f32 1.0, %v1779_v46 }
 0x76c   : > { %1784 = vrcp.f32 %v1315_v44 }
 0x76d   : > { %1786 = vrcp.f32 %v1326_v50 }
 0x774   : > { %v1781_v47 = vpop.eup %1780 }
 0x775   : > { %v1783_v48 = vpop.eup %1782 }
 0x776   : > { %v1785_v49 = vpop.eup %1784  ;;  %v1330_v54 = vmul.f32 %v1783_v48, %v1781_v47 }
 0x777   : > { %v1329_v52 = vmul.f32 %v1785_v49, %v2341_v51  ;;  %v1787_v1 = vpop.eup %1786 }
 0x779   : > { %v1331_v55 = vadd.f32 %v1330_v54, %v1329_v52 }
 0x77b   : > { %1788 = vtanh.f32 %v1331_v55 }
 0x785   : > { %v1789_v56 = vpop.eup %1788 }
 0x786   : > { %v1333_v2 = vmul.f32 %v1789_v56, %v1787_v1 }
 0x788   : > { %1610 = vst [vmem:[%s1880_s19 + $0xc] sm:$0x3] %v1333_v2  ;;  %v1338_v57 = vpack.c.bf16 %v1333_v2, %v1333_v2 }
 0x78a   : > { %1372 = vmatmul.mubr.bf16.vlgmr.msra.gmra.mrb[28].mxu0 %v1338_v57  ;;  %1413 = vmatmul.mubr.bf16.vlgmr.msra.gmra.mrb[28].mxu1 %v1338_v57 }
 0x85d   : > { %v1373_v45 = vpop.f32.mrb[28].mxu0  ;;  %v1414_v58 = vpop.f32.mrb[28].mxu1 }
 0x85e   : > { %v1375_v59 = vpop.f32.mrb[29].mxu0  ;;  %v1416_v3 = vpop.f32.mrb[29].mxu1 }
 0x85f   : > { %v1425_v61 = vcombine.low %v1373_v45, %v1375_v59  ;;  %v1426_v62 = vcombine.low %v1414_v58, %v1416_v3  ;;  %v1377_v63 = vpop.f32.mrb[30].mxu0  ;;  %v1418_v51 = vpop.f32.mrb[30].mxu1 }
 0x860   : > { %v1378_v0 = vpop.f32.mrb[31].mxu0  ;;  %v1419_v53 = vpop.f32.mrb[31].mxu1 }
 0x861   : > { %v1433_v34 = vrot.slane %v1425_v61, %v2112_v43  ;;  %v1440_v35 = vrot.slane %v1426_v62, %v2112_v43 }
 0x863   : > { %v1441_v38 = vcombine.low %v1433_v34, %v1440_v35 }
 0x865   : > { %v1443_v39 = vadd.f32 %v1611_v37, %v1441_v38 }
 0x867   : > { %v1612_v40 = vmul.f32 -1.442695, %v1443_v39  ;;  %v1451_v4 = vrot.slane %v1443_v39, 2  ;;  %v1462_v60 = vrot.slane %v1443_v39, 6  ;;  %v1459_v36 = vrot.slane %v1443_v39, 4 }
 0x869   : > { %1790 = vpow2.f32 %v1612_v40  ;;  %v1613_v5 = vmul.f32 -1.442695, %v1451_v4  ;;  %v1614_v41 = vmul.f32 -1.442695, %v1462_v60 }
 0x86b   : > { %1792 = vpow2.f32 %v1613_v5 }
 0x86c   : > { %1794 = vpow2.f32 %v1614_v41 }
 0x873   : > { %v1791_v42 = vpop.eup %1790 }
 0x874   : > { %v1447_v6 = vadd.f32 1.0, %v1791_v42 }
 0x875   : > { %v1793_v7 = vpop.eup %1792 }
 0x876   : > { %1796 = vrcp.f32 %v1447_v6  ;;  %v1456_v8 = vadd.f32 1.0, %v1793_v7  ;;  %v1795_v43 = vpop.eup %1794 }
 0x877   : > { %1798 = vtanh.f32 %v1459_v36  ;;  %v1467_v12 = vadd.f32 1.0, %v1795_v43 }
 0x878   : > { %1800 = vrcp.f32 %v1456_v8 }
 0x879   : > { %1802 = vrcp.f32 %v1467_v12 }
 0x880   : > { %v1797_v9 = vpop.eup %1796 }
 0x881   : > { %v1799_v10 = vpop.eup %1798 }
 0x882   : > { %v1801_v11 = vpop.eup %1800  ;;  %v1471_v14 = vmul.f32 %v1799_v10, %v1797_v9 }
 0x883   : > { %v1470_v13 = vmul.f32 %v1801_v11, %v1331_v55  ;;  %v1803_v16 = vpop.eup %1802 }
 0x885   : > { %v1472_v15 = vadd.f32 %v1471_v14, %v1470_v13 }
 0x887   : > { %1804 = vtanh.f32 %v1472_v15  ;;  %1478 = vst [vmem:[#allocation3] sm:$0x3] %v1472_v15 }
 0x891   : > { %v1805_v17 = vpop.eup %1804 }
 0x892   : > { %v1474_v18 = vmul.f32 %v1805_v17, %v1803_v16 }
 0x894   : > { %1615 = vst [vmem:[%s1880_s19 + $0xe] sm:$0x3] %v1474_v18  ;;  %1477 = vst [vmem:[#allocation2] sm:$0x3] %v1474_v18 }
 0x895 PF: > { %s12_s9 = sadd.s32 1, %s1844_s9  }
 0x896   : > { %p9_p5 = scmp.ge.s32.totalorder %s12_s9, 4  }
 0x898   :  { %11 = sbr.rel (!%p9_p5) target bundleno = 1 (0x1), region = 76 }

</bundles_post_ra>
